<compile_context>
chip_gen: v7x
topology: tpu7x:2x2x1
jax: 0.10.0
libtpu: 0.0.40
codegen_flags: <defaults>
</compile_context>

<pallas_src>
import functools

import jax
import jax.numpy as jnp
import numpy as np
from jax.experimental import pallas as pl
from jax.experimental.pallas import tpu as pltpu

BN_EPS = 1e-5
MM_DTYPE = jnp.bfloat16                 # MXU operand dtype (accum stays f32)

_VMEM = pl.BlockSpec(memory_space=pltpu.MemorySpace.VMEM)


# ----------------------------------------------------------------------------
# Fused whole-network kernel
# ----------------------------------------------------------------------------
def _resnet_kernel(*refs, n, n_quad, l_pool, c0, block_cfgs, pad_widths):
    """Whole forward pass.  refs = inputs..., output, scratch...

    inputs : x_quads (n, n_quad, 4) f32,
             stem_w (12, 2*c0) f32, stem_s / stem_b (1, 2*c0) f32,
             per block: w1 (3*cin, cw) bf16, s1/b1 (1, cw) f32,
                        w2 (3*cout, cout) bf16, s2/b2 (1, cout) f32,
             fc_w (c_last, num_classes) f32, fc_b (1, num_classes) f32
    output : logits (n, num_classes) f32
    scratch: xq (n, n_quad+2, 4) f32, hq (n, n_quad+1, 2*c0) f32,
             one (n, l_pool+2, w) f32 padded buffer per conv-input width w.
    """
    it = iter(refs)
    x_ref = next(it)
    stem_w_ref, stem_s_ref, stem_b_ref = next(it), next(it), next(it)
    blk_refs = [tuple(next(it) for _ in range(6))
                for _ in range(len(block_cfgs))]
    fc_w_ref, fc_b_ref = next(it), next(it)
    o_ref = next(it)
    xq_ref, hq_ref = next(it), next(it)
    apad_refs = {w: next(it) for w in pad_widths}
    assert not tuple(it)

    f32 = jnp.float32

    # ---- stem: conv1d(1->c0, K=7, s=2, pad=3) + BN + ReLU ------------------
    # x_ref[i, q, c] = x[i, 4q + c].  im2col row j yields the two conv outputs
    # t = 2j (first c0 weight columns) and t = 2j+1 (last c0 columns), so the
    # whole stem is one (n*n_quad, 12) x (12, 2*c0) matmul; weight rows the
    # given output parity does not touch are zero.
    for i in range(n):
        xq_ref[i, 0:1, :] = jnp.zeros((1, 4), f32)
        xq_ref[i, n_quad + 1:n_quad + 2, :] = jnp.zeros((1, 4), f32)
        xq_ref[i, 1:n_quad + 1, :] = x_ref[i]
    cols = jnp.concatenate(
        [jnp.concatenate([xq_ref[i, pl.ds(s, n_quad), :] for i in range(n)],
                         axis=0)
         for s in range(3)], axis=1)                        # (n*n_quad, 12)
    acc = jnp.dot(cols, stem_w_ref[...], preferred_element_type=f32)
    h2 = jnp.maximum(acc * stem_s_ref[...] + stem_b_ref[...], 0.0)
    # h2 row j of sample i = [h[2j] | h[2j+1]] (c0 lanes each), h >= 0.

    # ---- maxpool(3, s=2, pad=1): out[j] = max(h[2j-1], h[2j], h[2j+1]) -----
    # (zero padding is valid only because h >= 0 after the ReLU above)
    for i in range(n):
        hq_ref[i, 0:1, :] = jnp.zeros((1, 2 * c0), f32)
        hq_ref[i, 1:n_quad + 1, :] = h2[i * n_quad:(i + 1) * n_quad, :]
    pooled = []
    for i in range(n):
        cur = hq_ref[i, pl.ds(1, l_pool), :]                # h[2j], h[2j+1]
        prev = hq_ref[i, pl.ds(0, l_pool), :]               # ...,   h[2j-1]
        pooled.append(jnp.maximum(jnp.maximum(cur[:, :c0], cur[:, c0:]),
                                  prev[:, c0:]))
    a = jnp.concatenate(pooled, axis=0)                     # (n*l_pool, c0)

    # ---- BasicBlocks (stride 1; fused 1x1-downsample output columns) -------
    def conv3_bn(v, cin, w_ref, s_ref, b_ref):
        """K=3/s=1/pad=1 conv + folded BN as ONE (n*l,3cin)x(3cin,cw) matmul."""
        apad = apad_refs[cin]
        zrow = jnp.zeros((1, cin), f32)
        for i in range(n):
            apad[i, 0:1, :] = zrow
            apad[i, l_pool + 1:l_pool + 2, :] = zrow
            apad[i, 1:l_pool + 1, :] = v[i * l_pool:(i + 1) * l_pool, :]
        col = jnp.concatenate(
            [jnp.concatenate([apad[i, pl.ds(k, l_pool), :] for i in range(n)],
                             axis=0)
             for k in range(3)], axis=1)                    # (n*l, 3*cin)
        out = jnp.dot(col.astype(MM_DTYPE), w_ref[...],
                      preferred_element_type=f32)
        return out * s_ref[...] + b_ref[...]

    for (cin, cout, has_ds), (w1, s1, b1, w2, s2, b2) in zip(block_cfgs,
                                                             blk_refs):
        y1 = conv3_bn(a, cin, w1, s1, b1)                   # (n*l, cw)
        if has_ds:
            h = jnp.maximum(y1[:, :cout], 0.0)              # conv1 branch
            identity = y1[:, cout:]                         # 1x1 ds + BN
        else:
            h = jnp.maximum(y1, 0.0)
            identity = a
        y2 = conv3_bn(h, cout, w2, s2, b2)
        a = jnp.maximum(y2 + identity, 0.0)                 # (n*l, cout) f32

    # ---- head: AdaptiveAvgPool1d(1) + flatten + Linear ---------------------
    # (Dropout(0.5): eval-mode identity.)
    c_last = block_cfgs[-1][1]
    feat = jnp.mean(a.reshape(n, l_pool, c_last), axis=1)   # (n, c_last)
    o_ref[...] = (jnp.dot(feat, fc_w_ref[...], preferred_element_type=f32)
                  + fc_b_ref[...])


# ----------------------------------------------------------------------------
# pallas_call wrapper
# ----------------------------------------------------------------------------
def resnet_forward(params, x):
    """x: (N, 1, L) f32 (PyTorch NCL), L % 4 == 0.  Returns (N, num_classes)."""
    n, cin_in, l_in = x.shape
    assert cin_in == 1 and l_in % 4 == 0
    n_quad = l_in // 4          # stem matmul rows per sample (2 outputs/row)
    l_pool = l_in // 4          # activation length after conv s2 + maxpool s2

    stem_w, stem_s, stem_b = params["stem"]
    c0 = stem_w.shape[1] // 2
    blocks = params["blocks"]
    block_cfgs = tuple(
        (p["w1"].shape[0] // 3, p["w2"].shape[1],
         p["w1"].shape[1] != p["w2"].shape[1]) for p in blocks)
    pad_widths = tuple(sorted({c for cfg in block_cfgs for c in cfg[:2]}))
    fc_w, fc_b = params["fc_w"], params["fc_b"]
    num_classes = fc_w.shape[1]

    # (N, 1, L) -> (N, L/4, 4) is a free row-major reshape (Cin == 1).
    x_q = x.reshape(n, n_quad, 4)

    flat_inputs = [x_q, stem_w, stem_s, stem_b]
    for p in blocks:
        flat_inputs += [p["w1"], p["s1"], p["b1"], p["w2"], p["s2"], p["b2"]]
    flat_inputs += [fc_w, fc_b]

    scratch = [pltpu.VMEM((n, n_quad + 2, 4), jnp.float32),      # padded quads
               pltpu.VMEM((n, n_quad + 1, 2 * c0), jnp.float32)]  # stem out
    scratch += [pltpu.VMEM((n, l_pool + 2, w), jnp.float32) for w in pad_widths]

    kern = functools.partial(_resnet_kernel, n=n, n_quad=n_quad, l_pool=l_pool,
                             c0=c0, block_cfgs=block_cfgs,
                             pad_widths=pad_widths)
    return pl.pallas_call(
        kern,
        out_shape=jax.ShapeDtypeStruct((n, num_classes), jnp.float32),
        in_specs=[_VMEM] * len(flat_inputs),
        out_specs=_VMEM,
        scratch_shapes=scratch,
    )(*flat_inputs)


# ----------------------------------------------------------------------------
# Parameter construction (deterministic; BN folded; weights pre-laid-out as
# (K*Cin, Cout) matrices for the single-matmul-per-conv formulation)
# ----------------------------------------------------------------------------
def _conv_bn_folded(key, cin, cout, k, with_bias=False):
    k1, k2, k3, k4, k5, k6 = jax.random.split(key, 6)
    w = jax.random.normal(k1, (cout, cin, k), jnp.float32) * 0.1
    b = (jax.random.normal(k2, (cout,), jnp.float32) * 0.1
         if with_bias else jnp.zeros((cout,), jnp.float32))
    gamma = 1.0 + 0.1 * jax.random.normal(k3, (cout,), jnp.float32)
    beta = 0.1 * jax.random.normal(k4, (cout,), jnp.float32)
    mean = 0.1 * jax.random.normal(k5, (cout,), jnp.float32)
    var = 1.0 + 0.1 * jnp.abs(jax.random.normal(k6, (cout,), jnp.float32))
    scale = gamma / jnp.sqrt(var + BN_EPS)
    shift = beta + (b - mean) * scale
    return w, scale, shift


def _make_stem_params(key, c0=16):
    """conv1(1->c0, K=7, s=2, pad=3, bias) + bn1 folded, quad-packed weights.

    w12[4s + c, :] holds the conv tap that multiplies x[4j + 4s + c - 4] for
    im2col row j; columns [0:c0] produce output t = 2j, [c0:2c0] t = 2j + 1.
    """
    w, s, h = _conv_bn_folded(key, 1, c0, 7, with_bias=True)
    w7 = w[:, 0, :]                                          # (c0, 7)
    w12 = jnp.zeros((12, 2 * c0), jnp.float32)
    for k in range(7):
        w12 = w12.at[k + 1, 0:c0].set(w7[:, k])              # even: 4s+c = k+1
        w12 = w12.at[k + 3, c0:2 * c0].set(w7[:, k])         # odd : 4s+c = k+3
    packed = (w12, jnp.concatenate([s, s])[None, :],
              jnp.concatenate([h, h])[None, :])
    return packed, (w, s[None, :], h[None, :])


def _make_block_params(key, cin, cout):
    k1, k2, k3 = jax.random.split(key, 3)
    w1, s1, h1 = _conv_bn_folded(k1, cin, cout, 3)
    w2, s2, h2 = _conv_bn_folded(k2, cout, cout, 3)
    w1m = jnp.transpose(w1, (2, 1, 0)).reshape(3 * cin, cout)   # (3cin, cout)
    w2m = jnp.transpose(w2, (2, 1, 0)).reshape(3 * cout, cout)
    if cin != cout:                     # fused 1x1 downsample output columns
        wds, sds, hds = _conv_bn_folded(k3, cin, cout, 1)
        ds_cols = jnp.zeros((3 * cin, cout), jnp.float32)
        ds_cols = ds_cols.at[cin:2 * cin, :].set(jnp.transpose(wds[:, :, 0]))
        w1m = jnp.concatenate([w1m, ds_cols], axis=1)           # (3cin, 2cout)
        s1c = jnp.concatenate([s1, sds])
        h1c = jnp.concatenate([h1, hds])
    else:
        wds = sds = hds = None
        s1c, h1c = s1, h1
    return {"w1": w1m.astype(MM_DTYPE), "s1": s1c[None, :], "b1": h1c[None, :],
            "w2": w2m.astype(MM_DTYPE), "s2": s2[None, :], "b2": h2[None, :],
            "ref": (w1, s1, h1, w2, s2, h2, wds, sds, hds)}


def init_resnet_params(key, num_blocks=(1, 1, 1), num_classes=2):
    keys = jax.random.split(key, 5)
    stem, stem_ref = _make_stem_params(keys[0], 16)
    params = {"stem": stem, "stem_ref": stem_ref}
    blocks = []
    in_ch = 16
    for li, (out_ch, nb) in enumerate(zip((16, 32, 64), num_blocks)):
        for bk in jax.random.split(keys[1 + li], nb):
            blocks.append(_make_block_params(bk, in_ch, out_ch))
            in_ch = out_ch
    params["blocks"] = blocks
    kw, kb = jax.random.split(keys[4])
    params["fc_w"] = jax.random.normal(kw, (in_ch, num_classes),
                                       jnp.float32) * 0.1
    params["fc_b"] = (0.1 * jax.random.normal(kb, (num_classes,),
                                              jnp.float32))[None, :]
    return params


# ----------------------------------------------------------------------------
# Pure-JAX (XLA) reference with the same folded params and bf16 casts
# ----------------------------------------------------------------------------
def resnet_reference(params, x):
    f32 = jnp.float32

    def conv(v, w_oik, stride, pad, dtype=None):
        w_kio = jnp.transpose(w_oik, (2, 1, 0))              # (K, Cin, Cout)
        if dtype is not None:
            v, w_kio = v.astype(dtype), w_kio.astype(dtype)
        return jax.lax.conv_general_dilated(
            v, w_kio, window_strides=(stride,), padding=[(pad, pad)],
            dimension_numbers=("NWC", "WIO", "NWC"),
            preferred_element_type=f32)

    v = jnp.transpose(x, (0, 2, 1))                          # (N, L, 1)
    w, s, b = params["stem_ref"]
    v = jnp.maximum(conv(v, w, 2, 3) * s + b, 0.0)           # conv1+bn1+relu
    lp = (v.shape[1] - 1) // 2 + 1                           # maxpool(3, 2, 1)
    vp = jnp.pad(v, ((0, 0), (1, 1), (0, 0)))
    v = jnp.maximum(jnp.maximum(vp[:, 0:2 * lp:2], vp[:, 1:2 * lp:2]),
                    vp[:, 2:2 * lp + 1:2])
    for blk in params["blocks"]:
        w1, s1, b1, w2, s2, b2, wds, sds, bds = blk["ref"]
        y = jnp.maximum(conv(v, w1, 1, 1, MM_DTYPE) * s1 + b1, 0.0)
        y = conv(y, w2, 1, 1, MM_DTYPE) * s2 + b2
        ident = v if wds is None else conv(v, wds, 1, 0, MM_DTYPE) * sds + bds
        v = jnp.maximum(y + ident, 0.0)
    feat = jnp.mean(v, axis=1)                               # avgpool+flatten
    return feat @ params["fc_w"] + params["fc_b"]            # fc (+eval drop)


if __name__ == "__main__":
    key = jax.random.PRNGKey(0)
    k_params, k_x = jax.random.split(key)
    params = init_resnet_params(k_params, num_blocks=(1, 1, 1), num_classes=2)
    x = jax.random.normal(k_x, (2, 1, 128), jnp.float32)     # (batch, 1, CIR)

    out = jax.block_until_ready(jax.jit(resnet_forward)(params, x))
    ref = jax.block_until_ready(resnet_reference(params, x))

    assert out.shape == (2, 2) and out.dtype == jnp.float32
    np.testing.assert_allclose(np.asarray(out), np.asarray(ref),
                               rtol=5e-2, atol=5e-2)
    print("KERNEL_OK")
</pallas_src>

<mosaic_0001>
module attributes {stable_mosaic.version = 11 : i64} {
  func.func @_resnet_kernel(%arg0: memref<2x32x4xf32, #tpu.memory_space<vmem>>, %arg1: memref<12x32xf32, #tpu.memory_space<vmem>>, %arg2: memref<1x32xf32, #tpu.memory_space<vmem>>, %arg3: memref<1x32xf32, #tpu.memory_space<vmem>>, %arg4: memref<48x16xbf16, #tpu.memory_space<vmem>>, %arg5: memref<1x16xf32, #tpu.memory_space<vmem>>, %arg6: memref<1x16xf32, #tpu.memory_space<vmem>>, %arg7: memref<48x16xbf16, #tpu.memory_space<vmem>>, %arg8: memref<1x16xf32, #tpu.memory_space<vmem>>, %arg9: memref<1x16xf32, #tpu.memory_space<vmem>>, %arg10: memref<48x64xbf16, #tpu.memory_space<vmem>>, %arg11: memref<1x64xf32, #tpu.memory_space<vmem>>, %arg12: memref<1x64xf32, #tpu.memory_space<vmem>>, %arg13: memref<96x32xbf16, #tpu.memory_space<vmem>>, %arg14: memref<1x32xf32, #tpu.memory_space<vmem>>, %arg15: memref<1x32xf32, #tpu.memory_space<vmem>>, %arg16: memref<96x128xbf16, #tpu.memory_space<vmem>>, %arg17: memref<1x128xf32, #tpu.memory_space<vmem>>, %arg18: memref<1x128xf32, #tpu.memory_space<vmem>>, %arg19: memref<192x64xbf16, #tpu.memory_space<vmem>>, %arg20: memref<1x64xf32, #tpu.memory_space<vmem>>, %arg21: memref<1x64xf32, #tpu.memory_space<vmem>>, %arg22: memref<64x2xf32, #tpu.memory_space<vmem>>, %arg23: memref<1x2xf32, #tpu.memory_space<vmem>>, %arg24: memref<2x2xf32, #tpu.memory_space<vmem>>, %arg25: memref<2x34x4xf32, #tpu.memory_space<vmem>>, %arg26: memref<2x33x32xf32, #tpu.memory_space<vmem>>, %arg27: memref<2x34x16xf32, #tpu.memory_space<vmem>>, %arg28: memref<2x34x32xf32, #tpu.memory_space<vmem>>, %arg29: memref<2x34x64xf32, #tpu.memory_space<vmem>>) attributes {dimension_semantics = [], scalar_prefetch = 0 : i64, scratch_operands = 5 : i64, tpu.core_type = #tpu.core_type<tc>} {
    %cst = arith.constant 0.000000e+00 : f32
    %0 = vector.broadcast %cst : f32 to vector<1x4xf32>
    %c0 = arith.constant 0 : index
    %c0_0 = arith.constant 0 : index
    %c0_1 = arith.constant 0 : index
    %1 = vector.load %arg25[%c0, %c0_0, %c0_1] : memref<2x34x4xf32, #tpu.memory_space<vmem>>, vector<1x1x4xf32>
    %2 = vector.shape_cast %1 : vector<1x1x4xf32> to vector<1x4xf32>
    %3 = vector.shape_cast %0 : vector<1x4xf32> to vector<1x1x4xf32>
    tpu.vector_store %arg25[%c0, %c0_0, %c0_1], %3 {strides = array<i32>} : memref<2x34x4xf32, #tpu.memory_space<vmem>>, vector<1x1x4xf32>,
    %cst_2 = arith.constant 0.000000e+00 : f32
    %4 = vector.broadcast %cst_2 : f32 to vector<1x4xf32>
    %c0_3 = arith.constant 0 : index
    %c33 = arith.constant 33 : index
    %c0_4 = arith.constant 0 : index
    %5 = vector.load %arg25[%c0_3, %c33, %c0_4] : memref<2x34x4xf32, #tpu.memory_space<vmem>>, vector<1x1x4xf32>
    %6 = vector.shape_cast %5 : vector<1x1x4xf32> to vector<1x4xf32>
    %7 = vector.shape_cast %4 : vector<1x4xf32> to vector<1x1x4xf32>
    tpu.vector_store %arg25[%c0_3, %c33, %c0_4], %7 {strides = array<i32>} : memref<2x34x4xf32, #tpu.memory_space<vmem>>, vector<1x1x4xf32>,
    %c0_5 = arith.constant 0 : index
    %c0_6 = arith.constant 0 : index
    %c0_7 = arith.constant 0 : index
    %8 = vector.load %arg0[%c0_5, %c0_6, %c0_7] : memref<2x32x4xf32, #tpu.memory_space<vmem>>, vector<1x32x4xf32>
    %9 = vector.shape_cast %8 : vector<1x32x4xf32> to vector<32x4xf32>
    %c0_8 = arith.constant 0 : index
    %c1 = arith.constant 1 : index
    %c0_9 = arith.constant 0 : index
    %10 = vector.load %arg25[%c0_8, %c1, %c0_9] : memref<2x34x4xf32, #tpu.memory_space<vmem>>, vector<1x32x4xf32>
    %11 = vector.shape_cast %10 : vector<1x32x4xf32> to vector<32x4xf32>
    %12 = vector.shape_cast %9 : vector<32x4xf32> to vector<1x32x4xf32>
    tpu.vector_store %arg25[%c0_8, %c1, %c0_9], %12 {strides = array<i32>} : memref<2x34x4xf32, #tpu.memory_space<vmem>>, vector<1x32x4xf32>,
    %cst_10 = arith.constant 0.000000e+00 : f32
    %13 = vector.broadcast %cst_10 : f32 to vector<1x4xf32>
    %c1_11 = arith.constant 1 : index
    %c0_12 = arith.constant 0 : index
    %c0_13 = arith.constant 0 : index
    %14 = vector.load %arg25[%c1_11, %c0_12, %c0_13] : memref<2x34x4xf32, #tpu.memory_space<vmem>>, vector<1x1x4xf32>
    %15 = vector.shape_cast %14 : vector<1x1x4xf32> to vector<1x4xf32>
    %16 = vector.shape_cast %13 : vector<1x4xf32> to vector<1x1x4xf32>
    tpu.vector_store %arg25[%c1_11, %c0_12, %c0_13], %16 {strides = array<i32>} : memref<2x34x4xf32, #tpu.memory_space<vmem>>, vector<1x1x4xf32>,
    %cst_14 = arith.constant 0.000000e+00 : f32
    %17 = vector.broadcast %cst_14 : f32 to vector<1x4xf32>
    %c1_15 = arith.constant 1 : index
    %c33_16 = arith.constant 33 : index
    %c0_17 = arith.constant 0 : index
    %18 = vector.load %arg25[%c1_15, %c33_16, %c0_17] : memref<2x34x4xf32, #tpu.memory_space<vmem>>, vector<1x1x4xf32>
    %19 = vector.shape_cast %18 : vector<1x1x4xf32> to vector<1x4xf32>
    %20 = vector.shape_cast %17 : vector<1x4xf32> to vector<1x1x4xf32>
    tpu.vector_store %arg25[%c1_15, %c33_16, %c0_17], %20 {strides = array<i32>} : memref<2x34x4xf32, #tpu.memory_space<vmem>>, vector<1x1x4xf32>,
    %c1_18 = arith.constant 1 : index
    %c0_19 = arith.constant 0 : index
    %c0_20 = arith.constant 0 : index
    %21 = vector.load %arg0[%c1_18, %c0_19, %c0_20] : memref<2x32x4xf32, #tpu.memory_space<vmem>>, vector<1x32x4xf32>
    %22 = vector.shape_cast %21 : vector<1x32x4xf32> to vector<32x4xf32>
    %c1_21 = arith.constant 1 : index
    %c1_22 = arith.constant 1 : index
    %c0_23 = arith.constant 0 : index
    %23 = vector.load %arg25[%c1_21, %c1_22, %c0_23] : memref<2x34x4xf32, #tpu.memory_space<vmem>>, vector<1x32x4xf32>
    %24 = vector.shape_cast %23 : vector<1x32x4xf32> to vector<32x4xf32>
    %25 = vector.shape_cast %22 : vector<32x4xf32> to vector<1x32x4xf32>
    tpu.vector_store %arg25[%c1_21, %c1_22, %c0_23], %25 {strides = array<i32>} : memref<2x34x4xf32, #tpu.memory_space<vmem>>, vector<1x32x4xf32>,
    %c0_24 = arith.constant 0 : index
    %c0_25 = arith.constant 0 : index
    %c0_26 = arith.constant 0 : index
    %26 = vector.load %arg25[%c0_24, %c0_25, %c0_26] : memref<2x34x4xf32, #tpu.memory_space<vmem>>, vector<1x32x4xf32>
    %27 = vector.shape_cast %26 : vector<1x32x4xf32> to vector<32x4xf32>
    %c1_27 = arith.constant 1 : index
    %c0_28 = arith.constant 0 : index
    %c0_29 = arith.constant 0 : index
    %28 = vector.load %arg25[%c1_27, %c0_28, %c0_29] : memref<2x34x4xf32, #tpu.memory_space<vmem>>, vector<1x32x4xf32>
    %29 = vector.shape_cast %28 : vector<1x32x4xf32> to vector<32x4xf32>
    %30 = tpu.concatenate %27, %29 in 0 : vector<32x4xf32>, vector<32x4xf32> -> vector<64x4xf32>
    %c0_30 = arith.constant 0 : index
    %c1_31 = arith.constant 1 : index
    %c0_32 = arith.constant 0 : index
    %31 = vector.load %arg25[%c0_30, %c1_31, %c0_32] : memref<2x34x4xf32, #tpu.memory_space<vmem>>, vector<1x32x4xf32>
    %32 = vector.shape_cast %31 : vector<1x32x4xf32> to vector<32x4xf32>
    %c1_33 = arith.constant 1 : index
    %c1_34 = arith.constant 1 : index
    %c0_35 = arith.constant 0 : index
    %33 = vector.load %arg25[%c1_33, %c1_34, %c0_35] : memref<2x34x4xf32, #tpu.memory_space<vmem>>, vector<1x32x4xf32>
    %34 = vector.shape_cast %33 : vector<1x32x4xf32> to vector<32x4xf32>
    %35 = tpu.concatenate %32, %34 in 0 : vector<32x4xf32>, vector<32x4xf32> -> vector<64x4xf32>
    %c0_36 = arith.constant 0 : index
    %c2 = arith.constant 2 : index
    %c0_37 = arith.constant 0 : index
    %36 = vector.load %arg25[%c0_36, %c2, %c0_37] : memref<2x34x4xf32, #tpu.memory_space<vmem>>, vector<1x32x4xf32>
    %37 = vector.shape_cast %36 : vector<1x32x4xf32> to vector<32x4xf32>
    %c1_38 = arith.constant 1 : index
    %c2_39 = arith.constant 2 : index
    %c0_40 = arith.constant 0 : index
    %38 = vector.load %arg25[%c1_38, %c2_39, %c0_40] : memref<2x34x4xf32, #tpu.memory_space<vmem>>, vector<1x32x4xf32>
    %39 = vector.shape_cast %38 : vector<1x32x4xf32> to vector<32x4xf32>
    %40 = tpu.concatenate %37, %39 in 0 : vector<32x4xf32>, vector<32x4xf32> -> vector<64x4xf32>
    %41 = tpu.concatenate %30, %35, %40 in 1 : vector<64x4xf32>, vector<64x4xf32>, vector<64x4xf32> -> vector<64x12xf32>
    %c0_41 = arith.constant 0 : index
    %c0_42 = arith.constant 0 : index
    %42 = vector.load %arg1[%c0_41, %c0_42] : memref<12x32xf32, #tpu.memory_space<vmem>>, vector<12x32xf32>
    %cst_43 = arith.constant dense<0.000000e+00> : vector<64x32xf32>
    %43 = tpu.matmul %41, %42, %cst_43 {dimension_numbers = #tpu.dot_dimension_numbers<[1], [0], [0], [1], [0, 0, 1, 1], [], []>} : vector<64x12xf32>, vector<12x32xf32>, vector<64x32xf32> -> vector<64x32xf32>
    %c0_44 = arith.constant 0 : index
    %c0_45 = arith.constant 0 : index
    %44 = vector.load %arg2[%c0_44, %c0_45] : memref<1x32xf32, #tpu.memory_space<vmem>>, vector<1x32xf32>
    %45 = vector.broadcast %44 : vector<1x32xf32> to vector<64x32xf32>
    %46 = arith.mulf %43, %45 : vector<64x32xf32>
    %c0_46 = arith.constant 0 : index
    %c0_47 = arith.constant 0 : index
    %47 = vector.load %arg3[%c0_46, %c0_47] : memref<1x32xf32, #tpu.memory_space<vmem>>, vector<1x32xf32>
    %48 = vector.broadcast %47 : vector<1x32xf32> to vector<64x32xf32>
    %49 = arith.addf %46, %48 : vector<64x32xf32>
    %cst_48 = arith.constant 0.000000e+00 : f32
    %50 = vector.broadcast %cst_48 : f32 to vector<64x32xf32>
    %51 = arith.maximumf %49, %50 : vector<64x32xf32>
    %cst_49 = arith.constant 0.000000e+00 : f32
    %52 = vector.broadcast %cst_49 : f32 to vector<1x32xf32>
    %c0_50 = arith.constant 0 : index
    %c0_51 = arith.constant 0 : index
    %c0_52 = arith.constant 0 : index
    %53 = vector.load %arg26[%c0_50, %c0_51, %c0_52] : memref<2x33x32xf32, #tpu.memory_space<vmem>>, vector<1x1x32xf32>
    %54 = vector.shape_cast %53 : vector<1x1x32xf32> to vector<1x32xf32>
    %55 = vector.shape_cast %52 : vector<1x32xf32> to vector<1x1x32xf32>
    tpu.vector_store %arg26[%c0_50, %c0_51, %c0_52], %55 {strides = array<i32>} : memref<2x33x32xf32, #tpu.memory_space<vmem>>, vector<1x1x32xf32>,
    %56 = vector.extract_strided_slice %51 {offsets = [0, 0], sizes = [32, 32], strides = [1, 1]} : vector<64x32xf32> to vector<32x32xf32>
    %c0_53 = arith.constant 0 : index
    %c1_54 = arith.constant 1 : index
    %c0_55 = arith.constant 0 : index
    %57 = vector.load %arg26[%c0_53, %c1_54, %c0_55] : memref<2x33x32xf32, #tpu.memory_space<vmem>>, vector<1x32x32xf32>
    %58 = vector.shape_cast %57 : vector<1x32x32xf32> to vector<32x32xf32>
    %59 = vector.shape_cast %56 : vector<32x32xf32> to vector<1x32x32xf32>
    tpu.vector_store %arg26[%c0_53, %c1_54, %c0_55], %59 {strides = array<i32>} : memref<2x33x32xf32, #tpu.memory_space<vmem>>, vector<1x32x32xf32>,
    %cst_56 = arith.constant 0.000000e+00 : f32
    %60 = vector.broadcast %cst_56 : f32 to vector<1x32xf32>
    %c1_57 = arith.constant 1 : index
    %c0_58 = arith.constant 0 : index
    %c0_59 = arith.constant 0 : index
    %61 = vector.load %arg26[%c1_57, %c0_58, %c0_59] : memref<2x33x32xf32, #tpu.memory_space<vmem>>, vector<1x1x32xf32>
    %62 = vector.shape_cast %61 : vector<1x1x32xf32> to vector<1x32xf32>
    %63 = vector.shape_cast %60 : vector<1x32xf32> to vector<1x1x32xf32>
    tpu.vector_store %arg26[%c1_57, %c0_58, %c0_59], %63 {strides = array<i32>} : memref<2x33x32xf32, #tpu.memory_space<vmem>>, vector<1x1x32xf32>,
    %64 = vector.extract_strided_slice %51 {offsets = [32, 0], sizes = [32, 32], strides = [1, 1]} : vector<64x32xf32> to vector<32x32xf32>
    %c1_60 = arith.constant 1 : index
    %c1_61 = arith.constant 1 : index
    %c0_62 = arith.constant 0 : index
    %65 = vector.load %arg26[%c1_60, %c1_61, %c0_62] : memref<2x33x32xf32, #tpu.memory_space<vmem>>, vector<1x32x32xf32>
    %66 = vector.shape_cast %65 : vector<1x32x32xf32> to vector<32x32xf32>
    %67 = vector.shape_cast %64 : vector<32x32xf32> to vector<1x32x32xf32>
    tpu.vector_store %arg26[%c1_60, %c1_61, %c0_62], %67 {strides = array<i32>} : memref<2x33x32xf32, #tpu.memory_space<vmem>>, vector<1x32x32xf32>,
    %c0_63 = arith.constant 0 : index
    %c1_64 = arith.constant 1 : index
    %c0_65 = arith.constant 0 : index
    %68 = vector.load %arg26[%c0_63, %c1_64, %c0_65] : memref<2x33x32xf32, #tpu.memory_space<vmem>>, vector<1x32x32xf32>
    %69 = vector.shape_cast %68 : vector<1x32x32xf32> to vector<32x32xf32>
    %c0_66 = arith.constant 0 : index
    %c0_67 = arith.constant 0 : index
    %c0_68 = arith.constant 0 : index
    %70 = vector.load %arg26[%c0_66, %c0_67, %c0_68] : memref<2x33x32xf32, #tpu.memory_space<vmem>>, vector<1x32x32xf32>
    %71 = vector.shape_cast %70 : vector<1x32x32xf32> to vector<32x32xf32>
    %72 = vector.extract_strided_slice %69 {offsets = [0, 0], sizes = [32, 16], strides = [1, 1]} : vector<32x32xf32> to vector<32x16xf32>
    %73 = vector.extract_strided_slice %69 {offsets = [0, 16], sizes = [32, 16], strides = [1, 1]} : vector<32x32xf32> to vector<32x16xf32>
    %74 = arith.maximumf %72, %73 : vector<32x16xf32>
    %75 = vector.extract_strided_slice %71 {offsets = [0, 16], sizes = [32, 16], strides = [1, 1]} : vector<32x32xf32> to vector<32x16xf32>
    %76 = arith.maximumf %74, %75 : vector<32x16xf32>
    %c1_69 = arith.constant 1 : index
    %c1_70 = arith.constant 1 : index
    %c0_71 = arith.constant 0 : index
    %77 = vector.load %arg26[%c1_69, %c1_70, %c0_71] : memref<2x33x32xf32, #tpu.memory_space<vmem>>, vector<1x32x32xf32>
    %78 = vector.shape_cast %77 : vector<1x32x32xf32> to vector<32x32xf32>
    %c1_72 = arith.constant 1 : index
    %c0_73 = arith.constant 0 : index
    %c0_74 = arith.constant 0 : index
    %79 = vector.load %arg26[%c1_72, %c0_73, %c0_74] : memref<2x33x32xf32, #tpu.memory_space<vmem>>, vector<1x32x32xf32>
    %80 = vector.shape_cast %79 : vector<1x32x32xf32> to vector<32x32xf32>
    %81 = vector.extract_strided_slice %78 {offsets = [0, 0], sizes = [32, 16], strides = [1, 1]} : vector<32x32xf32> to vector<32x16xf32>
    %82 = vector.extract_strided_slice %78 {offsets = [0, 16], sizes = [32, 16], strides = [1, 1]} : vector<32x32xf32> to vector<32x16xf32>
    %83 = arith.maximumf %81, %82 : vector<32x16xf32>
    %84 = vector.extract_strided_slice %80 {offsets = [0, 16], sizes = [32, 16], strides = [1, 1]} : vector<32x32xf32> to vector<32x16xf32>
    %85 = arith.maximumf %83, %84 : vector<32x16xf32>
    %86 = tpu.concatenate %76, %85 in 0 : vector<32x16xf32>, vector<32x16xf32> -> vector<64x16xf32>
    %cst_75 = arith.constant 0.000000e+00 : f32
    %87 = vector.broadcast %cst_75 : f32 to vector<1x16xf32>
    %c0_76 = arith.constant 0 : index
    %c0_77 = arith.constant 0 : index
    %c0_78 = arith.constant 0 : index
    %88 = vector.load %arg27[%c0_76, %c0_77, %c0_78] : memref<2x34x16xf32, #tpu.memory_space<vmem>>, vector<1x1x16xf32>
    %89 = vector.shape_cast %88 : vector<1x1x16xf32> to vector<1x16xf32>
    %90 = vector.shape_cast %87 : vector<1x16xf32> to vector<1x1x16xf32>
    tpu.vector_store %arg27[%c0_76, %c0_77, %c0_78], %90 {strides = array<i32>} : memref<2x34x16xf32, #tpu.memory_space<vmem>>, vector<1x1x16xf32>,
    %c0_79 = arith.constant 0 : index
    %c33_80 = arith.constant 33 : index
    %c0_81 = arith.constant 0 : index
    %91 = vector.load %arg27[%c0_79, %c33_80, %c0_81] : memref<2x34x16xf32, #tpu.memory_space<vmem>>, vector<1x1x16xf32>
    %92 = vector.shape_cast %91 : vector<1x1x16xf32> to vector<1x16xf32>
    %93 = vector.shape_cast %87 : vector<1x16xf32> to vector<1x1x16xf32>
    tpu.vector_store %arg27[%c0_79, %c33_80, %c0_81], %93 {strides = array<i32>} : memref<2x34x16xf32, #tpu.memory_space<vmem>>, vector<1x1x16xf32>,
    %94 = vector.extract_strided_slice %86 {offsets = [0, 0], sizes = [32, 16], strides = [1, 1]} : vector<64x16xf32> to vector<32x16xf32>
    %c0_82 = arith.constant 0 : index
    %c1_83 = arith.constant 1 : index
    %c0_84 = arith.constant 0 : index
    %95 = vector.load %arg27[%c0_82, %c1_83, %c0_84] : memref<2x34x16xf32, #tpu.memory_space<vmem>>, vector<1x32x16xf32>
    %96 = vector.shape_cast %95 : vector<1x32x16xf32> to vector<32x16xf32>
    %97 = vector.shape_cast %94 : vector<32x16xf32> to vector<1x32x16xf32>
    tpu.vector_store %arg27[%c0_82, %c1_83, %c0_84], %97 {strides = array<i32>} : memref<2x34x16xf32, #tpu.memory_space<vmem>>, vector<1x32x16xf32>,
    %c1_85 = arith.constant 1 : index
    %c0_86 = arith.constant 0 : index
    %c0_87 = arith.constant 0 : index
    %98 = vector.load %arg27[%c1_85, %c0_86, %c0_87] : memref<2x34x16xf32, #tpu.memory_space<vmem>>, vector<1x1x16xf32>
    %99 = vector.shape_cast %98 : vector<1x1x16xf32> to vector<1x16xf32>
    %100 = vector.shape_cast %87 : vector<1x16xf32> to vector<1x1x16xf32>
    tpu.vector_store %arg27[%c1_85, %c0_86, %c0_87], %100 {strides = array<i32>} : memref<2x34x16xf32, #tpu.memory_space<vmem>>, vector<1x1x16xf32>,
    %c1_88 = arith.constant 1 : index
    %c33_89 = arith.constant 33 : index
    %c0_90 = arith.constant 0 : index
    %101 = vector.load %arg27[%c1_88, %c33_89, %c0_90] : memref<2x34x16xf32, #tpu.memory_space<vmem>>, vector<1x1x16xf32>
    %102 = vector.shape_cast %101 : vector<1x1x16xf32> to vector<1x16xf32>
    %103 = vector.shape_cast %87 : vector<1x16xf32> to vector<1x1x16xf32>
    tpu.vector_store %arg27[%c1_88, %c33_89, %c0_90], %103 {strides = array<i32>} : memref<2x34x16xf32, #tpu.memory_space<vmem>>, vector<1x1x16xf32>,
    %104 = vector.extract_strided_slice %86 {offsets = [32, 0], sizes = [32, 16], strides = [1, 1]} : vector<64x16xf32> to vector<32x16xf32>
    %c1_91 = arith.constant 1 : index
    %c1_92 = arith.constant 1 : index
    %c0_93 = arith.constant 0 : index
    %105 = vector.load %arg27[%c1_91, %c1_92, %c0_93] : memref<2x34x16xf32, #tpu.memory_space<vmem>>, vector<1x32x16xf32>
    %106 = vector.shape_cast %105 : vector<1x32x16xf32> to vector<32x16xf32>
    %107 = vector.shape_cast %104 : vector<32x16xf32> to vector<1x32x16xf32>
    tpu.vector_store %arg27[%c1_91, %c1_92, %c0_93], %107 {strides = array<i32>} : memref<2x34x16xf32, #tpu.memory_space<vmem>>, vector<1x32x16xf32>,
    %c0_94 = arith.constant 0 : index
    %c0_95 = arith.constant 0 : index
    %c0_96 = arith.constant 0 : index
    %108 = vector.load %arg27[%c0_94, %c0_95, %c0_96] : memref<2x34x16xf32, #tpu.memory_space<vmem>>, vector<1x32x16xf32>
    %109 = vector.shape_cast %108 : vector<1x32x16xf32> to vector<32x16xf32>
    %c1_97 = arith.constant 1 : index
    %c0_98 = arith.constant 0 : index
    %c0_99 = arith.constant 0 : index
    %110 = vector.load %arg27[%c1_97, %c0_98, %c0_99] : memref<2x34x16xf32, #tpu.memory_space<vmem>>, vector<1x32x16xf32>
    %111 = vector.shape_cast %110 : vector<1x32x16xf32> to vector<32x16xf32>
    %112 = tpu.concatenate %109, %111 in 0 : vector<32x16xf32>, vector<32x16xf32> -> vector<64x16xf32>
    %c0_100 = arith.constant 0 : index
    %c1_101 = arith.constant 1 : index
    %c0_102 = arith.constant 0 : index
    %113 = vector.load %arg27[%c0_100, %c1_101, %c0_102] : memref<2x34x16xf32, #tpu.memory_space<vmem>>, vector<1x32x16xf32>
    %114 = vector.shape_cast %113 : vector<1x32x16xf32> to vector<32x16xf32>
    %c1_103 = arith.constant 1 : index
    %c1_104 = arith.constant 1 : index
    %c0_105 = arith.constant 0 : index
    %115 = vector.load %arg27[%c1_103, %c1_104, %c0_105] : memref<2x34x16xf32, #tpu.memory_space<vmem>>, vector<1x32x16xf32>
    %116 = vector.shape_cast %115 : vector<1x32x16xf32> to vector<32x16xf32>
    %117 = tpu.concatenate %114, %116 in 0 : vector<32x16xf32>, vector<32x16xf32> -> vector<64x16xf32>
    %c0_106 = arith.constant 0 : index
    %c2_107 = arith.constant 2 : index
    %c0_108 = arith.constant 0 : index
    %118 = vector.load %arg27[%c0_106, %c2_107, %c0_108] : memref<2x34x16xf32, #tpu.memory_space<vmem>>, vector<1x32x16xf32>
    %119 = vector.shape_cast %118 : vector<1x32x16xf32> to vector<32x16xf32>
    %c1_109 = arith.constant 1 : index
    %c2_110 = arith.constant 2 : index
    %c0_111 = arith.constant 0 : index
    %120 = vector.load %arg27[%c1_109, %c2_110, %c0_111] : memref<2x34x16xf32, #tpu.memory_space<vmem>>, vector<1x32x16xf32>
    %121 = vector.shape_cast %120 : vector<1x32x16xf32> to vector<32x16xf32>
    %122 = tpu.concatenate %119, %121 in 0 : vector<32x16xf32>, vector<32x16xf32> -> vector<64x16xf32>
    %123 = tpu.concatenate %112, %117, %122 in 1 : vector<64x16xf32>, vector<64x16xf32>, vector<64x16xf32> -> vector<64x48xf32>
    %124 = arith.truncf %123 : vector<64x48xf32> to vector<64x48xbf16>
    %c0_112 = arith.constant 0 : index
    %c0_113 = arith.constant 0 : index
    %125 = vector.load %arg4[%c0_112, %c0_113] : memref<48x16xbf16, #tpu.memory_space<vmem>>, vector<48x16xbf16>
    %cst_114 = arith.constant dense<0.000000e+00> : vector<64x16xf32>
    %126 = tpu.matmul %124, %125, %cst_114 {dimension_numbers = #tpu.dot_dimension_numbers<[1], [0], [0], [1], [0, 0, 1, 1], [], []>} : vector<64x48xbf16>, vector<48x16xbf16>, vector<64x16xf32> -> vector<64x16xf32>
    %c0_115 = arith.constant 0 : index
    %c0_116 = arith.constant 0 : index
    %127 = vector.load %arg5[%c0_115, %c0_116] : memref<1x16xf32, #tpu.memory_space<vmem>>, vector<1x16xf32>
    %128 = vector.broadcast %127 : vector<1x16xf32> to vector<64x16xf32>
    %129 = arith.mulf %126, %128 : vector<64x16xf32>
    %c0_117 = arith.constant 0 : index
    %c0_118 = arith.constant 0 : index
    %130 = vector.load %arg6[%c0_117, %c0_118] : memref<1x16xf32, #tpu.memory_space<vmem>>, vector<1x16xf32>
    %131 = vector.broadcast %130 : vector<1x16xf32> to vector<64x16xf32>
    %132 = arith.addf %129, %131 : vector<64x16xf32>
    %cst_119 = arith.constant 0.000000e+00 : f32
    %133 = vector.broadcast %cst_119 : f32 to vector<64x16xf32>
    %134 = arith.maximumf %132, %133 : vector<64x16xf32>
    %cst_120 = arith.constant 0.000000e+00 : f32
    %135 = vector.broadcast %cst_120 : f32 to vector<1x16xf32>
    %c0_121 = arith.constant 0 : index
    %c0_122 = arith.constant 0 : index
    %c0_123 = arith.constant 0 : index
    %136 = vector.load %arg27[%c0_121, %c0_122, %c0_123] : memref<2x34x16xf32, #tpu.memory_space<vmem>>, vector<1x1x16xf32>
    %137 = vector.shape_cast %136 : vector<1x1x16xf32> to vector<1x16xf32>
    %138 = vector.shape_cast %135 : vector<1x16xf32> to vector<1x1x16xf32>
    tpu.vector_store %arg27[%c0_121, %c0_122, %c0_123], %138 {strides = array<i32>} : memref<2x34x16xf32, #tpu.memory_space<vmem>>, vector<1x1x16xf32>,
    %c0_124 = arith.constant 0 : index
    %c33_125 = arith.constant 33 : index
    %c0_126 = arith.constant 0 : index
    %139 = vector.load %arg27[%c0_124, %c33_125, %c0_126] : memref<2x34x16xf32, #tpu.memory_space<vmem>>, vector<1x1x16xf32>
    %140 = vector.shape_cast %139 : vector<1x1x16xf32> to vector<1x16xf32>
    %141 = vector.shape_cast %135 : vector<1x16xf32> to vector<1x1x16xf32>
    tpu.vector_store %arg27[%c0_124, %c33_125, %c0_126], %141 {strides = array<i32>} : memref<2x34x16xf32, #tpu.memory_space<vmem>>, vector<1x1x16xf32>,
    %142 = vector.extract_strided_slice %134 {offsets = [0, 0], sizes = [32, 16], strides = [1, 1]} : vector<64x16xf32> to vector<32x16xf32>
    %c0_127 = arith.constant 0 : index
    %c1_128 = arith.constant 1 : index
    %c0_129 = arith.constant 0 : index
    %143 = vector.load %arg27[%c0_127, %c1_128, %c0_129] : memref<2x34x16xf32, #tpu.memory_space<vmem>>, vector<1x32x16xf32>
    %144 = vector.shape_cast %143 : vector<1x32x16xf32> to vector<32x16xf32>
    %145 = vector.shape_cast %142 : vector<32x16xf32> to vector<1x32x16xf32>
    tpu.vector_store %arg27[%c0_127, %c1_128, %c0_129], %145 {strides = array<i32>} : memref<2x34x16xf32, #tpu.memory_space<vmem>>, vector<1x32x16xf32>,
    %c1_130 = arith.constant 1 : index
    %c0_131 = arith.constant 0 : index
    %c0_132 = arith.constant 0 : index
    %146 = vector.load %arg27[%c1_130, %c0_131, %c0_132] : memref<2x34x16xf32, #tpu.memory_space<vmem>>, vector<1x1x16xf32>
    %147 = vector.shape_cast %146 : vector<1x1x16xf32> to vector<1x16xf32>
    %148 = vector.shape_cast %135 : vector<1x16xf32> to vector<1x1x16xf32>
    tpu.vector_store %arg27[%c1_130, %c0_131, %c0_132], %148 {strides = array<i32>} : memref<2x34x16xf32, #tpu.memory_space<vmem>>, vector<1x1x16xf32>,
    %c1_133 = arith.constant 1 : index
    %c33_134 = arith.constant 33 : index
    %c0_135 = arith.constant 0 : index
    %149 = vector.load %arg27[%c1_133, %c33_134, %c0_135] : memref<2x34x16xf32, #tpu.memory_space<vmem>>, vector<1x1x16xf32>
    %150 = vector.shape_cast %149 : vector<1x1x16xf32> to vector<1x16xf32>
    %151 = vector.shape_cast %135 : vector<1x16xf32> to vector<1x1x16xf32>
    tpu.vector_store %arg27[%c1_133, %c33_134, %c0_135], %151 {strides = array<i32>} : memref<2x34x16xf32, #tpu.memory_space<vmem>>, vector<1x1x16xf32>,
    %152 = vector.extract_strided_slice %134 {offsets = [32, 0], sizes = [32, 16], strides = [1, 1]} : vector<64x16xf32> to vector<32x16xf32>
    %c1_136 = arith.constant 1 : index
    %c1_137 = arith.constant 1 : index
    %c0_138 = arith.constant 0 : index
    %153 = vector.load %arg27[%c1_136, %c1_137, %c0_138] : memref<2x34x16xf32, #tpu.memory_space<vmem>>, vector<1x32x16xf32>
    %154 = vector.shape_cast %153 : vector<1x32x16xf32> to vector<32x16xf32>
    %155 = vector.shape_cast %152 : vector<32x16xf32> to vector<1x32x16xf32>
    tpu.vector_store %arg27[%c1_136, %c1_137, %c0_138], %155 {strides = array<i32>} : memref<2x34x16xf32, #tpu.memory_space<vmem>>, vector<1x32x16xf32>,
    %c0_139 = arith.constant 0 : index
    %c0_140 = arith.constant 0 : index
    %c0_141 = arith.constant 0 : index
    %156 = vector.load %arg27[%c0_139, %c0_140, %c0_141] : memref<2x34x16xf32, #tpu.memory_space<vmem>>, vector<1x32x16xf32>
    %157 = vector.shape_cast %156 : vector<1x32x16xf32> to vector<32x16xf32>
    %c1_142 = arith.constant 1 : index
    %c0_143 = arith.constant 0 : index
    %c0_144 = arith.constant 0 : index
    %158 = vector.load %arg27[%c1_142, %c0_143, %c0_144] : memref<2x34x16xf32, #tpu.memory_space<vmem>>, vector<1x32x16xf32>
    %159 = vector.shape_cast %158 : vector<1x32x16xf32> to vector<32x16xf32>
    %160 = tpu.concatenate %157, %159 in 0 : vector<32x16xf32>, vector<32x16xf32> -> vector<64x16xf32>
    %c0_145 = arith.constant 0 : index
    %c1_146 = arith.constant 1 : index
    %c0_147 = arith.constant 0 : index
    %161 = vector.load %arg27[%c0_145, %c1_146, %c0_147] : memref<2x34x16xf32, #tpu.memory_space<vmem>>, vector<1x32x16xf32>
    %162 = vector.shape_cast %161 : vector<1x32x16xf32> to vector<32x16xf32>
    %c1_148 = arith.constant 1 : index
    %c1_149 = arith.constant 1 : index
    %c0_150 = arith.constant 0 : index
    %163 = vector.load %arg27[%c1_148, %c1_149, %c0_150] : memref<2x34x16xf32, #tpu.memory_space<vmem>>, vector<1x32x16xf32>
    %164 = vector.shape_cast %163 : vector<1x32x16xf32> to vector<32x16xf32>
    %165 = tpu.concatenate %162, %164 in 0 : vector<32x16xf32>, vector<32x16xf32> -> vector<64x16xf32>
    %c0_151 = arith.constant 0 : index
    %c2_152 = arith.constant 2 : index
    %c0_153 = arith.constant 0 : index
    %166 = vector.load %arg27[%c0_151, %c2_152, %c0_153] : memref<2x34x16xf32, #tpu.memory_space<vmem>>, vector<1x32x16xf32>
    %167 = vector.shape_cast %166 : vector<1x32x16xf32> to vector<32x16xf32>
    %c1_154 = arith.constant 1 : index
    %c2_155 = arith.constant 2 : index
    %c0_156 = arith.constant 0 : index
    %168 = vector.load %arg27[%c1_154, %c2_155, %c0_156] : memref<2x34x16xf32, #tpu.memory_space<vmem>>, vector<1x32x16xf32>
    %169 = vector.shape_cast %168 : vector<1x32x16xf32> to vector<32x16xf32>
    %170 = tpu.concatenate %167, %169 in 0 : vector<32x16xf32>, vector<32x16xf32> -> vector<64x16xf32>
    %171 = tpu.concatenate %160, %165, %170 in 1 : vector<64x16xf32>, vector<64x16xf32>, vector<64x16xf32> -> vector<64x48xf32>
    %172 = arith.truncf %171 : vector<64x48xf32> to vector<64x48xbf16>
    %c0_157 = arith.constant 0 : index
    %c0_158 = arith.constant 0 : index
    %173 = vector.load %arg7[%c0_157, %c0_158] : memref<48x16xbf16, #tpu.memory_space<vmem>>, vector<48x16xbf16>
    %cst_159 = arith.constant dense<0.000000e+00> : vector<64x16xf32>
    %174 = tpu.matmul %172, %173, %cst_159 {dimension_numbers = #tpu.dot_dimension_numbers<[1], [0], [0], [1], [0, 0, 1, 1], [], []>} : vector<64x48xbf16>, vector<48x16xbf16>, vector<64x16xf32> -> vector<64x16xf32>
    %c0_160 = arith.constant 0 : index
    %c0_161 = arith.constant 0 : index
    %175 = vector.load %arg8[%c0_160, %c0_161] : memref<1x16xf32, #tpu.memory_space<vmem>>, vector<1x16xf32>
    %176 = vector.broadcast %175 : vector<1x16xf32> to vector<64x16xf32>
    %177 = arith.mulf %174, %176 : vector<64x16xf32>
    %c0_162 = arith.constant 0 : index
    %c0_163 = arith.constant 0 : index
    %178 = vector.load %arg9[%c0_162, %c0_163] : memref<1x16xf32, #tpu.memory_space<vmem>>, vector<1x16xf32>
    %179 = vector.broadcast %178 : vector<1x16xf32> to vector<64x16xf32>
    %180 = arith.addf %177, %179 : vector<64x16xf32>
    %181 = arith.addf %180, %86 : vector<64x16xf32>
    %cst_164 = arith.constant 0.000000e+00 : f32
    %182 = vector.broadcast %cst_164 : f32 to vector<64x16xf32>
    %183 = arith.maximumf %181, %182 : vector<64x16xf32>
    %cst_165 = arith.constant 0.000000e+00 : f32
    %184 = vector.broadcast %cst_165 : f32 to vector<1x16xf32>
    %c0_166 = arith.constant 0 : index
    %c0_167 = arith.constant 0 : index
    %c0_168 = arith.constant 0 : index
    %185 = vector.load %arg27[%c0_166, %c0_167, %c0_168] : memref<2x34x16xf32, #tpu.memory_space<vmem>>, vector<1x1x16xf32>
    %186 = vector.shape_cast %185 : vector<1x1x16xf32> to vector<1x16xf32>
    %187 = vector.shape_cast %184 : vector<1x16xf32> to vector<1x1x16xf32>
    tpu.vector_store %arg27[%c0_166, %c0_167, %c0_168], %187 {strides = array<i32>} : memref<2x34x16xf32, #tpu.memory_space<vmem>>, vector<1x1x16xf32>,
    %c0_169 = arith.constant 0 : index
    %c33_170 = arith.constant 33 : index
    %c0_171 = arith.constant 0 : index
    %188 = vector.load %arg27[%c0_169, %c33_170, %c0_171] : memref<2x34x16xf32, #tpu.memory_space<vmem>>, vector<1x1x16xf32>
    %189 = vector.shape_cast %188 : vector<1x1x16xf32> to vector<1x16xf32>
    %190 = vector.shape_cast %184 : vector<1x16xf32> to vector<1x1x16xf32>
    tpu.vector_store %arg27[%c0_169, %c33_170, %c0_171], %190 {strides = array<i32>} : memref<2x34x16xf32, #tpu.memory_space<vmem>>, vector<1x1x16xf32>,
    %191 = vector.extract_strided_slice %183 {offsets = [0, 0], sizes = [32, 16], strides = [1, 1]} : vector<64x16xf32> to vector<32x16xf32>
    %c0_172 = arith.constant 0 : index
    %c1_173 = arith.constant 1 : index
    %c0_174 = arith.constant 0 : index
    %192 = vector.load %arg27[%c0_172, %c1_173, %c0_174] : memref<2x34x16xf32, #tpu.memory_space<vmem>>, vector<1x32x16xf32>
    %193 = vector.shape_cast %192 : vector<1x32x16xf32> to vector<32x16xf32>
    %194 = vector.shape_cast %191 : vector<32x16xf32> to vector<1x32x16xf32>
    tpu.vector_store %arg27[%c0_172, %c1_173, %c0_174], %194 {strides = array<i32>} : memref<2x34x16xf32, #tpu.memory_space<vmem>>, vector<1x32x16xf32>,
    %c1_175 = arith.constant 1 : index
    %c0_176 = arith.constant 0 : index
    %c0_177 = arith.constant 0 : index
    %195 = vector.load %arg27[%c1_175, %c0_176, %c0_177] : memref<2x34x16xf32, #tpu.memory_space<vmem>>, vector<1x1x16xf32>
    %196 = vector.shape_cast %195 : vector<1x1x16xf32> to vector<1x16xf32>
    %197 = vector.shape_cast %184 : vector<1x16xf32> to vector<1x1x16xf32>
    tpu.vector_store %arg27[%c1_175, %c0_176, %c0_177], %197 {strides = array<i32>} : memref<2x34x16xf32, #tpu.memory_space<vmem>>, vector<1x1x16xf32>,
    %c1_178 = arith.constant 1 : index
    %c33_179 = arith.constant 33 : index
    %c0_180 = arith.constant 0 : index
    %198 = vector.load %arg27[%c1_178, %c33_179, %c0_180] : memref<2x34x16xf32, #tpu.memory_space<vmem>>, vector<1x1x16xf32>
    %199 = vector.shape_cast %198 : vector<1x1x16xf32> to vector<1x16xf32>
    %200 = vector.shape_cast %184 : vector<1x16xf32> to vector<1x1x16xf32>
    tpu.vector_store %arg27[%c1_178, %c33_179, %c0_180], %200 {strides = array<i32>} : memref<2x34x16xf32, #tpu.memory_space<vmem>>, vector<1x1x16xf32>,
    %201 = vector.extract_strided_slice %183 {offsets = [32, 0], sizes = [32, 16], strides = [1, 1]} : vector<64x16xf32> to vector<32x16xf32>
    %c1_181 = arith.constant 1 : index
    %c1_182 = arith.constant 1 : index
    %c0_183 = arith.constant 0 : index
    %202 = vector.load %arg27[%c1_181, %c1_182, %c0_183] : memref<2x34x16xf32, #tpu.memory_space<vmem>>, vector<1x32x16xf32>
    %203 = vector.shape_cast %202 : vector<1x32x16xf32> to vector<32x16xf32>
    %204 = vector.shape_cast %201 : vector<32x16xf32> to vector<1x32x16xf32>
    tpu.vector_store %arg27[%c1_181, %c1_182, %c0_183], %204 {strides = array<i32>} : memref<2x34x16xf32, #tpu.memory_space<vmem>>, vector<1x32x16xf32>,
    %c0_184 = arith.constant 0 : index
    %c0_185 = arith.constant 0 : index
    %c0_186 = arith.constant 0 : index
    %205 = vector.load %arg27[%c0_184, %c0_185, %c0_186] : memref<2x34x16xf32, #tpu.memory_space<vmem>>, vector<1x32x16xf32>
    %206 = vector.shape_cast %205 : vector<1x32x16xf32> to vector<32x16xf32>
    %c1_187 = arith.constant 1 : index
    %c0_188 = arith.constant 0 : index
    %c0_189 = arith.constant 0 : index
    %207 = vector.load %arg27[%c1_187, %c0_188, %c0_189] : memref<2x34x16xf32, #tpu.memory_space<vmem>>, vector<1x32x16xf32>
    %208 = vector.shape_cast %207 : vector<1x32x16xf32> to vector<32x16xf32>
    %209 = tpu.concatenate %206, %208 in 0 : vector<32x16xf32>, vector<32x16xf32> -> vector<64x16xf32>
    %c0_190 = arith.constant 0 : index
    %c1_191 = arith.constant 1 : index
    %c0_192 = arith.constant 0 : index
    %210 = vector.load %arg27[%c0_190, %c1_191, %c0_192] : memref<2x34x16xf32, #tpu.memory_space<vmem>>, vector<1x32x16xf32>
    %211 = vector.shape_cast %210 : vector<1x32x16xf32> to vector<32x16xf32>
    %c1_193 = arith.constant 1 : index
    %c1_194 = arith.constant 1 : index
    %c0_195 = arith.constant 0 : index
    %212 = vector.load %arg27[%c1_193, %c1_194, %c0_195] : memref<2x34x16xf32, #tpu.memory_space<vmem>>, vector<1x32x16xf32>
    %213 = vector.shape_cast %212 : vector<1x32x16xf32> to vector<32x16xf32>
    %214 = tpu.concatenate %211, %213 in 0 : vector<32x16xf32>, vector<32x16xf32> -> vector<64x16xf32>
    %c0_196 = arith.constant 0 : index
    %c2_197 = arith.constant 2 : index
    %c0_198 = arith.constant 0 : index
    %215 = vector.load %arg27[%c0_196, %c2_197, %c0_198] : memref<2x34x16xf32, #tpu.memory_space<vmem>>, vector<1x32x16xf32>
    %216 = vector.shape_cast %215 : vector<1x32x16xf32> to vector<32x16xf32>
    %c1_199 = arith.constant 1 : index
    %c2_200 = arith.constant 2 : index
    %c0_201 = arith.constant 0 : index
    %217 = vector.load %arg27[%c1_199, %c2_200, %c0_201] : memref<2x34x16xf32, #tpu.memory_space<vmem>>, vector<1x32x16xf32>
    %218 = vector.shape_cast %217 : vector<1x32x16xf32> to vector<32x16xf32>
    %219 = tpu.concatenate %216, %218 in 0 : vector<32x16xf32>, vector<32x16xf32> -> vector<64x16xf32>
    %220 = tpu.concatenate %209, %214, %219 in 1 : vector<64x16xf32>, vector<64x16xf32>, vector<64x16xf32> -> vector<64x48xf32>
    %221 = arith.truncf %220 : vector<64x48xf32> to vector<64x48xbf16>
    %c0_202 = arith.constant 0 : index
    %c0_203 = arith.constant 0 : index
    %222 = vector.load %arg10[%c0_202, %c0_203] : memref<48x64xbf16, #tpu.memory_space<vmem>>, vector<48x64xbf16>
    %cst_204 = arith.constant dense<0.000000e+00> : vector<64x64xf32>
    %223 = tpu.matmul %221, %222, %cst_204 {dimension_numbers = #tpu.dot_dimension_numbers<[1], [0], [0], [1], [0, 0, 1, 1], [], []>} : vector<64x48xbf16>, vector<48x64xbf16>, vector<64x64xf32> -> vector<64x64xf32>
    %c0_205 = arith.constant 0 : index
    %c0_206 = arith.constant 0 : index
    %224 = vector.load %arg11[%c0_205, %c0_206] : memref<1x64xf32, #tpu.memory_space<vmem>>, vector<1x64xf32>
    %225 = vector.broadcast %224 : vector<1x64xf32> to vector<64x64xf32>
    %226 = arith.mulf %223, %225 : vector<64x64xf32>
    %c0_207 = arith.constant 0 : index
    %c0_208 = arith.constant 0 : index
    %227 = vector.load %arg12[%c0_207, %c0_208] : memref<1x64xf32, #tpu.memory_space<vmem>>, vector<1x64xf32>
    %228 = vector.broadcast %227 : vector<1x64xf32> to vector<64x64xf32>
    %229 = arith.addf %226, %228 : vector<64x64xf32>
    %230 = vector.extract_strided_slice %229 {offsets = [0, 0], sizes = [64, 32], strides = [1, 1]} : vector<64x64xf32> to vector<64x32xf32>
    %cst_209 = arith.constant 0.000000e+00 : f32
    %231 = vector.broadcast %cst_209 : f32 to vector<64x32xf32>
    %232 = arith.maximumf %230, %231 : vector<64x32xf32>
    %233 = vector.extract_strided_slice %229 {offsets = [0, 32], sizes = [64, 32], strides = [1, 1]} : vector<64x64xf32> to vector<64x32xf32>
    %cst_210 = arith.constant 0.000000e+00 : f32
    %234 = vector.broadcast %cst_210 : f32 to vector<1x32xf32>
    %c0_211 = arith.constant 0 : index
    %c0_212 = arith.constant 0 : index
    %c0_213 = arith.constant 0 : index
    %235 = vector.load %arg28[%c0_211, %c0_212, %c0_213] : memref<2x34x32xf32, #tpu.memory_space<vmem>>, vector<1x1x32xf32>
    %236 = vector.shape_cast %235 : vector<1x1x32xf32> to vector<1x32xf32>
    %237 = vector.shape_cast %234 : vector<1x32xf32> to vector<1x1x32xf32>
    tpu.vector_store %arg28[%c0_211, %c0_212, %c0_213], %237 {strides = array<i32>} : memref<2x34x32xf32, #tpu.memory_space<vmem>>, vector<1x1x32xf32>,
    %c0_214 = arith.constant 0 : index
    %c33_215 = arith.constant 33 : index
    %c0_216 = arith.constant 0 : index
    %238 = vector.load %arg28[%c0_214, %c33_215, %c0_216] : memref<2x34x32xf32, #tpu.memory_space<vmem>>, vector<1x1x32xf32>
    %239 = vector.shape_cast %238 : vector<1x1x32xf32> to vector<1x32xf32>
    %240 = vector.shape_cast %234 : vector<1x32xf32> to vector<1x1x32xf32>
    tpu.vector_store %arg28[%c0_214, %c33_215, %c0_216], %240 {strides = array<i32>} : memref<2x34x32xf32, #tpu.memory_space<vmem>>, vector<1x1x32xf32>,
    %241 = vector.extract_strided_slice %232 {offsets = [0, 0], sizes = [32, 32], strides = [1, 1]} : vector<64x32xf32> to vector<32x32xf32>
    %c0_217 = arith.constant 0 : index
    %c1_218 = arith.constant 1 : index
    %c0_219 = arith.constant 0 : index
    %242 = vector.load %arg28[%c0_217, %c1_218, %c0_219] : memref<2x34x32xf32, #tpu.memory_space<vmem>>, vector<1x32x32xf32>
    %243 = vector.shape_cast %242 : vector<1x32x32xf32> to vector<32x32xf32>
    %244 = vector.shape_cast %241 : vector<32x32xf32> to vector<1x32x32xf32>
    tpu.vector_store %arg28[%c0_217, %c1_218, %c0_219], %244 {strides = array<i32>} : memref<2x34x32xf32, #tpu.memory_space<vmem>>, vector<1x32x32xf32>,
    %c1_220 = arith.constant 1 : index
    %c0_221 = arith.constant 0 : index
    %c0_222 = arith.constant 0 : index
    %245 = vector.load %arg28[%c1_220, %c0_221, %c0_222] : memref<2x34x32xf32, #tpu.memory_space<vmem>>, vector<1x1x32xf32>
    %246 = vector.shape_cast %245 : vector<1x1x32xf32> to vector<1x32xf32>
    %247 = vector.shape_cast %234 : vector<1x32xf32> to vector<1x1x32xf32>
    tpu.vector_store %arg28[%c1_220, %c0_221, %c0_222], %247 {strides = array<i32>} : memref<2x34x32xf32, #tpu.memory_space<vmem>>, vector<1x1x32xf32>,
    %c1_223 = arith.constant 1 : index
    %c33_224 = arith.constant 33 : index
    %c0_225 = arith.constant 0 : index
    %248 = vector.load %arg28[%c1_223, %c33_224, %c0_225] : memref<2x34x32xf32, #tpu.memory_space<vmem>>, vector<1x1x32xf32>
    %249 = vector.shape_cast %248 : vector<1x1x32xf32> to vector<1x32xf32>
    %250 = vector.shape_cast %234 : vector<1x32xf32> to vector<1x1x32xf32>
    tpu.vector_store %arg28[%c1_223, %c33_224, %c0_225], %250 {strides = array<i32>} : memref<2x34x32xf32, #tpu.memory_space<vmem>>, vector<1x1x32xf32>,
    %251 = vector.extract_strided_slice %232 {offsets = [32, 0], sizes = [32, 32], strides = [1, 1]} : vector<64x32xf32> to vector<32x32xf32>
    %c1_226 = arith.constant 1 : index
    %c1_227 = arith.constant 1 : index
    %c0_228 = arith.constant 0 : index
    %252 = vector.load %arg28[%c1_226, %c1_227, %c0_228] : memref<2x34x32xf32, #tpu.memory_space<vmem>>, vector<1x32x32xf32>
    %253 = vector.shape_cast %252 : vector<1x32x32xf32> to vector<32x32xf32>
    %254 = vector.shape_cast %251 : vector<32x32xf32> to vector<1x32x32xf32>
    tpu.vector_store %arg28[%c1_226, %c1_227, %c0_228], %254 {strides = array<i32>} : memref<2x34x32xf32, #tpu.memory_space<vmem>>, vector<1x32x32xf32>,
    %c0_229 = arith.constant 0 : index
    %c0_230 = arith.constant 0 : index
    %c0_231 = arith.constant 0 : index
    %255 = vector.load %arg28[%c0_229, %c0_230, %c0_231] : memref<2x34x32xf32, #tpu.memory_space<vmem>>, vector<1x32x32xf32>
    %256 = vector.shape_cast %255 : vector<1x32x32xf32> to vector<32x32xf32>
    %c1_232 = arith.constant 1 : index
    %c0_233 = arith.constant 0 : index
    %c0_234 = arith.constant 0 : index
    %257 = vector.load %arg28[%c1_232, %c0_233, %c0_234] : memref<2x34x32xf32, #tpu.memory_space<vmem>>, vector<1x32x32xf32>
    %258 = vector.shape_cast %257 : vector<1x32x32xf32> to vector<32x32xf32>
    %259 = tpu.concatenate %256, %258 in 0 : vector<32x32xf32>, vector<32x32xf32> -> vector<64x32xf32>
    %c0_235 = arith.constant 0 : index
    %c1_236 = arith.constant 1 : index
    %c0_237 = arith.constant 0 : index
    %260 = vector.load %arg28[%c0_235, %c1_236, %c0_237] : memref<2x34x32xf32, #tpu.memory_space<vmem>>, vector<1x32x32xf32>
    %261 = vector.shape_cast %260 : vector<1x32x32xf32> to vector<32x32xf32>
    %c1_238 = arith.constant 1 : index
    %c1_239 = arith.constant 1 : index
    %c0_240 = arith.constant 0 : index
    %262 = vector.load %arg28[%c1_238, %c1_239, %c0_240] : memref<2x34x32xf32, #tpu.memory_space<vmem>>, vector<1x32x32xf32>
    %263 = vector.shape_cast %262 : vector<1x32x32xf32> to vector<32x32xf32>
    %264 = tpu.concatenate %261, %263 in 0 : vector<32x32xf32>, vector<32x32xf32> -> vector<64x32xf32>
    %c0_241 = arith.constant 0 : index
    %c2_242 = arith.constant 2 : index
    %c0_243 = arith.constant 0 : index
    %265 = vector.load %arg28[%c0_241, %c2_242, %c0_243] : memref<2x34x32xf32, #tpu.memory_space<vmem>>, vector<1x32x32xf32>
    %266 = vector.shape_cast %265 : vector<1x32x32xf32> to vector<32x32xf32>
    %c1_244 = arith.constant 1 : index
    %c2_245 = arith.constant 2 : index
    %c0_246 = arith.constant 0 : index
    %267 = vector.load %arg28[%c1_244, %c2_245, %c0_246] : memref<2x34x32xf32, #tpu.memory_space<vmem>>, vector<1x32x32xf32>
    %268 = vector.shape_cast %267 : vector<1x32x32xf32> to vector<32x32xf32>
    %269 = tpu.concatenate %266, %268 in 0 : vector<32x32xf32>, vector<32x32xf32> -> vector<64x32xf32>
    %270 = tpu.concatenate %259, %264, %269 in 1 : vector<64x32xf32>, vector<64x32xf32>, vector<64x32xf32> -> vector<64x96xf32>
    %271 = arith.truncf %270 : vector<64x96xf32> to vector<64x96xbf16>
    %c0_247 = arith.constant 0 : index
    %c0_248 = arith.constant 0 : index
    %272 = vector.load %arg13[%c0_247, %c0_248] : memref<96x32xbf16, #tpu.memory_space<vmem>>, vector<96x32xbf16>
    %cst_249 = arith.constant dense<0.000000e+00> : vector<64x32xf32>
    %273 = tpu.matmul %271, %272, %cst_249 {dimension_numbers = #tpu.dot_dimension_numbers<[1], [0], [0], [1], [0, 0, 1, 1], [], []>} : vector<64x96xbf16>, vector<96x32xbf16>, vector<64x32xf32> -> vector<64x32xf32>
    %c0_250 = arith.constant 0 : index
    %c0_251 = arith.constant 0 : index
    %274 = vector.load %arg14[%c0_250, %c0_251] : memref<1x32xf32, #tpu.memory_space<vmem>>, vector<1x32xf32>
    %275 = vector.broadcast %274 : vector<1x32xf32> to vector<64x32xf32>
    %276 = arith.mulf %273, %275 : vector<64x32xf32>
    %c0_252 = arith.constant 0 : index
    %c0_253 = arith.constant 0 : index
    %277 = vector.load %arg15[%c0_252, %c0_253] : memref<1x32xf32, #tpu.memory_space<vmem>>, vector<1x32xf32>
    %278 = vector.broadcast %277 : vector<1x32xf32> to vector<64x32xf32>
    %279 = arith.addf %276, %278 : vector<64x32xf32>
    %280 = arith.addf %279, %233 : vector<64x32xf32>
    %cst_254 = arith.constant 0.000000e+00 : f32
    %281 = vector.broadcast %cst_254 : f32 to vector<64x32xf32>
    %282 = arith.maximumf %280, %281 : vector<64x32xf32>
    %cst_255 = arith.constant 0.000000e+00 : f32
    %283 = vector.broadcast %cst_255 : f32 to vector<1x32xf32>
    %c0_256 = arith.constant 0 : index
    %c0_257 = arith.constant 0 : index
    %c0_258 = arith.constant 0 : index
    %284 = vector.load %arg28[%c0_256, %c0_257, %c0_258] : memref<2x34x32xf32, #tpu.memory_space<vmem>>, vector<1x1x32xf32>
    %285 = vector.shape_cast %284 : vector<1x1x32xf32> to vector<1x32xf32>
    %286 = vector.shape_cast %283 : vector<1x32xf32> to vector<1x1x32xf32>
    tpu.vector_store %arg28[%c0_256, %c0_257, %c0_258], %286 {strides = array<i32>} : memref<2x34x32xf32, #tpu.memory_space<vmem>>, vector<1x1x32xf32>,
    %c0_259 = arith.constant 0 : index
    %c33_260 = arith.constant 33 : index
    %c0_261 = arith.constant 0 : index
    %287 = vector.load %arg28[%c0_259, %c33_260, %c0_261] : memref<2x34x32xf32, #tpu.memory_space<vmem>>, vector<1x1x32xf32>
    %288 = vector.shape_cast %287 : vector<1x1x32xf32> to vector<1x32xf32>
    %289 = vector.shape_cast %283 : vector<1x32xf32> to vector<1x1x32xf32>
    tpu.vector_store %arg28[%c0_259, %c33_260, %c0_261], %289 {strides = array<i32>} : memref<2x34x32xf32, #tpu.memory_space<vmem>>, vector<1x1x32xf32>,
    %290 = vector.extract_strided_slice %282 {offsets = [0, 0], sizes = [32, 32], strides = [1, 1]} : vector<64x32xf32> to vector<32x32xf32>
    %c0_262 = arith.constant 0 : index
    %c1_263 = arith.constant 1 : index
    %c0_264 = arith.constant 0 : index
    %291 = vector.load %arg28[%c0_262, %c1_263, %c0_264] : memref<2x34x32xf32, #tpu.memory_space<vmem>>, vector<1x32x32xf32>
    %292 = vector.shape_cast %291 : vector<1x32x32xf32> to vector<32x32xf32>
    %293 = vector.shape_cast %290 : vector<32x32xf32> to vector<1x32x32xf32>
    tpu.vector_store %arg28[%c0_262, %c1_263, %c0_264], %293 {strides = array<i32>} : memref<2x34x32xf32, #tpu.memory_space<vmem>>, vector<1x32x32xf32>,
    %c1_265 = arith.constant 1 : index
    %c0_266 = arith.constant 0 : index
    %c0_267 = arith.constant 0 : index
    %294 = vector.load %arg28[%c1_265, %c0_266, %c0_267] : memref<2x34x32xf32, #tpu.memory_space<vmem>>, vector<1x1x32xf32>
    %295 = vector.shape_cast %294 : vector<1x1x32xf32> to vector<1x32xf32>
    %296 = vector.shape_cast %283 : vector<1x32xf32> to vector<1x1x32xf32>
    tpu.vector_store %arg28[%c1_265, %c0_266, %c0_267], %296 {strides = array<i32>} : memref<2x34x32xf32, #tpu.memory_space<vmem>>, vector<1x1x32xf32>,
    %c1_268 = arith.constant 1 : index
    %c33_269 = arith.constant 33 : index
    %c0_270 = arith.constant 0 : index
    %297 = vector.load %arg28[%c1_268, %c33_269, %c0_270] : memref<2x34x32xf32, #tpu.memory_space<vmem>>, vector<1x1x32xf32>
    %298 = vector.shape_cast %297 : vector<1x1x32xf32> to vector<1x32xf32>
    %299 = vector.shape_cast %283 : vector<1x32xf32> to vector<1x1x32xf32>
    tpu.vector_store %arg28[%c1_268, %c33_269, %c0_270], %299 {strides = array<i32>} : memref<2x34x32xf32, #tpu.memory_space<vmem>>, vector<1x1x32xf32>,
    %300 = vector.extract_strided_slice %282 {offsets = [32, 0], sizes = [32, 32], strides = [1, 1]} : vector<64x32xf32> to vector<32x32xf32>
    %c1_271 = arith.constant 1 : index
    %c1_272 = arith.constant 1 : index
    %c0_273 = arith.constant 0 : index
    %301 = vector.load %arg28[%c1_271, %c1_272, %c0_273] : memref<2x34x32xf32, #tpu.memory_space<vmem>>, vector<1x32x32xf32>
    %302 = vector.shape_cast %301 : vector<1x32x32xf32> to vector<32x32xf32>
    %303 = vector.shape_cast %300 : vector<32x32xf32> to vector<1x32x32xf32>
    tpu.vector_store %arg28[%c1_271, %c1_272, %c0_273], %303 {strides = array<i32>} : memref<2x34x32xf32, #tpu.memory_space<vmem>>, vector<1x32x32xf32>,
    %c0_274 = arith.constant 0 : index
    %c0_275 = arith.constant 0 : index
    %c0_276 = arith.constant 0 : index
    %304 = vector.load %arg28[%c0_274, %c0_275, %c0_276] : memref<2x34x32xf32, #tpu.memory_space<vmem>>, vector<1x32x32xf32>
    %305 = vector.shape_cast %304 : vector<1x32x32xf32> to vector<32x32xf32>
    %c1_277 = arith.constant 1 : index
    %c0_278 = arith.constant 0 : index
    %c0_279 = arith.constant 0 : index
    %306 = vector.load %arg28[%c1_277, %c0_278, %c0_279] : memref<2x34x32xf32, #tpu.memory_space<vmem>>, vector<1x32x32xf32>
    %307 = vector.shape_cast %306 : vector<1x32x32xf32> to vector<32x32xf32>
    %308 = tpu.concatenate %305, %307 in 0 : vector<32x32xf32>, vector<32x32xf32> -> vector<64x32xf32>
    %c0_280 = arith.constant 0 : index
    %c1_281 = arith.constant 1 : index
    %c0_282 = arith.constant 0 : index
    %309 = vector.load %arg28[%c0_280, %c1_281, %c0_282] : memref<2x34x32xf32, #tpu.memory_space<vmem>>, vector<1x32x32xf32>
    %310 = vector.shape_cast %309 : vector<1x32x32xf32> to vector<32x32xf32>
    %c1_283 = arith.constant 1 : index
    %c1_284 = arith.constant 1 : index
    %c0_285 = arith.constant 0 : index
    %311 = vector.load %arg28[%c1_283, %c1_284, %c0_285] : memref<2x34x32xf32, #tpu.memory_space<vmem>>, vector<1x32x32xf32>
    %312 = vector.shape_cast %311 : vector<1x32x32xf32> to vector<32x32xf32>
    %313 = tpu.concatenate %310, %312 in 0 : vector<32x32xf32>, vector<32x32xf32> -> vector<64x32xf32>
    %c0_286 = arith.constant 0 : index
    %c2_287 = arith.constant 2 : index
    %c0_288 = arith.constant 0 : index
    %314 = vector.load %arg28[%c0_286, %c2_287, %c0_288] : memref<2x34x32xf32, #tpu.memory_space<vmem>>, vector<1x32x32xf32>
    %315 = vector.shape_cast %314 : vector<1x32x32xf32> to vector<32x32xf32>
    %c1_289 = arith.constant 1 : index
    %c2_290 = arith.constant 2 : index
    %c0_291 = arith.constant 0 : index
    %316 = vector.load %arg28[%c1_289, %c2_290, %c0_291] : memref<2x34x32xf32, #tpu.memory_space<vmem>>, vector<1x32x32xf32>
    %317 = vector.shape_cast %316 : vector<1x32x32xf32> to vector<32x32xf32>
    %318 = tpu.concatenate %315, %317 in 0 : vector<32x32xf32>, vector<32x32xf32> -> vector<64x32xf32>
    %319 = tpu.concatenate %308, %313, %318 in 1 : vector<64x32xf32>, vector<64x32xf32>, vector<64x32xf32> -> vector<64x96xf32>
    %320 = arith.truncf %319 : vector<64x96xf32> to vector<64x96xbf16>
    %c0_292 = arith.constant 0 : index
    %c0_293 = arith.constant 0 : index
    %321 = vector.load %arg16[%c0_292, %c0_293] : memref<96x128xbf16, #tpu.memory_space<vmem>>, vector<96x128xbf16>
    %cst_294 = arith.constant dense<0.000000e+00> : vector<64x128xf32>
    %322 = tpu.matmul %320, %321, %cst_294 {dimension_numbers = #tpu.dot_dimension_numbers<[1], [0], [0], [1], [0, 0, 1, 1], [], []>} : vector<64x96xbf16>, vector<96x128xbf16>, vector<64x128xf32> -> vector<64x128xf32>
    %c0_295 = arith.constant 0 : index
    %c0_296 = arith.constant 0 : index
    %323 = vector.load %arg17[%c0_295, %c0_296] : memref<1x128xf32, #tpu.memory_space<vmem>>, vector<1x128xf32>
    %324 = vector.broadcast %323 : vector<1x128xf32> to vector<64x128xf32>
    %325 = arith.mulf %322, %324 : vector<64x128xf32>
    %c0_297 = arith.constant 0 : index
    %c0_298 = arith.constant 0 : index
    %326 = vector.load %arg18[%c0_297, %c0_298] : memref<1x128xf32, #tpu.memory_space<vmem>>, vector<1x128xf32>
    %327 = vector.broadcast %326 : vector<1x128xf32> to vector<64x128xf32>
    %328 = arith.addf %325, %327 : vector<64x128xf32>
    %329 = vector.extract_strided_slice %328 {offsets = [0, 0], sizes = [64, 64], strides = [1, 1]} : vector<64x128xf32> to vector<64x64xf32>
    %cst_299 = arith.constant 0.000000e+00 : f32
    %330 = vector.broadcast %cst_299 : f32 to vector<64x64xf32>
    %331 = arith.maximumf %329, %330 : vector<64x64xf32>
    %332 = vector.extract_strided_slice %328 {offsets = [0, 64], sizes = [64, 64], strides = [1, 1]} : vector<64x128xf32> to vector<64x64xf32>
    %cst_300 = arith.constant 0.000000e+00 : f32
    %333 = vector.broadcast %cst_300 : f32 to vector<1x64xf32>
    %c0_301 = arith.constant 0 : index
    %c0_302 = arith.constant 0 : index
    %c0_303 = arith.constant 0 : index
    %334 = vector.load %arg29[%c0_301, %c0_302, %c0_303] : memref<2x34x64xf32, #tpu.memory_space<vmem>>, vector<1x1x64xf32>
    %335 = vector.shape_cast %334 : vector<1x1x64xf32> to vector<1x64xf32>
    %336 = vector.shape_cast %333 : vector<1x64xf32> to vector<1x1x64xf32>
    tpu.vector_store %arg29[%c0_301, %c0_302, %c0_303], %336 {strides = array<i32>} : memref<2x34x64xf32, #tpu.memory_space<vmem>>, vector<1x1x64xf32>,
    %c0_304 = arith.constant 0 : index
    %c33_305 = arith.constant 33 : index
    %c0_306 = arith.constant 0 : index
    %337 = vector.load %arg29[%c0_304, %c33_305, %c0_306] : memref<2x34x64xf32, #tpu.memory_space<vmem>>, vector<1x1x64xf32>
    %338 = vector.shape_cast %337 : vector<1x1x64xf32> to vector<1x64xf32>
    %339 = vector.shape_cast %333 : vector<1x64xf32> to vector<1x1x64xf32>
    tpu.vector_store %arg29[%c0_304, %c33_305, %c0_306], %339 {strides = array<i32>} : memref<2x34x64xf32, #tpu.memory_space<vmem>>, vector<1x1x64xf32>,
    %340 = vector.extract_strided_slice %331 {offsets = [0, 0], sizes = [32, 64], strides = [1, 1]} : vector<64x64xf32> to vector<32x64xf32>
    %c0_307 = arith.constant 0 : index
    %c1_308 = arith.constant 1 : index
    %c0_309 = arith.constant 0 : index
    %341 = vector.load %arg29[%c0_307, %c1_308, %c0_309] : memref<2x34x64xf32, #tpu.memory_space<vmem>>, vector<1x32x64xf32>
    %342 = vector.shape_cast %341 : vector<1x32x64xf32> to vector<32x64xf32>
    %343 = vector.shape_cast %340 : vector<32x64xf32> to vector<1x32x64xf32>
    tpu.vector_store %arg29[%c0_307, %c1_308, %c0_309], %343 {strides = array<i32>} : memref<2x34x64xf32, #tpu.memory_space<vmem>>, vector<1x32x64xf32>,
    %c1_310 = arith.constant 1 : index
    %c0_311 = arith.constant 0 : index
    %c0_312 = arith.constant 0 : index
    %344 = vector.load %arg29[%c1_310, %c0_311, %c0_312] : memref<2x34x64xf32, #tpu.memory_space<vmem>>, vector<1x1x64xf32>
    %345 = vector.shape_cast %344 : vector<1x1x64xf32> to vector<1x64xf32>
    %346 = vector.shape_cast %333 : vector<1x64xf32> to vector<1x1x64xf32>
    tpu.vector_store %arg29[%c1_310, %c0_311, %c0_312], %346 {strides = array<i32>} : memref<2x34x64xf32, #tpu.memory_space<vmem>>, vector<1x1x64xf32>,
    %c1_313 = arith.constant 1 : index
    %c33_314 = arith.constant 33 : index
    %c0_315 = arith.constant 0 : index
    %347 = vector.load %arg29[%c1_313, %c33_314, %c0_315] : memref<2x34x64xf32, #tpu.memory_space<vmem>>, vector<1x1x64xf32>
    %348 = vector.shape_cast %347 : vector<1x1x64xf32> to vector<1x64xf32>
    %349 = vector.shape_cast %333 : vector<1x64xf32> to vector<1x1x64xf32>
    tpu.vector_store %arg29[%c1_313, %c33_314, %c0_315], %349 {strides = array<i32>} : memref<2x34x64xf32, #tpu.memory_space<vmem>>, vector<1x1x64xf32>,
    %350 = vector.extract_strided_slice %331 {offsets = [32, 0], sizes = [32, 64], strides = [1, 1]} : vector<64x64xf32> to vector<32x64xf32>
    %c1_316 = arith.constant 1 : index
    %c1_317 = arith.constant 1 : index
    %c0_318 = arith.constant 0 : index
    %351 = vector.load %arg29[%c1_316, %c1_317, %c0_318] : memref<2x34x64xf32, #tpu.memory_space<vmem>>, vector<1x32x64xf32>
    %352 = vector.shape_cast %351 : vector<1x32x64xf32> to vector<32x64xf32>
    %353 = vector.shape_cast %350 : vector<32x64xf32> to vector<1x32x64xf32>
    tpu.vector_store %arg29[%c1_316, %c1_317, %c0_318], %353 {strides = array<i32>} : memref<2x34x64xf32, #tpu.memory_space<vmem>>, vector<1x32x64xf32>,
    %c0_319 = arith.constant 0 : index
    %c0_320 = arith.constant 0 : index
    %c0_321 = arith.constant 0 : index
    %354 = vector.load %arg29[%c0_319, %c0_320, %c0_321] : memref<2x34x64xf32, #tpu.memory_space<vmem>>, vector<1x32x64xf32>
    %355 = vector.shape_cast %354 : vector<1x32x64xf32> to vector<32x64xf32>
    %c1_322 = arith.constant 1 : index
    %c0_323 = arith.constant 0 : index
    %c0_324 = arith.constant 0 : index
    %356 = vector.load %arg29[%c1_322, %c0_323, %c0_324] : memref<2x34x64xf32, #tpu.memory_space<vmem>>, vector<1x32x64xf32>
    %357 = vector.shape_cast %356 : vector<1x32x64xf32> to vector<32x64xf32>
    %358 = tpu.concatenate %355, %357 in 0 : vector<32x64xf32>, vector<32x64xf32> -> vector<64x64xf32>
    %c0_325 = arith.constant 0 : index
    %c1_326 = arith.constant 1 : index
    %c0_327 = arith.constant 0 : index
    %359 = vector.load %arg29[%c0_325, %c1_326, %c0_327] : memref<2x34x64xf32, #tpu.memory_space<vmem>>, vector<1x32x64xf32>
    %360 = vector.shape_cast %359 : vector<1x32x64xf32> to vector<32x64xf32>
    %c1_328 = arith.constant 1 : index
    %c1_329 = arith.constant 1 : index
    %c0_330 = arith.constant 0 : index
    %361 = vector.load %arg29[%c1_328, %c1_329, %c0_330] : memref<2x34x64xf32, #tpu.memory_space<vmem>>, vector<1x32x64xf32>
    %362 = vector.shape_cast %361 : vector<1x32x64xf32> to vector<32x64xf32>
    %363 = tpu.concatenate %360, %362 in 0 : vector<32x64xf32>, vector<32x64xf32> -> vector<64x64xf32>
    %c0_331 = arith.constant 0 : index
    %c2_332 = arith.constant 2 : index
    %c0_333 = arith.constant 0 : index
    %364 = vector.load %arg29[%c0_331, %c2_332, %c0_333] : memref<2x34x64xf32, #tpu.memory_space<vmem>>, vector<1x32x64xf32>
    %365 = vector.shape_cast %364 : vector<1x32x64xf32> to vector<32x64xf32>
    %c1_334 = arith.constant 1 : index
    %c2_335 = arith.constant 2 : index
    %c0_336 = arith.constant 0 : index
    %366 = vector.load %arg29[%c1_334, %c2_335, %c0_336] : memref<2x34x64xf32, #tpu.memory_space<vmem>>, vector<1x32x64xf32>
    %367 = vector.shape_cast %366 : vector<1x32x64xf32> to vector<32x64xf32>
    %368 = tpu.concatenate %365, %367 in 0 : vector<32x64xf32>, vector<32x64xf32> -> vector<64x64xf32>
    %369 = tpu.concatenate %358, %363, %368 in 1 : vector<64x64xf32>, vector<64x64xf32>, vector<64x64xf32> -> vector<64x192xf32>
    %370 = arith.truncf %369 : vector<64x192xf32> to vector<64x192xbf16>
    %c0_337 = arith.constant 0 : index
    %c0_338 = arith.constant 0 : index
    %371 = vector.load %arg19[%c0_337, %c0_338] : memref<192x64xbf16, #tpu.memory_space<vmem>>, vector<192x64xbf16>
    %cst_339 = arith.constant dense<0.000000e+00> : vector<64x64xf32>
    %372 = tpu.matmul %370, %371, %cst_339 {dimension_numbers = #tpu.dot_dimension_numbers<[1], [0], [0], [1], [0, 0, 1, 1], [], []>} : vector<64x192xbf16>, vector<192x64xbf16>, vector<64x64xf32> -> vector<64x64xf32>
    %c0_340 = arith.constant 0 : index
    %c0_341 = arith.constant 0 : index
    %373 = vector.load %arg20[%c0_340, %c0_341] : memref<1x64xf32, #tpu.memory_space<vmem>>, vector<1x64xf32>
    %374 = vector.broadcast %373 : vector<1x64xf32> to vector<64x64xf32>
    %375 = arith.mulf %372, %374 : vector<64x64xf32>
    %c0_342 = arith.constant 0 : index
    %c0_343 = arith.constant 0 : index
    %376 = vector.load %arg21[%c0_342, %c0_343] : memref<1x64xf32, #tpu.memory_space<vmem>>, vector<1x64xf32>
    %377 = vector.broadcast %376 : vector<1x64xf32> to vector<64x64xf32>
    %378 = arith.addf %375, %377 : vector<64x64xf32>
    %379 = arith.addf %378, %332 : vector<64x64xf32>
    %cst_344 = arith.constant 0.000000e+00 : f32
    %380 = vector.broadcast %cst_344 : f32 to vector<64x64xf32>
    %381 = arith.maximumf %379, %380 : vector<64x64xf32>
    %382 = vector.shape_cast %381 : vector<64x64xf32> to vector<2x32x64xf32>
    %cst_345 = arith.constant dense<0.000000e+00> : vector<2x64xf32>
    %383 = vector.multi_reduction <add>, %382, %cst_345 [1] : vector<2x32x64xf32> to vector<2x64xf32>
    %cst_346 = arith.constant 3.200000e+01 : f32
    %384 = vector.broadcast %cst_346 : f32 to vector<2x64xf32>
    %385 = arith.divf %383, %384 : vector<2x64xf32>
    %c0_347 = arith.constant 0 : index
    %c0_348 = arith.constant 0 : index
    %386 = vector.load %arg22[%c0_347, %c0_348] : memref<64x2xf32, #tpu.memory_space<vmem>>, vector<64x2xf32>
    %cst_349 = arith.constant dense<0.000000e+00> : vector<2x2xf32>
    %387 = tpu.matmul %385, %386, %cst_349 {dimension_numbers = #tpu.dot_dimension_numbers<[1], [0], [0], [1], [0, 0, 1, 1], [], []>} : vector<2x64xf32>, vector<64x2xf32>, vector<2x2xf32> -> vector<2x2xf32>
    %c0_350 = arith.constant 0 : index
    %c0_351 = arith.constant 0 : index
    %388 = vector.load %arg23[%c0_350, %c0_351] : memref<1x2xf32, #tpu.memory_space<vmem>>, vector<1x2xf32>
    %389 = vector.broadcast %388 : vector<1x2xf32> to vector<2x2xf32>
    %390 = arith.addf %387, %389 : vector<2x2xf32>
    %c0_352 = arith.constant 0 : index
    %c0_353 = arith.constant 0 : index
    %391 = vector.load %arg24[%c0_352, %c0_353] : memref<2x2xf32, #tpu.memory_space<vmem>>, vector<2x2xf32>
    tpu.vector_store %arg24[%c0_352, %c0_353], %390 {strides = array<i32>} : memref<2x2xf32, #tpu.memory_space<vmem>>, vector<2x2xf32>,
    return
  }
}

</mosaic_0001>

<bundles_post_ra>
// kernel: resnet_forward.1
= control target key start
LH: loop header
LB: loop body
LE: loop exit
PB: predicated region body
PF: predicated region fallthrough
CT: control target
= control target key end

     0   :  { %s3691_s0 = inlined_call_operand.vmem [shape: f32[2,32,4], index: 0, kind: input, shape index: {}]   ;;  %s3692_s1 = inlined_call_operand.vmem [shape: f32[12,32], index: 1, kind: input, shape index: {}]   ;;  %s3693_s2 = inlined_call_operand.vmem [shape: f32[1,32], index: 2, kind: input, shape index: {}]   ;;  %s3694_s3 = inlined_call_operand.vmem [shape: f32[1,32], index: 3, kind: input, shape index: {}]   ;;  %s3695_s4 = inlined_call_operand.vmem [shape: bf16[48,16], index: 4, kind: input, shape index: {}]   ;;  %s3696_s5 = inlined_call_operand.vmem [shape: f32[1,16], index: 5, kind: input, shape index: {}]   ;;  %s3697_s6 = inlined_call_operand.vmem [shape: f32[1,16], index: 6, kind: input, shape index: {}]   ;;  %s3698_s7 = inlined_call_operand.vmem [shape: bf16[48,16], index: 7, kind: input, shape index: {}]   ;;  %s3699_s8 = inlined_call_operand.vmem [shape: f32[1,16], index: 8, kind: input, shape index: {}]   ;;  %s3700_s9 = inlined_call_operand.vmem [shape: f32[1,16], index: 9, kind: input, shape index: {}]   ;;  %s3701_s10 = inlined_call_operand.vmem [shape: bf16[48,64], index: 10, kind: input, shape index: {}]   ;;  %s3702_s11 = inlined_call_operand.vmem [shape: f32[1,64], index: 11, kind: input, shape index: {}]   ;;  %s3703_s12 = inlined_call_operand.vmem [shape: f32[1,64], index: 12, kind: input, shape index: {}]   ;;  %s3704_s13 = inlined_call_operand.vmem [shape: bf16[96,32], index: 13, kind: input, shape index: {}]   ;;  %s3705_s14 = inlined_call_operand.vmem [shape: f32[1,32], index: 14, kind: input, shape index: {}]   ;;  %s3706_s15 = inlined_call_operand.vmem [shape: f32[1,32], index: 15, kind: input, shape index: {}]   ;;  %s3707_s16 = inlined_call_operand.vmem [shape: bf16[96,128], index: 16, kind: input, shape index: {}]   ;;  %s3708_s17 = inlined_call_operand.vmem [shape: f32[1,128], index: 17, kind: input, shape index: {}]   ;;  %s3709_s18 = inlined_call_operand.vmem [shape: f32[1,128], index: 18, kind: input, shape index: {}]   ;;  %s3710_s19 = inlined_call_operand.vmem [shape: bf16[192,64], index: 19, kind: input, shape index: {}]   ;;  %s3711_s20 = inlined_call_operand.vmem [shape: f32[1,64], index: 20, kind: input, shape index: {}]   ;;  %s3712_s21 = inlined_call_operand.vmem [shape: f32[1,64], index: 21, kind: input, shape index: {}]   ;;  %s3713_s22 = inlined_call_operand.vmem [shape: f32[64,2], index: 22, kind: input, shape index: {}]   ;;  %s3714_s23 = inlined_call_operand.vmem [shape: f32[1,2], index: 23, kind: input, shape index: {}]   ;;  %s3715_s24 = inlined_call_operand.hbm [shape: f32[2,2], index: 24, kind: output, shape index: {}]  }
   0x1   :  { %3720 = sst [smem:[#allocation10_spill]] %s3691_s0 }
   0x2   :  { %3721 = sst [smem:[#allocation11_spill]] %s3692_s1 }
   0x3   :  { %3722 = sst [smem:[#allocation12_spill]] %s3693_s2 }
   0x4   :  { %3723 = sst [smem:[#allocation13_spill]] %s3694_s3 }
   0x5   :  { %3724 = sst [smem:[#allocation14_spill]] %s3695_s4 }
   0x6   :  { %3725 = sst [smem:[#allocation15_spill]] %s3696_s5 }
   0x7   :  { %3726 = sst [smem:[#allocation16_spill]] %s3697_s6 }
   0x8   :  { %3727 = sst [smem:[#allocation17_spill]] %s3698_s7 }
   0x9   :  { %3728 = sst [smem:[#allocation18_spill]] %s3699_s8 }
   0xa   :  { %s3729_s27 = sld [smem:[#allocation10_spill]]  ;;  %vm86_vm0 = vcmask 31744   ;;  %vm79_vm1 = vcmask 24576   ;;  %vm235_vm2 = vcmask 1043456   ;;  %v2933_v6 = vmov 0.0   ;;  %s3730_s2 = sld [smem:[#allocation11_spill]] }
   0xb   :  { %81 = vst.msk [vmem:[#allocation2 + $0x21] sm:$0x1] %vm79_vm1, %v2933_v6  ;;  %80 = vst.msk [vmem:[#allocation2] sm:$0x1] %vm79_vm1, %v2933_v6  ;;  %vm2934_vm3 = vmmov 1   ;;  %s2936_s7 = smov 4  }
   0xc   :  { %92 = vst.msk [vmem:[#allocation2 + $0x28] sm:$0x1] %vm79_vm1, %v2933_v6  ;;  %93 = vst.msk [vmem:[#allocation2 + $0x49] sm:$0x1] %vm79_vm1, %v2933_v6 }
   0xd   :  { %vm2626_vm4 = vmpackc.low %vm235_vm2, %vm2934_vm3 }
  0x10   :  { %v82_v0 = vld [vmem:[%s3729_s27] sm:$0xff]  ;;  %v83_v1 = vld [vmem:[%s3729_s27 + $0x8] sm:$0xff]  ;;  %v84_v2 = vld [vmem:[%s3729_s27 + $0x10] sm:$0xff] }
  0x11   :  { %87 = vst.msk [vmem:[#allocation2 + $0x1] sm:$0xff] %vm86_vm0, %v82_v0  ;;  %88 = vst.msk [vmem:[#allocation2 + $0x9] sm:$0xff] %vm86_vm0, %v83_v1  ;;  %v85_v3 = vld [vmem:[%s3729_s27 + $0x18] sm:$0xff]  ;;  %v2362_v4 = vld [vmem:[%s3729_s27 + $0x20] sm:$0xff] }
  0x12   :  { %89 = vst.msk [vmem:[#allocation2 + $0x11] sm:$0xff] %vm86_vm0, %v84_v2  ;;  %v2363_v5 = vld [vmem:[%s3729_s27 + $0x28] sm:$0xff]  ;;  %90 = vst.msk [vmem:[#allocation2 + $0x19] sm:$0xff] %vm86_vm0, %v85_v3  ;;  %v2364_v7 = vld [vmem:[%s3729_s27 + $0x30] sm:$0xff] }
  0x13   :  { %99 = vst.msk [vmem:[#allocation2 + $0x29] sm:$0xff] %vm86_vm0, %v2362_v4  ;;  %100 = vst.msk [vmem:[#allocation2 + $0x31] sm:$0xff] %vm86_vm0, %v2363_v5  ;;  %v2365_v8 = vld [vmem:[%s3729_s27 + $0x38] sm:$0xff]  ;;  %v208_v9 = vld [vmem:[%s3730_s2] sm:$0xff]  ;;  %s2935_s27 = smov 8  }
  0x14   :  { %101 = vst.msk [vmem:[#allocation2 + $0x39] sm:$0xff] %vm86_vm0, %v2364_v7  ;;  %102 = vst.msk [vmem:[#allocation2 + $0x41] sm:$0xff] %vm86_vm0, %v2365_v8  ;;  %v209_v10 = vld [vmem:[%s3730_s2 + $0x8] sm:$0xf] }
  0x15   :  { %v2625_v11 = vpack.c.bf16 %v209_v10, %v208_v9 }
  0x17   :  { %2627 = vmatprep.subr.msk.bf16.mxu0 %vm2626_vm4, %v2625_v11 }
  0x18   :  { %2630 = vmatpush3.bf16.msk.msra.mxu0 %vm2626_vm4, %v2625_v11  ;;  %v119_v12 = vld [vmem:[#allocation2 + $0x2] sm:$0xff] }
  0x19   :  { %v111_v13 = vld [vmem:[#allocation2 + $0x1] sm:$0xff]  ;;  %167 = vrot.lane.b32.xlu1 %v119_v12, %s2935_s27  ;;  %v120_v14 = vld [vmem:[#allocation2 + $0xa] sm:$0xff]  ;;  %v114_v16 = vld [vmem:[#allocation2 + $0x19] sm:$0xff] }
  0x1a   :  { %135 = vrot.lane.b32.xlu0 %v111_v13, %s2936_s7  ;;  %v112_v15 = vld [vmem:[#allocation2 + $0x9] sm:$0xff]  ;;  %v113_v17 = vld [vmem:[#allocation2 + $0x11] sm:$0xff]  ;;  %v122_v19 = vld [vmem:[#allocation2 + $0x1a] sm:$0xff] }
  0x1b   :  { %v121_v18 = vld [vmem:[#allocation2 + $0x12] sm:$0xff]  ;;  %v115_v20 = vld [vmem:[#allocation2 + $0x29] sm:$0xff]  ;;  %v118_v25 = vld [vmem:[#allocation2 + $0x41] sm:$0xff] }
  0x1c   :  { %v116_v21 = vld [vmem:[#allocation2 + $0x31] sm:$0xff]  ;;  %v117_v24 = vld [vmem:[#allocation2 + $0x39] sm:$0xff]  ;;  %v126_v27 = vld [vmem:[#allocation2 + $0x42] sm:$0xff] }
  0x1d   :  { %169 = vrot.lane.b32.xlu1 %v120_v14, %s2935_s27  ;;  %v123_v22 = vld [vmem:[#allocation2 + $0x2a] sm:$0xff]  ;;  %v124_v23 = vld [vmem:[#allocation2 + $0x32] sm:$0xff]  ;;  %v125_v26 = vld [vmem:[#allocation2 + $0x3a] sm:$0xff] }
  0x1e   :  { %137 = vrot.lane.b32.xlu0 %v112_v15, %s2936_s7 }
  0x21   :  { %141 = vrot.lane.b32.xlu1 %v114_v16, %s2936_s7 }
  0x22   :  { %139 = vrot.lane.b32.xlu0 %v113_v17, %s2936_s7 }
  0x25   :  { %173 = vrot.lane.b32.xlu1 %v122_v19, %s2935_s27 }
  0x26   :  { %171 = vrot.lane.b32.xlu0 %v121_v18, %s2935_s27 }
  0x29   :  { %145 = vrot.lane.b32.xlu1 %v116_v21, %s2936_s7 }
  0x2a   :  { %143 = vrot.lane.b32.xlu0 %v115_v20, %s2936_s7 }
  0x2d   :  { %177 = vrot.lane.b32.xlu1 %v124_v23, %s2935_s27 }
  0x2e   :  { %175 = vrot.lane.b32.xlu0 %v123_v22, %s2935_s27 }
  0x31   :  { %149 = vrot.lane.b32.xlu1 %v118_v25, %s2936_s7 }
  0x32   :  { %147 = vrot.lane.b32.xlu0 %v117_v24, %s2936_s7 }
  0x33   :  { %29 = vsyncpa [#allocation8], 0  ;;  %v103_v28 = vld [vmem:[#allocation2] sm:$0xff]  ;;  %vm199_vm5 = vcmask 64512   ;;  %vm210_vm6 = vcmask 97280   ;;  %v104_v33 = vld [vmem:[#allocation2 + $0x8] sm:$0xff] }
  0x34   :  { %v106_v40 = vld [vmem:[#allocation2 + $0x18] sm:$0xff]  ;;  %v105_v41 = vld [vmem:[#allocation2 + $0x10] sm:$0xff]  ;;  %v107_v50 = vld [vmem:[#allocation2 + $0x28] sm:$0xff]  ;;  %vm382_vm7 = vcmask 253952   ;;  %s3731_s25 = sld [smem:[#allocation12_spill]]  ;;  %s3732_s1 = sld [smem:[#allocation13_spill]] }
  0x35   :  { %181 = vrot.lane.b32.xlu1 %v126_v27, %s2935_s27  ;;  %v108_v51 = vld [vmem:[#allocation2 + $0x30] sm:$0xff]  ;;  %v109_v60 = vld [vmem:[#allocation2 + $0x38] sm:$0xff]  ;;  %v110_v61 = vld [vmem:[#allocation2 + $0x40] sm:$0xff]  ;;  %383 = vst.msk [vmem:[#allocation3] sm:$0x1] %vm382_vm7, %v2933_v6  ;;  %vm384_vm8 = vcmask 261120  }
  0x36   :  { %179 = vrot.lane.b32.xlu0 %v125_v26, %s2935_s27  ;;  %390 = vst.msk [vmem:[#allocation3 + $0x28] sm:$0x1] %vm382_vm7, %v2933_v6  ;;  %1280 = vst.msk [vmem:[#allocation5] sm:$0x1] %vm382_vm7, %v2933_v6  ;;  %vm491_vm9 = vcmask 122880   ;;  %s2937_s5 = smov 112  }
  0x37   :  { %1281 = vst.msk [vmem:[#allocation5 + $0x21] sm:$0x1] %vm382_vm7, %v2933_v6  ;;  %1287 = vst.msk [vmem:[#allocation5 + $0x28] sm:$0x1] %vm382_vm7, %v2933_v6  ;;  %vm494_vm10 = vcmask 130048   ;;  %s3733_s6 = sld [smem:[#allocation14_spill]] }
  0x38   :  { %1288 = vst.msk [vmem:[#allocation5 + $0x49] sm:$0x1] %vm382_vm7, %v2933_v6  ;;  %s2938_s7 = smov 16   ;;  %s2939_s30 = smov 32   ;;  %vm638_vm11 = vcmask 392192   ;;  %vm1389_vm12 = vcmask 523264  }
  0x39   :  { %493 = vst.msk [vmem:[#allocation4 + $0x21] sm:$0x1] %vm491_vm9, %v2933_v6  ;;  %492 = vst.msk [vmem:[#allocation4] sm:$0x1] %vm491_vm9, %v2933_v6  ;;  %s3734_s8 = sld [smem:[#allocation17_spill]]  ;;  %vm1450_vm13 = vcmask 785408  }
  0x3a   :  { %v2375_v4 = vld [vmem:[%s3731_s25] ss:$0 sm:$0xff]  ;;  %500 = vst.msk [vmem:[#allocation4 + $0x28] sm:$0x1] %vm491_vm9, %v2933_v6  ;;  %501 = vst.msk [vmem:[#allocation4 + $0x49] sm:$0x1] %vm491_vm9, %v2933_v6 }
  0x3b   :  { %v2376_v7 = vld [vmem:[%s3732_s1] ss:$0 sm:$0xff]  ;;  %s3737_s1 = sld [smem:[#allocation18_spill]]  ;;  %vm1889_vm14 = vcmask 516096   ;;  %vm2944_vm15 = vmmov 0   ;;  %vm2346_vm1 = vcmask 9216  }
  0x3c   :  { %1890 = vst.msk [vmem:[#allocation6] sm:$0x1] %vm1889_vm14, %v2933_v6  ;;  %1891 = vst.msk [vmem:[#allocation6 + $0x21] sm:$0x1] %vm1889_vm14, %v2933_v6 }
  0x3d   :  { %1897 = vst.msk [vmem:[#allocation6 + $0x28] sm:$0x1] %vm1889_vm14, %v2933_v6  ;;  %1898 = vst.msk [vmem:[#allocation6 + $0x49] sm:$0x1] %vm1889_vm14, %v2933_v6 }
  0x8b   :  { %v168_v29 = vpop.permute.xlu1 %167 }
  0x8c   :  { %v136_v30 = vpop.permute.xlu0 %135 }
  0x8d   :  { %v191_v31 = vsel %vm86_vm0, %v103_v28, %v136_v30 }
  0x8e   :  { %v200_v32 = vsel %vm199_vm5, %v191_v31, %v168_v29 }
  0x8f   :  { %2512 = vmatprep.mubr.msk.f32.mxu0 %vm210_vm6, %v200_v32  ;;  %v170_v34 = vpop.permute.xlu1 %169 }
  0x90   :  { %v138_v35 = vpop.permute.xlu0 %137 }
  0x91   :  { %v192_v36 = vsel %vm86_vm0, %v104_v33, %v138_v35 }
  0x92   :  { %v201_v37 = vsel %vm199_vm5, %v192_v36, %v170_v34 }
  0x93   :  { %2513 = vmatmul.mubr.msk.f32.vlgmr.msra.gmra.mrb[0].mxu0 %vm210_vm6, %v201_v37  ;;  %v142_v38 = vpop.permute.xlu1 %141 }
  0x94   :  { %v140_v39 = vpop.permute.xlu0 %139  ;;  %v194_v42 = vsel %vm86_vm0, %v106_v40, %v142_v38 }
  0x95   :  { %v193_v43 = vsel %vm86_vm0, %v105_v41, %v140_v39 }
  0x97   :  { %v174_v45 = vpop.permute.xlu1 %173 }
  0x98   :  { %v172_v44 = vpop.permute.xlu0 %171  ;;  %v203_v47 = vsel %vm199_vm5, %v194_v42, %v174_v45 }
  0x99   :  { %v202_v46 = vsel %vm199_vm5, %v193_v43, %v172_v44 }
  0x9a   :  { %2515 = vmatprep.mubr.msk.f32.mxu0 %vm210_vm6, %v202_v46 }
  0x9b   :  { %2516 = vmatmul.mubr.msk.f32.gmra.mrb[2].mxu0 %vm210_vm6, %v203_v47  ;;  %v146_v49 = vpop.permute.xlu1 %145 }
  0x9c   :  { %v144_v48 = vpop.permute.xlu0 %143  ;;  %v196_v53 = vsel %vm86_vm0, %v108_v51, %v146_v49 }
  0x9d   :  { %v195_v52 = vsel %vm86_vm0, %v107_v50, %v144_v48 }
  0x9f   :  { %v178_v55 = vpop.permute.xlu1 %177 }
  0xa0   :  { %v176_v54 = vpop.permute.xlu0 %175  ;;  %v205_v57 = vsel %vm199_vm5, %v196_v53, %v178_v55 }
  0xa1   :  { %v204_v56 = vsel %vm199_vm5, %v195_v52, %v176_v54 }
  0xa2   :  { %2518 = vmatprep.mubr.msk.f32.mxu0 %vm210_vm6, %v204_v56 }
  0xa3   :  { %2519 = vmatmul.mubr.msk.f32.gmra.mrb[4].mxu0 %vm210_vm6, %v205_v57  ;;  %v150_v59 = vpop.permute.xlu1 %149 }
  0xa4   :  { %v148_v58 = vpop.permute.xlu0 %147  ;;  %v198_v63 = vsel %vm86_vm0, %v110_v61, %v150_v59 }
  0xa5   :  { %v197_v62 = vsel %vm86_vm0, %v109_v60, %v148_v58  ;;  %vm2272_vm0 = vcmask 1041409  }
  0xa7   :  { %v182_v1 = vpop.permute.xlu1 %181 }
  0xa8   :  { %v180_v0 = vpop.permute.xlu0 %179  ;;  %v207_v3 = vsel %vm199_vm5, %v198_v63, %v182_v1 }
  0xa9   :  { %v206_v2 = vsel %vm199_vm5, %v197_v62, %v180_v0  ;;  %v2876_v62 = vld [vmem:[%s3733_s6] sm:$0xff]  }
  0xaa   :  { %2521 = vmatprep.mubr.msk.f32.mxu0 %vm210_vm6, %v206_v2  ;;  %2524 = vmatprep.subr.bf16.mxu1 %v2876_v62 }
  0xab   :  { %2522 = vmatmul.mubr.msk.f32.gmra.mrb[6].mxu0 %vm210_vm6, %v207_v3  ;;  %2525 = vmatpush3.bf16.msra.mxu1 %v2876_v62 }
 0x166   :  { %v2514_v5 = vpop.f32.mrb[0].mxu0 }
 0x167   :  { %v352_v8 = vmul.f32 %v2514_v5, %v2375_v4  ;;  %v305_v9 = vpop.f32.mrb[1].mxu0 }
 0x168   :  { %v351_v10 = vmul.f32 %v2375_v4, %v305_v9 }
 0x169   :  { %v367_v11 = vadd.f32 %v2376_v7, %v352_v8  ;;  %v2877_v8 = vld [vmem:[%s3733_s6 + $0x8] sm:$0xff]  }
 0x16a   :  { %v366_v12 = vadd.f32 %v2376_v7, %v351_v10  ;;  %2526 = vmatprep.subr.bf16.mxu1 %v2877_v8 }
 0x16b   :  { %v375_v13 = vmax.f32 %v367_v11, 0.0  ;;  %2527 = vmatpush3.bf16.msra.mxu1 %v2877_v8 }
 0x16c   :  { %v374_v14 = vmax.f32 %v366_v12, 0.0 }
 0x16d   :  { %386 = vst.msk [vmem:[#allocation3 + $0x9] sm:$0xff] %vm384_vm8, %v375_v13 }
 0x16e   :  { %385 = vst.msk [vmem:[#allocation3 + $0x1] sm:$0xff] %vm384_vm8, %v374_v14  ;;  %v2517_v15 = vpop.f32.mrb[2].mxu0 }
 0x16f   :  { %v354_v16 = vmul.f32 %v2517_v15, %v2375_v4  ;;  %v315_v17 = vpop.f32.mrb[3].mxu0 }
 0x170   :  { %v353_v18 = vmul.f32 %v2375_v4, %v315_v17 }
 0x171   :  { %v369_v19 = vadd.f32 %v2376_v7, %v354_v16  ;;  %v2878_v16 = vld [vmem:[%s3733_s6 + $0x10] sm:$0xff]   ;;  %s3736_s6 = sld [smem:[#allocation16_spill]] }
 0x172   :  { %v368_v20 = vadd.f32 %v2376_v7, %v353_v18  ;;  %2528 = vmatprep.subr.bf16.mxu1 %v2878_v16 }
 0x173   :  { %v377_v21 = vmax.f32 %v369_v19, 0.0  ;;  %2529 = vmatpush3.bf16.msra.mxu1 %v2878_v16 }
 0x174   :  { %v376_v22 = vmax.f32 %v368_v20, 0.0  ;;  %v396_v23 = vld [vmem:[#allocation3 + $0x9] sm:$0xff] }
 0x175   :  { %388 = vst.msk [vmem:[#allocation3 + $0x19] sm:$0xff] %vm384_vm8, %v377_v21  ;;  %409 = vrot.lane.b32.xlu1 %v396_v23, %s2937_s5  ;;  %v395_v24 = vld [vmem:[#allocation3 + $0x1] sm:$0xff] }
 0x176   :  { %387 = vst.msk [vmem:[#allocation3 + $0x11] sm:$0xff] %vm384_vm8, %v376_v22  ;;  %407 = vrot.lane.b32.xlu0 %v395_v24, %s2937_s5  ;;  %v2520_v25 = vpop.f32.mrb[4].mxu0  ;;  %v400_v29 = vld [vmem:[#allocation3 + $0x8] sm:$0xff]  ;;  %v399_v31 = vld [vmem:[#allocation3] sm:$0xff] }
 0x177   :  { %v356_v26 = vmul.f32 %v2520_v25, %v2375_v4  ;;  %v325_v27 = vpop.f32.mrb[5].mxu0 }
 0x178   :  { %v355_v28 = vmul.f32 %v2375_v4, %v325_v27 }
 0x179   :  { %v371_v30 = vadd.f32 %v2376_v7, %v356_v26  ;;  %429 = vrot.lane.b32.xlu1 %v400_v29, %s2937_s5 }
 0x17a   :  { %v370_v32 = vadd.f32 %v2376_v7, %v355_v28  ;;  %427 = vrot.lane.b32.xlu0 %v399_v31, %s2937_s5 }
 0x17b   :  { %v379_v33 = vmax.f32 %v371_v30, 0.0 }
 0x17c   :  { %v378_v34 = vmax.f32 %v370_v32, 0.0  ;;  %v398_v35 = vld [vmem:[#allocation3 + $0x19] sm:$0xff] }
 0x17d   :  { %392 = vst.msk [vmem:[#allocation3 + $0x31] sm:$0xff] %vm384_vm8, %v379_v33  ;;  %413 = vrot.lane.b32.xlu1 %v398_v35, %s2937_s5  ;;  %v397_v36 = vld [vmem:[#allocation3 + $0x11] sm:$0xff] }
 0x17e   :  { %391 = vst.msk [vmem:[#allocation3 + $0x29] sm:$0xff] %vm384_vm8, %v378_v34  ;;  %411 = vrot.lane.b32.xlu0 %v397_v36, %s2937_s5  ;;  %v2523_v37 = vpop.f32.mrb[6].mxu0  ;;  %v402_v41 = vld [vmem:[#allocation3 + $0x18] sm:$0xff]  ;;  %v401_v43 = vld [vmem:[#allocation3 + $0x10] sm:$0xff] }
 0x17f   :  { %v358_v38 = vmul.f32 %v2523_v37, %v2375_v4  ;;  %v335_v39 = vpop.f32.mrb[7].mxu0 }
 0x180   :  { %v357_v40 = vmul.f32 %v2375_v4, %v335_v39 }
 0x181   :  { %v373_v42 = vadd.f32 %v2376_v7, %v358_v38  ;;  %433 = vrot.lane.b32.xlu1 %v402_v41, %s2937_s5 }
 0x182   :  { %v372_v44 = vadd.f32 %v2376_v7, %v357_v40  ;;  %431 = vrot.lane.b32.xlu0 %v401_v43, %s2937_s5 }
 0x183   :  { %v381_v45 = vmax.f32 %v373_v42, 0.0 }
 0x184   :  { %v380_v46 = vmax.f32 %v372_v44, 0.0  ;;  %v444_v47 = vld [vmem:[#allocation3 + $0x31] sm:$0xff] }
 0x185   :  { %394 = vst.msk [vmem:[#allocation3 + $0x41] sm:$0xff] %vm384_vm8, %v381_v45  ;;  %457 = vrot.lane.b32.xlu1 %v444_v47, %s2937_s5  ;;  %v443_v48 = vld [vmem:[#allocation3 + $0x29] sm:$0xff] }
 0x186   :  { %393 = vst.msk [vmem:[#allocation3 + $0x39] sm:$0xff] %vm384_vm8, %v380_v46  ;;  %455 = vrot.lane.b32.xlu0 %v443_v48, %s2937_s5  ;;  %v448_v49 = vld [vmem:[#allocation3 + $0x30] sm:$0xff]  ;;  %v447_v50 = vld [vmem:[#allocation3 + $0x28] sm:$0xff] }
 0x189   :  { %477 = vrot.lane.b32.xlu1 %v448_v49, %s2937_s5 }
 0x18a   :  { %475 = vrot.lane.b32.xlu0 %v447_v50, %s2937_s5 }
 0x18c   :  { %v3192_v51 = vld [vmem:[#allocation3 + $0x41] sm:$0xff] }
 0x18d   :  { %461 = vrot.lane.b32.xlu1 %v3192_v51, %s2937_s5  ;;  %v3196_v52 = vld [vmem:[#allocation3 + $0x39] sm:$0xff] }
 0x18e   :  { %459 = vrot.lane.b32.xlu0 %v3196_v52, %s2937_s5  ;;  %v450_v53 = vld [vmem:[#allocation3 + $0x40] sm:$0xff]  ;;  %v449_v54 = vld [vmem:[#allocation3 + $0x38] sm:$0xff] }
 0x191   :  { %481 = vrot.lane.b32.xlu1 %v450_v53, %s2937_s5 }
 0x192   :  { %479 = vrot.lane.b32.xlu0 %v449_v54, %s2937_s5  ;;  %s3735_s5 = sld [smem:[#allocation15_spill]] }
 0x1e7   :  { %v410_v55 = vpop.permute.xlu1 %409 }
 0x1e8   :  { %v408_v56 = vpop.permute.xlu0 %407  ;;  %v420_v57 = vmax.f32 %v396_v23, %v410_v55 }
 0x1e9   :  { %v419_v58 = vmax.f32 %v395_v24, %v408_v56 }
 0x1eb   :  { %v430_v59 = vpop.permute.xlu1 %429 }
 0x1ec   :  { %v3202_v60 = vmax.f32 %v420_v57, %v430_v59  ;;  %v428_v61 = vpop.permute.xlu0 %427 }
 0x1ed   :  { %v3207_v63 = vmax.f32 %v419_v58, %v428_v61 }
 0x1ee   :  { %496 = vst.msk [vmem:[#allocation4 + $0x9] sm:$0xff] %vm494_vm10, %v3202_v60 }
 0x1ef   :  { %495 = vst.msk [vmem:[#allocation4 + $0x1] sm:$0xff] %vm494_vm10, %v3207_v63  ;;  %v414_v0 = vpop.permute.xlu1 %413 }
 0x1f0   :  { %v412_v1 = vpop.permute.xlu0 %411  ;;  %v422_v2 = vmax.f32 %v398_v35, %v414_v0 }
 0x1f1   :  { %v421_v3 = vmax.f32 %v397_v36, %v412_v1 }
 0x1f3   :  { %v434_v4 = vpop.permute.xlu1 %433 }
 0x1f4   :  { %v3213_v5 = vmax.f32 %v422_v2, %v434_v4  ;;  %v432_v7 = vpop.permute.xlu0 %431 }
 0x1f5   :  { %v3218_v9 = vmax.f32 %v421_v3, %v432_v7  ;;  %v515_v10 = vld [vmem:[#allocation4 + $0x9] sm:$0xff] }
 0x1f6   :  { %498 = vst.msk [vmem:[#allocation4 + $0x19] sm:$0xff] %vm494_vm10, %v3213_v5  ;;  %v514_v11 = vld [vmem:[#allocation4 + $0x1] sm:$0xff] }
 0x1f7   :  { %v3222_v12 = vld [vmem:[#allocation4] sm:$0xff]  ;;  %497 = vst.msk [vmem:[#allocation4 + $0x11] sm:$0xff] %vm494_vm10, %v3218_v9  ;;  %v458_v13 = vpop.permute.xlu1 %457  ;;  %v2656_v14 = vpack.i.bf16 %v515_v10, %v514_v11  ;;  %v507_v61 = vld [vmem:[#allocation4 + $0x8] sm:$0xff] }
 0x1f8   :  { %754 = vst.msk [vmem:[#allocation4] sm:$0x1] %vm491_vm9, %v2933_v6  ;;  %v456_v15 = vpop.permute.xlu0 %455  ;;  %v468_v17 = vmax.f32 %v444_v47, %v458_v13  ;;  %v522_v26 = vld [vmem:[#allocation4 + $0x2] sm:$0xff] }
 0x1f9   :  { %2657 = vrot.lane.b32.xlu0 %v2656_v14, %s2938_s7  ;;  %v467_v18 = vmax.f32 %v443_v48, %v456_v15 }
 0x1fb   :  { %v478_v19 = vpop.permute.xlu1 %477 }
 0x1fc   :  { %v3232_v20 = vmax.f32 %v468_v17, %v478_v19  ;;  %v476_v21 = vpop.permute.xlu0 %475 }
 0x1fd   :  { %v3234_v22 = vmax.f32 %v467_v18, %v476_v21  ;;  %v517_v23 = vld [vmem:[#allocation4 + $0x19] sm:$0xff] }
 0x1fe   :  { %v525_v24 = vld [vmem:[#allocation4 + $0x1a] sm:$0xff]  ;;  %503 = vst.msk [vmem:[#allocation4 + $0x31] sm:$0xff] %vm494_vm10, %v3232_v20  ;;  %v516_v25 = vld [vmem:[#allocation4 + $0x11] sm:$0xff] }
 0x1ff   :  { %v523_v27 = vld [vmem:[#allocation4 + $0xa] sm:$0xff]  ;;  %755 = vst.msk [vmem:[#allocation4 + $0x21] sm:$0x1] %vm491_vm9, %v2933_v6  ;;  %v462_v28 = vpop.permute.xlu1 %461  ;;  %v2661_v29 = vpack.i.bf16 %v517_v23, %v516_v25  ;;  %v524_v32 = vld [vmem:[#allocation4 + $0x12] sm:$0xff] }
 0x200   :  { %502 = vst.msk [vmem:[#allocation4 + $0x29] sm:$0xff] %vm494_vm10, %v3234_v22  ;;  %v2666_v30 = vpack.i.bf16 %v523_v27, %v522_v26  ;;  %v460_v31 = vpop.permute.xlu0 %459  ;;  %v470_v33 = vmax.f32 %v3192_v51, %v462_v28  ;;  %v2671_v36 = vpack.i.bf16 %v525_v24, %v524_v32  ;;  %v508_v10 = vld [vmem:[#allocation4 + $0x10] sm:$0xff]  ;;  %v509_v11 = vld [vmem:[#allocation4 + $0x18] sm:$0xff] }
 0x201   :  { %2662 = vrot.lane.b32.xlu1 %v2661_v29, %s2938_s7  ;;  %v469_v34 = vmax.f32 %v3196_v52, %v460_v31 }
 0x202   :  { %2667 = vrot.lane.b32.xlu0 %v2666_v30, %s2939_s30 }
 0x203   :  { %v482_v35 = vpop.permute.xlu1 %481 }
 0x204   :  { %v3246_v37 = vmax.f32 %v470_v33, %v482_v35  ;;  %v480_v38 = vpop.permute.xlu0 %479 }
 0x205   :  { %v3248_v39 = vmax.f32 %v469_v34, %v480_v38  ;;  %2672 = vrot.lane.b32.xlu1 %v2671_v36, %s2939_s30  ;;  %v519_v40 = vld [vmem:[#allocation4 + $0x31] sm:$0xff] }
 0x206   :  { %505 = vst.msk [vmem:[#allocation4 + $0x41] sm:$0xff] %vm494_vm10, %v3246_v37 }
 0x207   :  { %v518_v41 = vld [vmem:[#allocation4 + $0x29] sm:$0xff]  ;;  %504 = vst.msk [vmem:[#allocation4 + $0x39] sm:$0xff] %vm494_vm10, %v3248_v39 }
 0x208   :  { %v510_v42 = vld [vmem:[#allocation4 + $0x28] sm:$0xff]  ;;  %v2676_v43 = vpack.i.bf16 %v519_v40, %v518_v41  ;;  %v511_v26 = vld [vmem:[#allocation4 + $0x30] sm:$0xff] }
 0x209   :  { %760 = vst.msk [vmem:[#allocation4 + $0x28] sm:$0x1] %vm491_vm9, %v2933_v6  ;;  %v526_v46 = vld [vmem:[#allocation4 + $0x2a] sm:$0xff] }
 0x20a   :  { %2677 = vrot.lane.b32.xlu0 %v2676_v43, %s2938_s7 }
 0x20d   :  { %v521_v44 = vld [vmem:[#allocation4 + $0x41] sm:$0xff] }
 0x20e   :  { %v529_v45 = vld [vmem:[#allocation4 + $0x42] sm:$0xff]  ;;  %v527_v47 = vld [vmem:[#allocation4 + $0x32] sm:$0xff]  ;;  %v528_v51 = vld [vmem:[#allocation4 + $0x3a] sm:$0xff] }
 0x20f   :  { %v520_v48 = vld [vmem:[#allocation4 + $0x39] sm:$0xff]  ;;  %761 = vst.msk [vmem:[#allocation4 + $0x49] sm:$0x1] %vm491_vm9, %v2933_v6  ;;  %v2686_v49 = vpack.i.bf16 %v527_v47, %v526_v46  ;;  %v2691_v52 = vpack.i.bf16 %v529_v45, %v528_v51 }
 0x210   :  { %v2681_v50 = vpack.i.bf16 %v521_v44, %v520_v48  ;;  %v512_v38 = vld [vmem:[#allocation4 + $0x38] sm:$0xff]  ;;  %v513_v40 = vld [vmem:[#allocation4 + $0x40] sm:$0xff] }
 0x211   :  { %2687 = vrot.lane.b32.xlu0 %v2686_v49, %s2939_s30  ;;  %v2879_v48 = vld [vmem:[%s3734_s8] sm:$0xff]  }
 0x212   :  { %2682 = vrot.lane.b32.xlu1 %v2681_v50, %s2938_s7  ;;  %2538 = vmatprep.subr.bf16.mxu0 %v2879_v48  ;;  %v2384_v49 = vld [vmem:[%s3735_s5] ss:$0 sm:$0xff] }
 0x213   :  { %2539 = vmatpush3.bf16.msra.mxu0 %v2879_v48  ;;  %v2385_v51 = vld [vmem:[%s3736_s6] ss:$0 sm:$0xff]  ;;  %s2941_s6 = smov 96  }
 0x216   :  { %2692 = vrot.lane.b32.xlu1 %v2691_v52, %s2939_s30 }
 0x26b   :  { %v2658_v53 = vpop.permute.xlu0 %2657 }
 0x26c   :  { %v2660_v54 = vunpack.i.h.bf16 %v2658_v53  ;;  %v2659_v55 = vunpack.i.l.bf16 %v2658_v53 }
 0x26e   :  { %v594_v1 = vsel %vm494_vm10, %v3222_v12, %v2659_v55  ;;  %v595_v2 = vsel %vm494_vm10, %v507_v61, %v2660_v54 }
 0x273   :  { %v2663_v56 = vpop.permute.xlu1 %2662 }
 0x274   :  { %v2668_v57 = vpop.permute.xlu0 %2667  ;;  %v2665_v62 = vunpack.i.h.bf16 %v2663_v56  ;;  %v2664_v0 = vunpack.i.l.bf16 %v2663_v56 }
 0x275   :  { %v2670_v58 = vunpack.i.h.bf16 %v2668_v57  ;;  %v2669_v59 = vunpack.i.l.bf16 %v2668_v57 }
 0x276   :  { %v597_v15 = vsel %vm494_vm10, %v509_v11, %v2665_v62  ;;  %v596_v16 = vsel %vm494_vm10, %v508_v10, %v2664_v0 }
 0x277   :  { %v602_v3 = vsel %vm384_vm8, %v594_v1, %v2669_v59  ;;  %v603_v4 = vsel %vm384_vm8, %v595_v2, %v2670_v58  ;;  %v2673_v7 = vpop.permute.xlu1 %2672 }
 0x278   :  { %v610_v8 = vpack.c.bf16 %v603_v4, %v602_v3  ;;  %v2675_v13 = vunpack.i.h.bf16 %v2673_v7  ;;  %v2674_v14 = vunpack.i.l.bf16 %v2673_v7  ;;  %v2880_v7 = vld [vmem:[%s3734_s8 + $0x8] sm:$0xff]  }
 0x279   :  { %2540 = vmatprep.subr.bf16.mxu0 %v2880_v7 }
 0x27a   :  { %2530 = vmatprep.mubr.msk.bf16.mxu1 %vm638_vm11, %v610_v8  ;;  %v604_v12 = vsel %vm384_vm8, %v596_v16, %v2674_v14  ;;  %v605_v17 = vsel %vm384_vm8, %v597_v15, %v2675_v13  ;;  %2541 = vmatpush3.bf16.msra.mxu0 %v2880_v7  ;;  %v2881_v8 = vld [vmem:[%s3734_s8 + $0x10] sm:$0xff]  }
 0x27b   :  { %v611_v18 = vpack.c.bf16 %v605_v17, %v604_v12  ;;  %2542 = vmatprep.subr.bf16.mxu0 %v2881_v8 }
 0x27c   :  { %v2678_v19 = vpop.permute.xlu0 %2677 }
 0x27d   :  { %2531 = vmatmul.mubr.msk.bf16.vlgmr.msra.gmra.mrb[0].mxu1 %vm638_vm11, %v611_v18  ;;  %v2680_v21 = vunpack.i.h.bf16 %v2678_v19  ;;  %v2679_v23 = vunpack.i.l.bf16 %v2678_v19 }
 0x27e   :  { %2543 = vmatpush3.bf16.msra.mxu0 %v2881_v8 }
 0x27f   :  { %v599_v29 = vsel %vm494_vm10, %v511_v26, %v2680_v21  ;;  %v598_v30 = vsel %vm494_vm10, %v510_v42, %v2679_v23 }
 0x283   :  { %v2688_v25 = vpop.permute.xlu0 %2687 }
 0x284   :  { %v2683_v24 = vpop.permute.xlu1 %2682  ;;  %v2690_v27 = vunpack.i.h.bf16 %v2688_v25  ;;  %v2689_v28 = vunpack.i.l.bf16 %v2688_v25 }
 0x285   :  { %v2685_v31 = vunpack.i.h.bf16 %v2683_v24  ;;  %v2684_v32 = vunpack.i.l.bf16 %v2683_v24 }
 0x286   :  { %v606_v33 = vsel %vm384_vm8, %v598_v30, %v2689_v28  ;;  %v607_v34 = vsel %vm384_vm8, %v599_v29, %v2690_v27 }
 0x287   :  { %v612_v35 = vpack.c.bf16 %v607_v34, %v606_v33  ;;  %v600_v44 = vsel %vm494_vm10, %v512_v38, %v2684_v32  ;;  %v601_v45 = vsel %vm494_vm10, %v513_v40, %v2685_v31 }
 0x288   :  { %v2693_v36 = vpop.permute.xlu1 %2692 }
 0x289   :  { %v2695_v41 = vunpack.i.h.bf16 %v2693_v36  ;;  %v2694_v43 = vunpack.i.l.bf16 %v2693_v36  ;;  %2534 = vmatprep.mubr.msk.bf16.mxu1 %vm638_vm11, %v612_v35 }
 0x28b   :  { %v608_v42 = vsel %vm384_vm8, %v600_v44, %v2694_v43  ;;  %v609_v46 = vsel %vm384_vm8, %v601_v45, %v2695_v41 }
 0x28c   :  { %v613_v47 = vpack.c.bf16 %v609_v46, %v608_v42 }
 0x28e   :  { %2535 = vmatmul.mubr.msk.bf16.gmra.mrb[4].mxu1 %vm638_vm11, %v613_v47 }
 0x350   :  { %v2532_v50 = vpop.f32.mrb[0].mxu1 }
 0x351   :  { %v725_v52 = vmul.f32 %v2532_v50, %v2384_v49  ;;  %v685_v53 = vpop.f32.mrb[1].mxu1 }
 0x352   :  { %v723_v54 = vmul.f32 %v2384_v49, %v685_v53  ;;  %v2533_v55 = vpop.f32.mrb[2].mxu1 }
 0x353   :  { %v740_v56 = vadd.f32 %v2385_v51, %v725_v52  ;;  %v726_v57 = vmul.f32 %v2533_v55, %v2384_v49  ;;  %v688_v58 = vpop.f32.mrb[3].mxu1 }
 0x354   :  { %v738_v59 = vadd.f32 %v2385_v51, %v723_v54  ;;  %v724_v61 = vmul.f32 %v2384_v49, %v688_v58 }
 0x355   :  { %v748_v62 = vmax.f32 %v740_v56, 0.0  ;;  %v741_v0 = vadd.f32 %v2385_v51, %v726_v57 }
 0x356   :  { %v746_v1 = vmax.f32 %v738_v59, 0.0  ;;  %v739_v2 = vadd.f32 %v2385_v51, %v724_v61 }
 0x357   :  { %758 = vst.msk [vmem:[#allocation4 + $0x11] sm:$0xff] %vm494_vm10, %v748_v62  ;;  %v749_v3 = vmax.f32 %v741_v0, 0.0 }
 0x358   :  { %756 = vst.msk [vmem:[#allocation4 + $0x1] sm:$0xff] %vm494_vm10, %v746_v1  ;;  %v747_v4 = vmax.f32 %v739_v2, 0.0 }
 0x359   :  { %759 = vst.msk [vmem:[#allocation4 + $0x19] sm:$0xff] %vm494_vm10, %v749_v3 }
 0x35a   :  { %757 = vst.msk [vmem:[#allocation4 + $0x9] sm:$0xff] %vm494_vm10, %v747_v4 }
 0x35e   :  { %v776_v13 = vld [vmem:[#allocation4 + $0x11] sm:$0xff] }
 0x35f   :  { %v3303_v10 = vld [vmem:[#allocation4] sm:$0xff] }
 0x360   :  { %v777_v14 = vld [vmem:[#allocation4 + $0x19] sm:$0xff]  ;;  %1021 = vst.msk [vmem:[#allocation4] sm:$0x1] %vm491_vm9, %v2933_v6  ;;  %v774_v18 = vld [vmem:[#allocation4 + $0x1] sm:$0xff] }
 0x361   :  { %v2536_v11 = vpop.f32.mrb[4].mxu1  ;;  %v785_v15 = vld [vmem:[#allocation4 + $0x1a] sm:$0xff]  ;;  %v2696_v17 = vpack.i.bf16 %v777_v14, %v776_v13  ;;  %v775_v19 = vld [vmem:[#allocation4 + $0x9] sm:$0xff]  ;;  %v784_v25 = vld [vmem:[#allocation4 + $0x12] sm:$0xff] }
 0x362   :  { %v729_v16 = vmul.f32 %v2536_v11, %v2384_v49  ;;  %v701_v12 = vpop.f32.mrb[5].mxu1  ;;  %1022 = vst.msk [vmem:[#allocation4 + $0x21] sm:$0x1] %vm491_vm9, %v2933_v6  ;;  %v2701_v24 = vpack.i.bf16 %v775_v19, %v774_v18  ;;  %v782_v29 = vld [vmem:[#allocation4 + $0x2] sm:$0xff]  ;;  %v783_v30 = vld [vmem:[#allocation4 + $0xa] sm:$0xff]  ;;  %v2711_v35 = vpack.i.bf16 %v785_v15, %v784_v25  ;;  %v769_v2 = vld [vmem:[#allocation4 + $0x18] sm:$0xff] }
 0x363   :  { %v727_v21 = vmul.f32 %v2384_v49, %v701_v12  ;;  %v2537_v23 = vpop.f32.mrb[6].mxu1  ;;  %2697 = vrot.lane.b32.xlu1 %v2696_v17, %s2938_s7  ;;  %v2706_v40 = vpack.i.bf16 %v783_v30, %v782_v29  ;;  %v768_v1 = vld [vmem:[#allocation4 + $0x10] sm:$0xff]  ;;  %v767_v13 = vld [vmem:[#allocation4 + $0x8] sm:$0xff] }
 0x364   :  { %v744_v26 = vadd.f32 %v2385_v51, %v729_v16  ;;  %v730_v27 = vmul.f32 %v2537_v23, %v2384_v49  ;;  %v704_v28 = vpop.f32.mrb[7].mxu1  ;;  %2702 = vrot.lane.b32.xlu0 %v2701_v24, %s2938_s7 }
 0x365   :  { %v742_v31 = vadd.f32 %v2385_v51, %v727_v21  ;;  %v728_v32 = vmul.f32 %v2384_v49, %v704_v28 }
 0x366   :  { %v752_v33 = vmax.f32 %v744_v26, 0.0  ;;  %v745_v34 = vadd.f32 %v2385_v51, %v730_v27 }
 0x367   :  { %v750_v36 = vmax.f32 %v742_v31, 0.0  ;;  %v743_v38 = vadd.f32 %v2385_v51, %v728_v32  ;;  %2712 = vrot.lane.b32.xlu1 %v2711_v35, %s2939_s30 }
 0x368   :  { %764 = vst.msk [vmem:[#allocation4 + $0x39] sm:$0xff] %vm494_vm10, %v752_v33  ;;  %v753_v41 = vmax.f32 %v745_v34, 0.0  ;;  %2707 = vrot.lane.b32.xlu0 %v2706_v40, %s2939_s30 }
 0x369   :  { %762 = vst.msk [vmem:[#allocation4 + $0x29] sm:$0xff] %vm494_vm10, %v750_v36  ;;  %v751_v43 = vmax.f32 %v743_v38, 0.0 }
 0x36a   :  { %765 = vst.msk [vmem:[#allocation4 + $0x41] sm:$0xff] %vm494_vm10, %v753_v41 }
 0x36b   :  { %763 = vst.msk [vmem:[#allocation4 + $0x31] sm:$0xff] %vm494_vm10, %v751_v43 }
 0x36f   :  { %v780_v45 = vld [vmem:[#allocation4 + $0x39] sm:$0xff] }
 0x370   :  { %v3317_v44 = vld [vmem:[#allocation4 + $0x28] sm:$0xff] }
 0x371   :  { %v781_v42 = vld [vmem:[#allocation4 + $0x41] sm:$0xff]  ;;  %1027 = vst.msk [vmem:[#allocation4 + $0x28] sm:$0x1] %vm491_vm9, %v2933_v6  ;;  %v778_v48 = vld [vmem:[#allocation4 + $0x29] sm:$0xff] }
 0x372   :  { %v789_v46 = vld [vmem:[#allocation4 + $0x42] sm:$0xff]  ;;  %v2716_v47 = vpack.i.bf16 %v781_v42, %v780_v45  ;;  %v779_v49 = vld [vmem:[#allocation4 + $0x31] sm:$0xff]  ;;  %v788_v51 = vld [vmem:[#allocation4 + $0x3a] sm:$0xff] }
 0x373   :  { %1028 = vst.msk [vmem:[#allocation4 + $0x49] sm:$0x1] %vm491_vm9, %v2933_v6  ;;  %v2721_v50 = vpack.i.bf16 %v779_v49, %v778_v48  ;;  %v786_v52 = vld [vmem:[#allocation4 + $0x2a] sm:$0xff]  ;;  %v787_v53 = vld [vmem:[#allocation4 + $0x32] sm:$0xff]  ;;  %v2731_v54 = vpack.i.bf16 %v789_v46, %v788_v51  ;;  %v773_v32 = vld [vmem:[#allocation4 + $0x40] sm:$0xff] }
 0x374   :  { %2717 = vrot.lane.b32.xlu1 %v2716_v47, %s2938_s7  ;;  %v2726_v55 = vpack.i.bf16 %v787_v53, %v786_v52  ;;  %v772_v31 = vld [vmem:[#allocation4 + $0x38] sm:$0xff]  ;;  %v771_v40 = vld [vmem:[#allocation4 + $0x30] sm:$0xff]  ;;  %v2393_v52 = vld [vmem:[%s3737_s1] ss:$0 sm:$0xff] }
 0x375   :  { %2722 = vrot.lane.b32.xlu0 %v2721_v50, %s2938_s7 }
 0x378   :  { %2732 = vrot.lane.b32.xlu1 %v2731_v54, %s2939_s30  ;;  %v2394_v54 = vld [vmem:[%s3700_s9] ss:$0 sm:$0xff] }
 0x379   :  { %2727 = vrot.lane.b32.xlu0 %v2726_v55, %s2939_s30 }
 0x3d5   :  { %v2698_v56 = vpop.permute.xlu1 %2697 }
 0x3d6   :  { %v2703_v57 = vpop.permute.xlu0 %2702  ;;  %v2700_v58 = vunpack.i.h.bf16 %v2698_v56  ;;  %v2699_v59 = vunpack.i.l.bf16 %v2698_v56 }
 0x3d7   :  { %v2705_v61 = vunpack.i.h.bf16 %v2703_v57  ;;  %v2704_v62 = vunpack.i.l.bf16 %v2703_v57 }
 0x3d8   :  { %v856_v8 = vsel %vm494_vm10, %v768_v1, %v2699_v59  ;;  %v857_v11 = vsel %vm494_vm10, %v769_v2, %v2700_v58 }
 0x3d9   :  { %v2713_v0 = vpop.permute.xlu1 %2712  ;;  %v854_v16 = vsel %vm494_vm10, %v3303_v10, %v2704_v62  ;;  %v855_v12 = vsel %vm494_vm10, %v767_v13, %v2705_v61 }
 0x3da   :  { %v2715_v3 = vunpack.i.h.bf16 %v2713_v0  ;;  %v2714_v4 = vunpack.i.l.bf16 %v2713_v0  ;;  %v2708_v7 = vpop.permute.xlu0 %2707 }
 0x3db   :  { %v2710_v14 = vunpack.i.h.bf16 %v2708_v7  ;;  %v2709_v15 = vunpack.i.l.bf16 %v2708_v7 }
 0x3dc   :  { %v864_v17 = vsel %vm384_vm8, %v856_v8, %v2714_v4  ;;  %v865_v18 = vsel %vm384_vm8, %v857_v11, %v2715_v3 }
 0x3dd   :  { %v862_v19 = vsel %vm384_vm8, %v854_v16, %v2709_v15  ;;  %v863_v21 = vsel %vm384_vm8, %v855_v12, %v2710_v14  ;;  %v871_v24 = vpack.c.bf16 %v865_v18, %v864_v17 }
 0x3de   :  { %v870_v23 = vpack.c.bf16 %v863_v21, %v862_v19 }
 0x3e0   :  { %2544 = vmatprep.mubr.msk.bf16.mxu0 %vm638_vm11, %v870_v23 }
 0x3e1   :  { %2545 = vmatmul.mubr.msk.bf16.vlgmr.msra.gmra.mrb[8].mxu0 %vm638_vm11, %v871_v24 }
 0x3e6   :  { %v2718_v25 = vpop.permute.xlu1 %2717 }
 0x3e7   :  { %v2723_v26 = vpop.permute.xlu0 %2722  ;;  %v2720_v27 = vunpack.i.h.bf16 %v2718_v25  ;;  %v2719_v10 = vunpack.i.l.bf16 %v2718_v25 }
 0x3e8   :  { %v2725_v28 = vunpack.i.h.bf16 %v2723_v26  ;;  %v2724_v29 = vunpack.i.l.bf16 %v2723_v26 }
 0x3e9   :  { %v860_v36 = vsel %vm494_vm10, %v772_v31, %v2719_v10  ;;  %v861_v38 = vsel %vm494_vm10, %v773_v32, %v2720_v27 }
 0x3ea   :  { %v2733_v30 = vpop.permute.xlu1 %2732  ;;  %v858_v45 = vsel %vm494_vm10, %v3317_v44, %v2724_v29  ;;  %v859_v42 = vsel %vm494_vm10, %v771_v40, %v2725_v28  ;;  %v2882_v44 = vld [vmem:[%s3701_s10] sm:$0xff]  }
 0x3eb   :  { %v2735_v33 = vunpack.i.h.bf16 %v2733_v30  ;;  %v2734_v34 = vunpack.i.l.bf16 %v2733_v30  ;;  %v2728_v35 = vpop.permute.xlu0 %2727  ;;  %2552 = vmatprep.subr.bf16.mxu1 %v2882_v44 }
 0x3ec   :  { %v2730_v41 = vunpack.i.h.bf16 %v2728_v35  ;;  %v2729_v43 = vunpack.i.l.bf16 %v2728_v35  ;;  %2553 = vmatpush3.bf16.msra.mxu1 %v2882_v44 }
 0x3ed   :  { %v868_v46 = vsel %vm384_vm8, %v860_v36, %v2734_v34  ;;  %v869_v47 = vsel %vm384_vm8, %v861_v38, %v2735_v33 }
 0x3ee   :  { %v866_v48 = vsel %vm384_vm8, %v858_v45, %v2729_v43  ;;  %v867_v49 = vsel %vm384_vm8, %v859_v42, %v2730_v41  ;;  %v873_v51 = vpack.c.bf16 %v869_v47, %v868_v46 }
 0x3ef   :  { %v872_v50 = vpack.c.bf16 %v867_v49, %v866_v48 }
 0x3f1   :  { %2548 = vmatprep.mubr.msk.bf16.mxu0 %vm638_vm11, %v872_v50 }
 0x3f2   :  { %2549 = vmatmul.mubr.msk.bf16.gmra.mrb[12].mxu0 %vm638_vm11, %v873_v51 }
 0x4b4   :  { %v2546_v53 = vpop.f32.mrb[8].mxu0 }
 0x4b5   :  { %v984_v55 = vmul.f32 %v2546_v53, %v2393_v52  ;;  %v944_v56 = vpop.f32.mrb[9].mxu0 }
 0x4b6   :  { %v982_v57 = vmul.f32 %v2393_v52, %v944_v56  ;;  %v2547_v58 = vpop.f32.mrb[10].mxu0 }
 0x4b7   :  { %v999_v59 = vadd.f32 %v2394_v54, %v984_v55  ;;  %v985_v61 = vmul.f32 %v2547_v58, %v2393_v52  ;;  %v947_v62 = vpop.f32.mrb[11].mxu0 }
 0x4b8   :  { %v997_v0 = vadd.f32 %v2394_v54, %v982_v57  ;;  %v983_v1 = vmul.f32 %v2393_v52, %v947_v62 }
 0x4b9   :  { %v1007_v2 = vadd.f32 %v999_v59, %v3218_v9  ;;  %v1000_v3 = vadd.f32 %v2394_v54, %v985_v61  ;;  %v2883_v9 = vld [vmem:[%s3701_s10 + $0x8] sm:$0xff]  }
 0x4ba   :  { %v1005_v4 = vadd.f32 %v997_v0, %v3207_v63  ;;  %v998_v7 = vadd.f32 %v2394_v54, %v983_v1  ;;  %2554 = vmatprep.subr.bf16.mxu1 %v2883_v9 }
 0x4bb   :  { %v1015_v8 = vmax.f32 %v1007_v2, 0.0  ;;  %v1008_v11 = vadd.f32 %v1000_v3, %v3213_v5  ;;  %2555 = vmatpush3.bf16.msra.mxu1 %v2883_v9 }
 0x4bc   :  { %v1013_v13 = vmax.f32 %v1005_v4, 0.0  ;;  %v1006_v14 = vadd.f32 %v998_v7, %v3202_v60  ;;  %v2884_v60 = vld [vmem:[%s3701_s10 + $0x10] sm:$0xff]  }
 0x4bd   :  { %1025 = vst.msk [vmem:[#allocation4 + $0x11] sm:$0xff] %vm494_vm10, %v1015_v8  ;;  %v1016_v15 = vmax.f32 %v1008_v11, 0.0  ;;  %2556 = vmatprep.subr.bf16.mxu1 %v2884_v60 }
 0x4be   :  { %1023 = vst.msk [vmem:[#allocation4 + $0x1] sm:$0xff] %vm494_vm10, %v1013_v13  ;;  %v1014_v16 = vmax.f32 %v1006_v14, 0.0 }
 0x4bf   :  { %1026 = vst.msk [vmem:[#allocation4 + $0x19] sm:$0xff] %vm494_vm10, %v1016_v15  ;;  %2557 = vmatpush3.bf16.msra.mxu1 %v2884_v60 }
 0x4c0   :  { %1024 = vst.msk [vmem:[#allocation4 + $0x9] sm:$0xff] %vm494_vm10, %v1014_v16 }
 0x4c4   :  { %v1043_v19 = vld [vmem:[#allocation4 + $0x11] sm:$0xff] }
 0x4c5   :  { %v2550_v63 = vpop.f32.mrb[12].mxu0  ;;  %v1041_v27 = vld [vmem:[#allocation4 + $0x1] sm:$0xff] }
 0x4c6   :  { %v988_v5 = vmul.f32 %v2550_v63, %v2393_v52  ;;  %v960_v12 = vpop.f32.mrb[13].mxu0  ;;  %v1044_v21 = vld [vmem:[#allocation4 + $0x19] sm:$0xff] }
 0x4c7   :  { %v986_v17 = vmul.f32 %v2393_v52, %v960_v12  ;;  %v2551_v18 = vpop.f32.mrb[14].mxu0  ;;  %v2736_v26 = vpack.i.bf16 %v1044_v21, %v1043_v19  ;;  %v1042_v10 = vld [vmem:[#allocation4 + $0x9] sm:$0xff]  ;;  %v1051_v31 = vld [vmem:[#allocation4 + $0x12] sm:$0xff]  ;;  %v1052_v32 = vld [vmem:[#allocation4 + $0x1a] sm:$0xff] }
 0x4c8   :  { %v1003_v23 = vadd.f32 %v2394_v54, %v988_v5  ;;  %v989_v24 = vmul.f32 %v2551_v18, %v2393_v52  ;;  %v963_v25 = vpop.f32.mrb[15].mxu0  ;;  %v2741_v30 = vpack.i.bf16 %v1042_v10, %v1041_v27  ;;  %v1049_v35 = vld [vmem:[#allocation4 + $0x2] sm:$0xff]  ;;  %v1050_v36 = vld [vmem:[#allocation4 + $0xa] sm:$0xff]  ;;  %v2751_v45 = vpack.i.bf16 %v1052_v32, %v1051_v31  ;;  %v1036_v3 = vld [vmem:[#allocation4 + $0x18] sm:$0xff] }
 0x4c9   :  { %v1001_v28 = vadd.f32 %v2394_v54, %v986_v17  ;;  %v987_v29 = vmul.f32 %v2393_v52, %v963_v25  ;;  %2737 = vrot.lane.b32.xlu1 %v2736_v26, %s2938_s7  ;;  %v2746_v47 = vpack.i.bf16 %v1050_v36, %v1049_v35  ;;  %v1035_v2 = vld [vmem:[#allocation4 + $0x10] sm:$0xff]  ;;  %v1033_v14 = vld [vmem:[#allocation4] sm:$0xff]  ;;  %v1034_v15 = vld [vmem:[#allocation4 + $0x8] sm:$0xff] }
 0x4ca   :  { %v1011_v33 = vadd.f32 %v1003_v23, %v3248_v39  ;;  %v1004_v34 = vadd.f32 %v2394_v54, %v989_v24  ;;  %2742 = vrot.lane.b32.xlu0 %v2741_v30, %s2938_s7 }
 0x4cb   :  { %v1009_v38 = vadd.f32 %v1001_v28, %v3234_v22  ;;  %v1002_v40 = vadd.f32 %v2394_v54, %v987_v29 }
 0x4cc   :  { %v1019_v41 = vmax.f32 %v1011_v33, 0.0  ;;  %v1012_v43 = vadd.f32 %v1004_v34, %v3246_v37 }
 0x4cd   :  { %v1017_v42 = vmax.f32 %v1009_v38, 0.0  ;;  %v1010_v46 = vadd.f32 %v1002_v40, %v3232_v20  ;;  %2752 = vrot.lane.b32.xlu1 %v2751_v45, %s2939_s30 }
 0x4ce   :  { %1031 = vst.msk [vmem:[#allocation4 + $0x39] sm:$0xff] %vm494_vm10, %v1019_v41  ;;  %v1020_v39 = vmax.f32 %v1012_v43, 0.0  ;;  %2747 = vrot.lane.b32.xlu0 %v2746_v47, %s2939_s30 }
 0x4cf   :  { %1029 = vst.msk [vmem:[#allocation4 + $0x29] sm:$0xff] %vm494_vm10, %v1017_v42  ;;  %v1018_v48 = vmax.f32 %v1010_v46, 0.0 }
 0x4d0   :  { %1032 = vst.msk [vmem:[#allocation4 + $0x41] sm:$0xff] %vm494_vm10, %v1020_v39 }
 0x4d1   :  { %1030 = vst.msk [vmem:[#allocation4 + $0x31] sm:$0xff] %vm494_vm10, %v1018_v48 }
 0x4d5   :  { %v1047_v22 = vld [vmem:[#allocation4 + $0x39] sm:$0xff] }
 0x4d6   :  { %v1045_v50 = vld [vmem:[#allocation4 + $0x29] sm:$0xff] }
 0x4d7   :  { %v1048_v37 = vld [vmem:[#allocation4 + $0x41] sm:$0xff] }
 0x4d8   :  { %v2756_v49 = vpack.i.bf16 %v1048_v37, %v1047_v22  ;;  %v1046_v20 = vld [vmem:[#allocation4 + $0x31] sm:$0xff]  ;;  %v1055_v44 = vld [vmem:[#allocation4 + $0x3a] sm:$0xff]  ;;  %v1056_v52 = vld [vmem:[#allocation4 + $0x42] sm:$0xff] }
 0x4d9   :  { %v2761_v51 = vpack.i.bf16 %v1046_v20, %v1045_v50  ;;  %v1053_v53 = vld [vmem:[#allocation4 + $0x2a] sm:$0xff]  ;;  %v1054_v54 = vld [vmem:[#allocation4 + $0x32] sm:$0xff]  ;;  %v2771_v55 = vpack.i.bf16 %v1056_v52, %v1055_v44  ;;  %v1040_v30 = vld [vmem:[#allocation4 + $0x40] sm:$0xff] }
 0x4da   :  { %2757 = vrot.lane.b32.xlu1 %v2756_v49, %s2938_s7  ;;  %v2766_v56 = vpack.i.bf16 %v1054_v54, %v1053_v53  ;;  %v1039_v29 = vld [vmem:[#allocation4 + $0x38] sm:$0xff]  ;;  %v1037_v36 = vld [vmem:[#allocation4 + $0x28] sm:$0xff]  ;;  %v1038_v38 = vld [vmem:[#allocation4 + $0x30] sm:$0xff] }
 0x4db   :  { %2762 = vrot.lane.b32.xlu0 %v2761_v51, %s2938_s7  ;;  %v2885_v37 = vld [vmem:[%s3704_s13] sm:$0xff]   ;;  %v2886_v49 = vld [vmem:[%s3704_s13 + $0x8] sm:$0xff]   ;;  %v2887_v50 = vld [vmem:[%s3704_s13 + $0x10] sm:$0xff]  }
 0x4dc   :  { %2566 = vmatprep.subr.bf16.mxu1 %v2885_v37  ;;  %v2888_v20 = vld [vmem:[%s3704_s13 + $0x18] sm:$0xff]   ;;  %v2402_v51 = vld [vmem:[%s3702_s11] ss:$0 sm:$0xff] }
 0x4dd   :  { %v2403_v52 = vld [vmem:[%s3703_s12] ss:$0 sm:$0xff] }
 0x4de   :  { %2772 = vrot.lane.b32.xlu1 %v2771_v55, %s2939_s30 }
 0x4df   :  { %2767 = vrot.lane.b32.xlu0 %v2766_v56, %s2939_s30 }
 0x53b   :  { %v2738_v57 = vpop.permute.xlu1 %2737 }
 0x53c   :  { %v2743_v58 = vpop.permute.xlu0 %2742  ;;  %v2740_v59 = vunpack.i.h.bf16 %v2738_v57  ;;  %v2739_v61 = vunpack.i.l.bf16 %v2738_v57 }
 0x53d   :  { %v2745_v62 = vunpack.i.h.bf16 %v2743_v58  ;;  %v2744_v0 = vunpack.i.l.bf16 %v2743_v58 }
 0x53e   :  { %v1124_v11 = vsel %vm494_vm10, %v1036_v3, %v2740_v59  ;;  %v1123_v13 = vsel %vm494_vm10, %v1035_v2, %v2739_v61 }
 0x53f   :  { %v2753_v1 = vpop.permute.xlu1 %2752  ;;  %v1122_v60 = vsel %vm494_vm10, %v1034_v15, %v2745_v62  ;;  %v1121_v63 = vsel %vm494_vm10, %v1033_v14, %v2744_v0 }
 0x540   :  { %v2755_v4 = vunpack.i.h.bf16 %v2753_v1  ;;  %v2754_v7 = vunpack.i.l.bf16 %v2753_v1  ;;  %v2748_v8 = vpop.permute.xlu0 %2747 }
 0x541   :  { %v2750_v16 = vunpack.i.h.bf16 %v2748_v8  ;;  %v2749_v9 = vunpack.i.l.bf16 %v2748_v8  ;;  %v2889_v8 = vld [vmem:[%s3704_s13 + $0x20] sm:$0xff]  }
 0x542   :  { %v1131_v5 = vsel %vm384_vm8, %v1123_v13, %v2754_v7  ;;  %v1132_v12 = vsel %vm384_vm8, %v1124_v11, %v2755_v4  ;;  %v2890_v11 = vld [vmem:[%s3704_s13 + $0x28] sm:$0xff]   ;;  %s2940_s13 = smov 64  }
 0x543   :  { %v1129_v17 = vsel %vm384_vm8, %v1121_v63, %v2749_v9  ;;  %v1130_v18 = vsel %vm384_vm8, %v1122_v60, %v2750_v16  ;;  %v1138_v21 = vpack.c.bf16 %v1132_v12, %v1131_v5 }
 0x544   :  { %v1137_v19 = vpack.c.bf16 %v1130_v18, %v1129_v17 }
 0x546   :  { %2558 = vmatprep.mubr.msk.bf16.mxu1 %vm638_vm11, %v1137_v19 }
 0x547   :  { %2559 = vmatmul.mubr.msk.bf16.vlgmr.msra.gmra.mrb[8].mxu1 %vm638_vm11, %v1138_v21 }
 0x548   :  { %2567 = vmatpush3.bf16.msra.mxu1 %v2885_v37 }
 0x549   :  { %2568 = vmatprep.subr.bf16.mxu1 %v2886_v49 }
 0x54c   :  { %v2758_v23 = vpop.permute.xlu1 %2757  ;;  %2569 = vmatpush3.bf16.msra.mxu1 %v2886_v49 }
 0x54d   :  { %v2763_v24 = vpop.permute.xlu0 %2762  ;;  %v2760_v25 = vunpack.i.h.bf16 %v2758_v23  ;;  %v2759_v26 = vunpack.i.l.bf16 %v2758_v23  ;;  %2570 = vmatprep.subr.bf16.mxu1 %v2887_v50 }
 0x54e   :  { %v2765_v27 = vunpack.i.h.bf16 %v2763_v24  ;;  %v2764_v10 = vunpack.i.l.bf16 %v2763_v24 }
 0x54f   :  { %v1127_v34 = vsel %vm494_vm10, %v1039_v29, %v2759_v26  ;;  %v1128_v35 = vsel %vm494_vm10, %v1040_v30, %v2760_v25 }
 0x550   :  { %v2773_v28 = vpop.permute.xlu1 %2772  ;;  %v1125_v43 = vsel %vm494_vm10, %v1037_v36, %v2764_v10  ;;  %v1126_v45 = vsel %vm494_vm10, %v1038_v38, %v2765_v27  ;;  %2571 = vmatpush3.bf16.msra.mxu1 %v2887_v50 }
 0x551   :  { %v2775_v31 = vunpack.i.h.bf16 %v2773_v28  ;;  %v2774_v32 = vunpack.i.l.bf16 %v2773_v28  ;;  %v2768_v33 = vpop.permute.xlu0 %2767  ;;  %2572 = vmatprep.subr.bf16.mxu1 %v2888_v20 }
 0x552   :  { %v2770_v40 = vunpack.i.h.bf16 %v2768_v33  ;;  %v2769_v41 = vunpack.i.l.bf16 %v2768_v33 }
 0x553   :  { %v1135_v42 = vsel %vm384_vm8, %v1127_v34, %v2774_v32  ;;  %v1136_v46 = vsel %vm384_vm8, %v1128_v35, %v2775_v31 }
 0x554   :  { %v1133_v47 = vsel %vm384_vm8, %v1125_v43, %v2769_v41  ;;  %v1134_v39 = vsel %vm384_vm8, %v1126_v45, %v2770_v40  ;;  %v1140_v22 = vpack.c.bf16 %v1136_v46, %v1135_v42  ;;  %2573 = vmatpush3.bf16.msra.mxu1 %v2888_v20 }
 0x555   :  { %v1139_v48 = vpack.c.bf16 %v1134_v39, %v1133_v47  ;;  %2574 = vmatprep.subr.bf16.mxu1 %v2889_v8 }
 0x557   :  { %2562 = vmatprep.mubr.msk.bf16.mxu1 %vm638_vm11, %v1139_v48 }
 0x558   :  { %2563 = vmatmul.mubr.msk.bf16.gmra.mrb[12].mxu1 %vm638_vm11, %v1140_v22 }
 0x559   :  { %2575 = vmatpush3.bf16.msra.mxu1 %v2889_v8 }
 0x55a   :  { %2576 = vmatprep.subr.bf16.mxu1 %v2890_v11 }
 0x55d   :  { %2577 = vmatpush3.bf16.msra.mxu1 %v2890_v11 }
 0x61a   :  { %v2560_v44 = vpop.f32.mrb[8].mxu1 }
 0x61b   :  { %v1251_v53 = vmul.f32 %v2560_v44, %v2402_v51  ;;  %v1211_v54 = vpop.f32.mrb[9].mxu1 }
 0x61c   :  { %v1249_v55 = vmul.f32 %v2402_v51, %v1211_v54  ;;  %v2561_v56 = vpop.f32.mrb[10].mxu1 }
 0x61d   :  { %v3426_v57 = vadd.f32 %v2403_v52, %v1251_v53  ;;  %v1252_v58 = vmul.f32 %v2561_v56, %v2402_v51  ;;  %v1214_v59 = vpop.f32.mrb[11].mxu1 }
 0x61e   :  { %v3428_v61 = vadd.f32 %v2403_v52, %v1249_v55  ;;  %v1250_v62 = vmul.f32 %v2402_v51, %v1214_v59 }
 0x61f   :  { %v1274_v0 = vmax.f32 %v3426_v57, 0.0  ;;  %v3431_v1 = vadd.f32 %v2403_v52, %v1252_v58 }
 0x620   :  { %v1272_v2 = vmax.f32 %v3428_v61, 0.0  ;;  %v3434_v3 = vadd.f32 %v2403_v52, %v1250_v62 }
 0x621   :  { %1284 = vst.msk [vmem:[#allocation5 + $0x11] sm:$0xff] %vm384_vm8, %v1274_v0  ;;  %v1275_v4 = vmax.f32 %v3431_v1, 0.0 }
 0x622   :  { %1282 = vst.msk [vmem:[#allocation5 + $0x1] sm:$0xff] %vm384_vm8, %v1272_v2  ;;  %v1273_v7 = vmax.f32 %v3434_v3, 0.0 }
 0x623   :  { %1285 = vst.msk [vmem:[#allocation5 + $0x19] sm:$0xff] %vm384_vm8, %v1275_v4 }
 0x624   :  { %1283 = vst.msk [vmem:[#allocation5 + $0x9] sm:$0xff] %vm384_vm8, %v1273_v7 }
 0x628   :  { %v1303_v15 = vld [vmem:[#allocation5 + $0x11] sm:$0xff] }
 0x629   :  { %v3448_v13 = vld [vmem:[#allocation5] sm:$0xff] }
 0x62a   :  { %v1304_v16 = vld [vmem:[#allocation5 + $0x19] sm:$0xff]  ;;  %1606 = vst.msk [vmem:[#allocation5] sm:$0x1] %vm382_vm7, %v2933_v6  ;;  %v1301_v12 = vld [vmem:[#allocation5 + $0x1] sm:$0xff] }
 0x62b   :  { %v2564_v14 = vpop.f32.mrb[12].mxu1  ;;  %v1312_v9 = vld [vmem:[#allocation5 + $0x1a] sm:$0xff]  ;;  %v2776_v5 = vpack.i.bf16 %v1304_v16, %v1303_v15  ;;  %v1302_v17 = vld [vmem:[#allocation5 + $0x9] sm:$0xff]  ;;  %v1311_v23 = vld [vmem:[#allocation5 + $0x12] sm:$0xff] }
 0x62c   :  { %v1255_v60 = vmul.f32 %v2564_v14, %v2402_v51  ;;  %v1227_v63 = vpop.f32.mrb[13].mxu1  ;;  %1607 = vst.msk [vmem:[#allocation5 + $0x21] sm:$0x1] %vm382_vm7, %v2933_v6  ;;  %v2781_v21 = vpack.i.bf16 %v1302_v17, %v1301_v12  ;;  %v1309_v27 = vld [vmem:[#allocation5 + $0x2] sm:$0xff]  ;;  %v1310_v10 = vld [vmem:[#allocation5 + $0xa] sm:$0xff]  ;;  %v2791_v32 = vpack.i.bf16 %v1312_v9, %v1311_v23  ;;  %v1296_v58 = vld [vmem:[#allocation5 + $0x18] sm:$0xff] }
 0x62d   :  { %v1253_v18 = vmul.f32 %v2402_v51, %v1227_v63  ;;  %v2565_v19 = vpop.f32.mrb[14].mxu1  ;;  %2777 = vrot.lane.b32.xlu1 %v2776_v5, %s2939_s30  ;;  %v2786_v35 = vpack.i.bf16 %v1310_v10, %v1309_v27  ;;  %v1295_v56 = vld [vmem:[#allocation5 + $0x10] sm:$0xff] }
 0x62e   :  { %v1270_v24 = vadd.f32 %v2403_v52, %v1255_v60  ;;  %v1256_v25 = vmul.f32 %v2565_v19, %v2402_v51  ;;  %v1230_v26 = vpop.f32.mrb[15].mxu1  ;;  %2782 = vrot.lane.b32.xlu0 %v2781_v21, %s2939_s30 }
 0x62f   :  { %v1268_v28 = vadd.f32 %v2403_v52, %v1253_v18  ;;  %v1254_v29 = vmul.f32 %v2402_v51, %v1230_v26 }
 0x630   :  { %v1278_v30 = vmax.f32 %v1270_v24, 0.0  ;;  %v1271_v31 = vadd.f32 %v2403_v52, %v1256_v25 }
 0x631   :  { %v1276_v33 = vmax.f32 %v1268_v28, 0.0  ;;  %v1269_v34 = vadd.f32 %v2403_v52, %v1254_v29  ;;  %2792 = vrot.lane.b32.xlu1 %v2791_v32, %s2940_s13 }
 0x632   :  { %1291 = vst.msk [vmem:[#allocation5 + $0x39] sm:$0xff] %vm384_vm8, %v1278_v30  ;;  %v1279_v36 = vmax.f32 %v1271_v31, 0.0  ;;  %2787 = vrot.lane.b32.xlu0 %v2786_v35, %s2940_s13 }
 0x633   :  { %1289 = vst.msk [vmem:[#allocation5 + $0x29] sm:$0xff] %vm384_vm8, %v1276_v33  ;;  %v1277_v38 = vmax.f32 %v1269_v34, 0.0 }
 0x634   :  { %1292 = vst.msk [vmem:[#allocation5 + $0x41] sm:$0xff] %vm384_vm8, %v1279_v36 }
 0x635   :  { %1290 = vst.msk [vmem:[#allocation5 + $0x31] sm:$0xff] %vm384_vm8, %v1277_v38 }
 0x639   :  { %v1307_v41 = vld [vmem:[#allocation5 + $0x39] sm:$0xff] }
 0x63a   :  { %v3462_v40 = vld [vmem:[#allocation5 + $0x28] sm:$0xff] }
 0x63b   :  { %v1308_v43 = vld [vmem:[#allocation5 + $0x41] sm:$0xff]  ;;  %1612 = vst.msk [vmem:[#allocation5 + $0x28] sm:$0x1] %vm382_vm7, %v2933_v6  ;;  %v1305_v46 = vld [vmem:[#allocation5 + $0x29] sm:$0xff] }
 0x63c   :  { %v1316_v45 = vld [vmem:[#allocation5 + $0x42] sm:$0xff]  ;;  %v2796_v42 = vpack.i.bf16 %v1308_v43, %v1307_v41  ;;  %v1306_v47 = vld [vmem:[#allocation5 + $0x31] sm:$0xff]  ;;  %v1315_v48 = vld [vmem:[#allocation5 + $0x3a] sm:$0xff] }
 0x63d   :  { %1613 = vst.msk [vmem:[#allocation5 + $0x49] sm:$0x1] %vm382_vm7, %v2933_v6  ;;  %v2801_v39 = vpack.i.bf16 %v1306_v47, %v1305_v46  ;;  %v1313_v22 = vld [vmem:[#allocation5 + $0x2a] sm:$0xff]  ;;  %v1314_v37 = vld [vmem:[#allocation5 + $0x32] sm:$0xff]  ;;  %v2811_v49 = vpack.i.bf16 %v1316_v45, %v1315_v48  ;;  %v1300_v21 = vld [vmem:[#allocation5 + $0x40] sm:$0xff] }
 0x63e   :  { %2797 = vrot.lane.b32.xlu1 %v2796_v42, %s2939_s30  ;;  %v2806_v50 = vpack.i.bf16 %v1314_v37, %v1313_v22  ;;  %v1299_v19 = vld [vmem:[#allocation5 + $0x38] sm:$0xff]  ;;  %v1298_v10 = vld [vmem:[#allocation5 + $0x30] sm:$0xff]  ;;  %v2893_v43 = vld [vmem:[%s3707_s16 + $0x10] sm:$0xff]  }
 0x63f   :  { %2802 = vrot.lane.b32.xlu0 %v2801_v39, %s2939_s30  ;;  %v2892_v41 = vld [vmem:[%s3707_s16 + $0x8] sm:$0xff]   ;;  %v2894_v45 = vld [vmem:[%s3707_s16 + $0x18] sm:$0xff]   ;;  %v2414_v46 = vld [vmem:[%s3705_s14] ss:$0 sm:$0xff] }
 0x640   :  { %v2415_v48 = vld [vmem:[%s3706_s15] ss:$0 sm:$0xff] }
 0x642   :  { %2812 = vrot.lane.b32.xlu1 %v2811_v49, %s2940_s13 }
 0x643   :  { %2807 = vrot.lane.b32.xlu0 %v2806_v50, %s2940_s13 }
 0x646   :  { %1568 = vrot.lane.b32.xlu1 %v3434_v3, %s2941_s6 }
 0x647   :  { %1566 = vrot.lane.b32.xlu0 %v3428_v61, %s2941_s6 }
 0x64a   :  { %1572 = vrot.lane.b32.xlu1 %v3431_v1, %s2941_s6  ;;  %v1294_v1 = vld [vmem:[#allocation5 + $0x8] sm:$0xff] }
 0x64b   :  { %1570 = vrot.lane.b32.xlu0 %v3426_v57, %s2941_s6 }
 0x64e   :  { %1576 = vrot.lane.b32.xlu1 %v1269_v34, %s2941_s6 }
 0x64f   :  { %1574 = vrot.lane.b32.xlu0 %v1268_v28, %s2941_s6 }
 0x652   :  { %1580 = vrot.lane.b32.xlu1 %v1271_v31, %s2941_s6 }
 0x653   :  { %1578 = vrot.lane.b32.xlu0 %v1270_v24, %s2941_s6 }
 0x69f   :  { %v2778_v20 = vpop.permute.xlu1 %2777 }
 0x6a0   :  { %v2783_v51 = vpop.permute.xlu0 %2782  ;;  %v2780_v44 = vunpack.i.h.bf16 %v2778_v20  ;;  %v2779_v52 = vunpack.i.l.bf16 %v2778_v20 }
 0x6a1   :  { %v2785_v53 = vunpack.i.h.bf16 %v2783_v51  ;;  %v2784_v54 = vunpack.i.l.bf16 %v2783_v51 }
 0x6a2   :  { %v1384_v0 = vsel %vm384_vm8, %v1296_v58, %v2780_v44  ;;  %v1383_v57 = vsel %vm384_vm8, %v1295_v56, %v2779_v52 }
 0x6a3   :  { %v2793_v55 = vpop.permute.xlu1 %2792  ;;  %v1382_v4 = vsel %vm384_vm8, %v1294_v1, %v2785_v53  ;;  %v1381_v7 = vsel %vm384_vm8, %v3448_v13, %v2784_v54 }
 0x6a4   :  { %v2795_v59 = vunpack.i.h.bf16 %v2793_v55  ;;  %v2794_v61 = vunpack.i.l.bf16 %v2793_v55  ;;  %v2788_v62 = vpop.permute.xlu0 %2787 }
 0x6a5   :  { %v2790_v2 = vunpack.i.h.bf16 %v2788_v62  ;;  %v2789_v3 = vunpack.i.l.bf16 %v2788_v62 }
 0x6a6   :  { %v1392_v8 = vsel %vm1389_vm12, %v1383_v57, %v2794_v61  ;;  %v1393_v11 = vsel %vm1389_vm12, %v1384_v0, %v2795_v59 }
 0x6a7   :  { %v1390_v14 = vsel %vm1389_vm12, %v1381_v7, %v2789_v3  ;;  %v1391_v15 = vsel %vm1389_vm12, %v1382_v4, %v2790_v2  ;;  %v1399_v9 = vpack.c.bf16 %v1393_v11, %v1392_v8  ;;  %v2895_v4 = vld [vmem:[%s3707_s16 + $0x20] sm:$0xff]   ;;  %v2896_v8 = vld [vmem:[%s3707_s16 + $0x28] sm:$0xff]  }
 0x6a8   :  { %v1398_v16 = vpack.c.bf16 %v1391_v15, %v1390_v14 }
 0x6aa   :  { %2578 = vmatprep.mubr.msk.bf16.mxu1 %vm1450_vm13, %v1398_v16 }
 0x6ab   :  { %2579 = vmatmul.mubr.msk.bf16.vlgmr.msra.gmra.mrb[16].mxu1 %vm1450_vm13, %v1399_v9 }
 0x6b0   :  { %v2798_v60 = vpop.permute.xlu1 %2797 }
 0x6b1   :  { %v2803_v63 = vpop.permute.xlu0 %2802  ;;  %v2800_v5 = vunpack.i.h.bf16 %v2798_v60  ;;  %v2799_v12 = vunpack.i.l.bf16 %v2798_v60 }
 0x6b2   :  { %v2805_v13 = vunpack.i.h.bf16 %v2803_v63  ;;  %v2804_v17 = vunpack.i.l.bf16 %v2803_v63 }
 0x6b3   :  { %v1387_v26 = vsel %vm384_vm8, %v1299_v19, %v2799_v12  ;;  %v1388_v27 = vsel %vm384_vm8, %v1300_v21, %v2800_v5 }
 0x6b4   :  { %v2813_v18 = vpop.permute.xlu1 %2812  ;;  %v1385_v30 = vsel %vm384_vm8, %v3462_v40, %v2804_v17  ;;  %v1386_v31 = vsel %vm384_vm8, %v1298_v10, %v2805_v13  ;;  %v2891_v40 = vld [vmem:[%s3707_s16] sm:$0xff]  }
 0x6b5   :  { %v2815_v23 = vunpack.i.h.bf16 %v2813_v18  ;;  %v2814_v24 = vunpack.i.l.bf16 %v2813_v18  ;;  %v2808_v25 = vpop.permute.xlu0 %2807  ;;  %2586 = vmatprep.subr.bf16.mxu1 %v2891_v40 }
 0x6b6   :  { %v2810_v28 = vunpack.i.h.bf16 %v2808_v25  ;;  %v2809_v29 = vunpack.i.l.bf16 %v2808_v25  ;;  %2587 = vmatpush3.bf16.msra.mxu1 %v2891_v40 }
 0x6b7   :  { %v1396_v32 = vsel %vm1389_vm12, %v1387_v26, %v2814_v24  ;;  %v1397_v33 = vsel %vm1389_vm12, %v1388_v27, %v2815_v23  ;;  %2588 = vmatprep.subr.bf16.mxu1 %v2892_v41 }
 0x6b8   :  { %v1394_v34 = vsel %vm1389_vm12, %v1385_v30, %v2809_v29  ;;  %v1395_v35 = vsel %vm1389_vm12, %v1386_v31, %v2810_v28  ;;  %v1401_v38 = vpack.c.bf16 %v1397_v33, %v1396_v32  ;;  %v1569_v47 = vpop.permute.xlu1 %1568 }
 0x6b9   :  { %v1400_v36 = vpack.c.bf16 %v1395_v35, %v1394_v34  ;;  %v1567_v42 = vpop.permute.xlu0 %1566 }
 0x6ba   :  { %2589 = vmatpush3.bf16.msra.mxu1 %v2892_v41 }
 0x6bb   :  { %2582 = vmatprep.mubr.msk.bf16.mxu1 %vm1450_vm13, %v1400_v36  ;;  %2590 = vmatprep.subr.bf16.mxu1 %v2893_v43 }
 0x6bc   :  { %2583 = vmatmul.mubr.msk.bf16.gmra.mrb[20].mxu1 %vm1450_vm13, %v1401_v38  ;;  %v1573_v58 = vpop.permute.xlu1 %1572 }
 0x6bd   :  { %v1571_v52 = vpop.permute.xlu0 %1570 }
 0x6be   :  { %2591 = vmatpush3.bf16.msra.mxu1 %v2893_v43 }
 0x6bf   :  { %2592 = vmatprep.subr.bf16.mxu1 %v2894_v45 }
 0x6c0   :  { %v1577_v11 = vpop.permute.xlu1 %1576 }
 0x6c1   :  { %v1575_v7 = vpop.permute.xlu0 %1574 }
 0x6c2   :  { %2593 = vmatpush3.bf16.msra.mxu1 %v2894_v45 }
 0x6c3   :  { %2594 = vmatprep.subr.bf16.mxu1 %v2895_v4 }
 0x6c4   :  { %v1581_v32 = vpop.permute.xlu1 %1580 }
 0x6c5   :  { %v1579_v23 = vpop.permute.xlu0 %1578 }
 0x6c6   :  { %2595 = vmatpush3.bf16.msra.mxu1 %v2895_v4 }
 0x6c7   :  { %2596 = vmatprep.subr.bf16.mxu1 %v2896_v8 }
 0x6ca   :  { %2597 = vmatpush3.bf16.msra.mxu1 %v2896_v8 }
 0x77e   :  { %v2580_v39 = vpop.f32.mrb[16].mxu1 }
 0x77f   :  { %v1537_v22 = vmul.f32 %v2580_v39, %v2414_v46  ;;  %v1497_v37 = vpop.f32.mrb[17].mxu1 }
 0x780   :  { %v1535_v49 = vmul.f32 %v2414_v46, %v1497_v37  ;;  %v2581_v50 = vpop.f32.mrb[18].mxu1 }
 0x781   :  { %v1552_v20 = vadd.f32 %v2415_v48, %v1537_v22  ;;  %v1538_v51 = vmul.f32 %v2581_v50, %v2414_v46  ;;  %v1500_v44 = vpop.f32.mrb[19].mxu1 }
 0x782   :  { %v1550_v53 = vadd.f32 %v2415_v48, %v1535_v49  ;;  %v1536_v54 = vmul.f32 %v2414_v46, %v1500_v44 }
 0x783   :  { %v1592_v55 = vadd.f32 %v1571_v52, %v1552_v20  ;;  %v1553_v56 = vadd.f32 %v2415_v48, %v1538_v51 }
 0x784   :  { %v1590_v59 = vadd.f32 %v1567_v42, %v1550_v53  ;;  %v1551_v61 = vadd.f32 %v2415_v48, %v1536_v54 }
 0x785   :  { %v1600_v62 = vmax.f32 %v1592_v55, 0.0  ;;  %v1593_v0 = vadd.f32 %v1573_v58, %v1553_v56 }
 0x786   :  { %v1598_v57 = vmax.f32 %v1590_v59, 0.0  ;;  %v1591_v1 = vadd.f32 %v1569_v47, %v1551_v61 }
 0x787   :  { %1610 = vst.msk [vmem:[#allocation5 + $0x11] sm:$0xff] %vm384_vm8, %v1600_v62  ;;  %v1601_v2 = vmax.f32 %v1593_v0, 0.0 }
 0x788   :  { %1608 = vst.msk [vmem:[#allocation5 + $0x1] sm:$0xff] %vm384_vm8, %v1598_v57  ;;  %v1599_v3 = vmax.f32 %v1591_v1, 0.0 }
 0x789   :  { %1611 = vst.msk [vmem:[#allocation5 + $0x19] sm:$0xff] %vm384_vm8, %v1601_v2 }
 0x78a   :  { %1609 = vst.msk [vmem:[#allocation5 + $0x9] sm:$0xff] %vm384_vm8, %v1599_v3 }
 0x78e   :  { %v1628_v63 = vld [vmem:[#allocation5 + $0x11] sm:$0xff] }
 0x78f   :  { %v2584_v14 = vpop.f32.mrb[20].mxu1  ;;  %v1626_v19 = vld [vmem:[#allocation5 + $0x1] sm:$0xff] }
 0x790   :  { %v1541_v15 = vmul.f32 %v2584_v14, %v2414_v46  ;;  %v1513_v16 = vpop.f32.mrb[21].mxu1  ;;  %v1629_v5 = vld [vmem:[#allocation5 + $0x19] sm:$0xff] }
 0x791   :  { %v1539_v9 = vmul.f32 %v2414_v46, %v1513_v16  ;;  %v2585_v60 = vpop.f32.mrb[22].mxu1  ;;  %v2816_v18 = vpack.i.bf16 %v1629_v5, %v1628_v63  ;;  %v1627_v21 = vld [vmem:[#allocation5 + $0x9] sm:$0xff]  ;;  %v1636_v27 = vld [vmem:[#allocation5 + $0x12] sm:$0xff]  ;;  %v1637_v10 = vld [vmem:[#allocation5 + $0x1a] sm:$0xff] }
 0x792   :  { %v1556_v12 = vadd.f32 %v2415_v48, %v1541_v15  ;;  %v1542_v13 = vmul.f32 %v2585_v60, %v2414_v46  ;;  %v1516_v17 = vpop.f32.mrb[23].mxu1  ;;  %v2821_v26 = vpack.i.bf16 %v1627_v21, %v1626_v19  ;;  %v1634_v30 = vld [vmem:[#allocation5 + $0x2] sm:$0xff]  ;;  %v1635_v31 = vld [vmem:[#allocation5 + $0xa] sm:$0xff]  ;;  %v2831_v38 = vpack.i.bf16 %v1637_v10, %v1636_v27  ;;  %v1621_v0 = vld [vmem:[#allocation5 + $0x18] sm:$0xff] }
 0x793   :  { %v1554_v24 = vadd.f32 %v2415_v48, %v1539_v9  ;;  %v1540_v25 = vmul.f32 %v2414_v46, %v1516_v17  ;;  %2817 = vrot.lane.b32.xlu1 %v2816_v18, %s2939_s30  ;;  %v2826_v43 = vpack.i.bf16 %v1635_v31, %v1634_v30  ;;  %v1620_v62 = vld [vmem:[#allocation5 + $0x10] sm:$0xff]  ;;  %v1619_v8 = vld [vmem:[#allocation5 + $0x8] sm:$0xff] }
 0x794   :  { %v1596_v28 = vadd.f32 %v1579_v23, %v1556_v12  ;;  %v1557_v29 = vadd.f32 %v2415_v48, %v1542_v13  ;;  %2822 = vrot.lane.b32.xlu0 %v2821_v26, %s2939_s30 }
 0x795   :  { %v1594_v33 = vadd.f32 %v1575_v7, %v1554_v24  ;;  %v1555_v34 = vadd.f32 %v2415_v48, %v1540_v25  ;;  %v1618_v7 = vld [vmem:[#allocation5] sm:$0xff] }
 0x796   :  { %v1604_v35 = vmax.f32 %v1596_v28, 0.0  ;;  %v1597_v36 = vadd.f32 %v1581_v32, %v1557_v29 }
 0x797   :  { %v1602_v40 = vmax.f32 %v1594_v33, 0.0  ;;  %v1595_v41 = vadd.f32 %v1577_v11, %v1555_v34  ;;  %2832 = vrot.lane.b32.xlu1 %v2831_v38, %s2940_s13 }
 0x798   :  { %1616 = vst.msk [vmem:[#allocation5 + $0x39] sm:$0xff] %vm384_vm8, %v1604_v35  ;;  %v1605_v45 = vmax.f32 %v1597_v36, 0.0  ;;  %2827 = vrot.lane.b32.xlu0 %v2826_v43, %s2940_s13 }
 0x799   :  { %1614 = vst.msk [vmem:[#allocation5 + $0x29] sm:$0xff] %vm384_vm8, %v1602_v40  ;;  %v1603_v42 = vmax.f32 %v1595_v41, 0.0 }
 0x79a   :  { %1617 = vst.msk [vmem:[#allocation5 + $0x41] sm:$0xff] %vm384_vm8, %v1605_v45 }
 0x79b   :  { %1615 = vst.msk [vmem:[#allocation5 + $0x31] sm:$0xff] %vm384_vm8, %v1603_v42 }
 0x79f   :  { %v1632_v46 = vld [vmem:[#allocation5 + $0x39] sm:$0xff] }
 0x7a0   :  { %v1630_v48 = vld [vmem:[#allocation5 + $0x29] sm:$0xff] }
 0x7a1   :  { %v1633_v47 = vld [vmem:[#allocation5 + $0x41] sm:$0xff] }
 0x7a2   :  { %v2836_v39 = vpack.i.bf16 %v1633_v47, %v1632_v46  ;;  %v1631_v22 = vld [vmem:[#allocation5 + $0x31] sm:$0xff]  ;;  %v1640_v49 = vld [vmem:[#allocation5 + $0x3a] sm:$0xff]  ;;  %v1641_v50 = vld [vmem:[#allocation5 + $0x42] sm:$0xff] }
 0x7a3   :  { %v2841_v37 = vpack.i.bf16 %v1631_v22, %v1630_v48  ;;  %v1638_v20 = vld [vmem:[#allocation5 + $0x2a] sm:$0xff]  ;;  %v1639_v51 = vld [vmem:[#allocation5 + $0x32] sm:$0xff]  ;;  %v2851_v44 = vpack.i.bf16 %v1641_v50, %v1640_v49  ;;  %v1625_v27 = vld [vmem:[#allocation5 + $0x40] sm:$0xff] }
 0x7a4   :  { %2837 = vrot.lane.b32.xlu1 %v2836_v39, %s2939_s30  ;;  %v2846_v52 = vpack.i.bf16 %v1639_v51, %v1638_v20  ;;  %v1624_v26 = vld [vmem:[#allocation5 + $0x38] sm:$0xff]  ;;  %v1622_v32 = vld [vmem:[#allocation5 + $0x28] sm:$0xff]  ;;  %v1623_v33 = vld [vmem:[#allocation5 + $0x30] sm:$0xff]  ;;  %v2942_v39 = vmov 0  }
 0x7a5   :  { %2842 = vrot.lane.b32.xlu0 %v2841_v37, %s2939_s30  ;;  %v2897_v47 = vld [vmem:[%s3710_s19] sm:$0xff]   ;;  %2083 = vmatprep.subr.bf16.mxu0 %v2942_v39  ;;  %v2898_v48 = vld [vmem:[%s3710_s19 + $0x8] sm:$0xff]   ;;  %v2899_v22 = vld [vmem:[%s3710_s19 + $0x10] sm:$0xff]  }
 0x7a6   :  { %2084 = vmatpush1.bf16.msra.mxu0 %v2897_v47  ;;  %v2900_v37 = vld [vmem:[%s3710_s19 + $0x18] sm:$0xff]   ;;  %v2901_v49 = vld [vmem:[%s3710_s19 + $0x20] sm:$0xff]   ;;  %v2902_v50 = vld [vmem:[%s3710_s19 + $0x28] sm:$0xff]  }
 0x7a7   :  { %2085 = vmatprep.subr.bf16.mxu0 %v2942_v39  ;;  %v2903_v20 = vld [vmem:[%s3710_s19 + $0x30] sm:$0xff]   ;;  %v2904_v51 = vld [vmem:[%s3710_s19 + $0x38] sm:$0xff]  }
 0x7a8   :  { %2852 = vrot.lane.b32.xlu1 %v2851_v44, %s2940_s13  ;;  %v2905_v44 = vld [vmem:[%s3710_s19 + $0x40] sm:$0xff]  }
 0x7a9   :  { %2847 = vrot.lane.b32.xlu0 %v2846_v52, %s2940_s13  ;;  %v2906_v52 = vld [vmem:[%s3710_s19 + $0x48] sm:$0xff]  }
 0x7aa   :  { %2086 = vmatpush1.bf16.msra.mxu0 %v2898_v48 }
 0x7ab   :  { %2087 = vmatprep.subr.bf16.mxu0 %v2942_v39 }
 0x7ae   :  { %2088 = vmatpush1.bf16.msra.mxu0 %v2899_v22 }
 0x7af   :  { %2089 = vmatprep.subr.bf16.mxu0 %v2942_v39 }
 0x7b2   :  { %2090 = vmatpush1.bf16.msra.mxu0 %v2900_v37 }
 0x7b3   :  { %2091 = vmatprep.subr.bf16.mxu0 %v2942_v39 }
 0x7b6   :  { %2092 = vmatpush1.bf16.msra.mxu0 %v2901_v49 }
 0x7b7   :  { %2093 = vmatprep.subr.bf16.mxu0 %v2942_v39 }
 0x7ba   :  { %2094 = vmatpush1.bf16.msra.mxu0 %v2902_v50 }
 0x7bb   :  { %2095 = vmatprep.subr.bf16.mxu0 %v2942_v39 }
 0x7be   :  { %2096 = vmatpush1.bf16.msra.mxu0 %v2903_v20 }
 0x7bf   :  { %2097 = vmatprep.subr.bf16.mxu0 %v2942_v39 }
 0x7c2   :  { %2098 = vmatpush1.bf16.msra.mxu0 %v2904_v51 }
 0x7c3   :  { %2099 = vmatprep.subr.bf16.mxu0 %v2942_v39 }
 0x7c6   :  { %2100 = vmatpush1.bf16.msra.mxu0 %v2905_v44 }
 0x7c7   :  { %2101 = vmatprep.subr.bf16.mxu0 %v2942_v39 }
 0x7ca   :  { %2102 = vmatpush1.bf16.msra.mxu0 %v2906_v52 }
 0x7cb   :  { %2103 = vmatprep.subr.bf16.mxu0 %v2942_v39 }
 0x805   :  { %v2818_v53 = vpop.permute.xlu1 %2817 }
 0x806   :  { %v2823_v54 = vpop.permute.xlu0 %2822  ;;  %v2820_v55 = vunpack.i.h.bf16 %v2818_v53  ;;  %v2819_v56 = vunpack.i.l.bf16 %v2818_v53  ;;  %v2907_v53 = vld [vmem:[%s3710_s19 + $0x50] sm:$0xff]  }
 0x807   :  { %v2825_v58 = vunpack.i.h.bf16 %v2823_v54  ;;  %v2824_v59 = vunpack.i.l.bf16 %v2823_v54  ;;  %2104 = vmatpush1.bf16.msra.mxu0 %v2907_v53  ;;  %v2426_v54 = vld [vmem:[%s3708_s17] ss:$0 sm:$0xff] }
 0x808   :  { %v1708_v3 = vsel %vm384_vm8, %v1620_v62, %v2819_v56  ;;  %v1709_v4 = vsel %vm384_vm8, %v1621_v0, %v2820_v55  ;;  %2105 = vmatprep.subr.bf16.mxu0 %v2942_v39  ;;  %v2427_v56 = vld [vmem:[%s3709_s18] ss:$0 sm:$0xff] }
 0x809   :  { %v2833_v61 = vpop.permute.xlu1 %2832  ;;  %v1707_v15 = vsel %vm384_vm8, %v1619_v8, %v2825_v58  ;;  %v1706_v16 = vsel %vm384_vm8, %v1618_v7, %v2824_v59 }
 0x80a   :  { %v2835_v57 = vunpack.i.h.bf16 %v2833_v61  ;;  %v2834_v1 = vunpack.i.l.bf16 %v2833_v61  ;;  %v2828_v2 = vpop.permute.xlu0 %2827 }
 0x80b   :  { %v2830_v11 = vunpack.i.h.bf16 %v2828_v2  ;;  %v2829_v14 = vunpack.i.l.bf16 %v2828_v2 }
 0x80c   :  { %v1716_v9 = vsel %vm1389_vm12, %v1708_v3, %v2834_v1  ;;  %v1717_v60 = vsel %vm1389_vm12, %v1709_v4, %v2835_v57 }
 0x80d   :  { %v1714_v63 = vsel %vm1389_vm12, %v1706_v16, %v2829_v14  ;;  %v1715_v5 = vsel %vm1389_vm12, %v1707_v15, %v2830_v11  ;;  %v1723_v13 = vpack.c.bf16 %v1717_v60, %v1716_v9  ;;  %v2908_v16 = vld [vmem:[%s3710_s19 + $0x58] sm:$0xff]  }
 0x80e   :  { %v1722_v12 = vpack.c.bf16 %v1715_v5, %v1714_v63  ;;  %2106 = vmatpush1.bf16.msra.mxu0 %v2908_v16 }
 0x810   :  { %2598 = vmatprep.mubr.msk.bf16.mxu1 %vm1450_vm13, %v1722_v12 }
 0x811   :  { %2599 = vmatmul.mubr.msk.bf16.vlgmr.msra.gmra.mrb[24].mxu1 %vm1450_vm13, %v1723_v13 }
 0x816   :  { %v2838_v17 = vpop.permute.xlu1 %2837 }
 0x817   :  { %v2843_v18 = vpop.permute.xlu0 %2842  ;;  %v2840_v19 = vunpack.i.h.bf16 %v2838_v17  ;;  %v2839_v21 = vunpack.i.l.bf16 %v2838_v17 }
 0x818   :  { %v2845_v23 = vunpack.i.h.bf16 %v2843_v18  ;;  %v2844_v24 = vunpack.i.l.bf16 %v2843_v18 }
 0x819   :  { %v1712_v30 = vsel %vm384_vm8, %v1624_v26, %v2839_v21  ;;  %v1713_v31 = vsel %vm384_vm8, %v1625_v27, %v2840_v19 }
 0x81a   :  { %v2853_v25 = vpop.permute.xlu1 %2852  ;;  %v1710_v36 = vsel %vm384_vm8, %v1622_v32, %v2844_v24  ;;  %v1711_v38 = vsel %vm384_vm8, %v1623_v33, %v2845_v23 }
 0x81b   :  { %v2855_v10 = vunpack.i.h.bf16 %v2853_v25  ;;  %v2854_v28 = vunpack.i.l.bf16 %v2853_v25  ;;  %v2848_v29 = vpop.permute.xlu0 %2847 }
 0x81c   :  { %v2850_v34 = vunpack.i.h.bf16 %v2848_v29  ;;  %v2849_v35 = vunpack.i.l.bf16 %v2848_v29 }
 0x81d   :  { %v1720_v40 = vsel %vm1389_vm12, %v1712_v30, %v2854_v28  ;;  %v1721_v41 = vsel %vm1389_vm12, %v1713_v31, %v2855_v10 }
 0x81e   :  { %v1718_v43 = vsel %vm1389_vm12, %v1710_v36, %v2849_v35  ;;  %v1719_v45 = vsel %vm1389_vm12, %v1711_v38, %v2850_v34  ;;  %v1725_v46 = vpack.c.bf16 %v1721_v41, %v1720_v40 }
 0x81f   :  { %v1724_v42 = vpack.c.bf16 %v1719_v45, %v1718_v43 }
 0x821   :  { %2602 = vmatprep.mubr.msk.bf16.mxu1 %vm1450_vm13, %v1724_v42 }
 0x822   :  { %2603 = vmatmul.mubr.msk.bf16.gmra.mrb[28].mxu1 %vm1450_vm13, %v1725_v46 }
 0x823   :  { %2622 = vmatprep.mubr.msk.f32.mxu1 %vm2944_vm15, %v2933_v6 }
 0x8e4   :  { %v2600_v55 = vpop.f32.mrb[24].mxu1 }
 0x8e5   :  { %v1860_v58 = vmul.f32 %v2600_v55, %v2426_v54  ;;  %v1820_v59 = vpop.f32.mrb[25].mxu1 }
 0x8e6   :  { %v1858_v61 = vmul.f32 %v2426_v54, %v1820_v59  ;;  %v2601_v62 = vpop.f32.mrb[26].mxu1 }
 0x8e7   :  { %v1875_v0 = vadd.f32 %v2427_v56, %v1860_v58  ;;  %v1861_v57 = vmul.f32 %v2601_v62, %v2426_v54  ;;  %v1823_v1 = vpop.f32.mrb[27].mxu1 }
 0x8e8   :  { %v1873_v2 = vadd.f32 %v2427_v56, %v1858_v61  ;;  %v1859_v3 = vmul.f32 %v2426_v54, %v1823_v1 }
 0x8e9   :  { %v1883_v4 = vmax.f32 %v1875_v0, 0.0  ;;  %v1876_v7 = vadd.f32 %v2427_v56, %v1861_v57 }
 0x8ea   :  { %v1881_v8 = vmax.f32 %v1873_v2, 0.0  ;;  %v1874_v11 = vadd.f32 %v2427_v56, %v1859_v3 }
 0x8eb   :  { %1894 = vst.msk [vmem:[#allocation6 + $0x11] sm:$0xff] %vm1389_vm12, %v1883_v4  ;;  %v1884_v14 = vmax.f32 %v1876_v7, 0.0 }
 0x8ec   :  { %1892 = vst.msk [vmem:[#allocation6 + $0x1] sm:$0xff] %vm1389_vm12, %v1881_v8  ;;  %v1882_v15 = vmax.f32 %v1874_v11, 0.0 }
 0x8ed   :  { %1895 = vst.msk [vmem:[#allocation6 + $0x19] sm:$0xff] %vm1389_vm12, %v1884_v14 }
 0x8ee   :  { %1893 = vst.msk [vmem:[#allocation6 + $0x9] sm:$0xff] %vm1389_vm12, %v1882_v15 }
 0x8f2   :  { %v1913_v60 = vld [vmem:[#allocation6 + $0x11] sm:$0xff] }
 0x8f3   :  { %v1911_v5 = vld [vmem:[#allocation6 + $0x1] sm:$0xff] }
 0x8f4   :  { %v1914_v63 = vld [vmem:[#allocation6 + $0x19] sm:$0xff] }
 0x8f5   :  { %v2604_v9 = vpop.f32.mrb[28].mxu1  ;;  %v2861_v17 = vpack.i.bf16 %v1914_v63, %v1913_v60  ;;  %v1919_v18 = vld [vmem:[#allocation6 + $0x2] sm:$0xff]  ;;  %v1920_v19 = vld [vmem:[#allocation6 + $0xa] sm:$0xff]  ;;  %v1921_v49 = vld [vmem:[#allocation6 + $0x12] sm:$0xff] }
 0x8f6   :  { %v1864_v12 = vmul.f32 %v2604_v9, %v2426_v54  ;;  %v1836_v13 = vpop.f32.mrb[29].mxu1  ;;  %v1912_v21 = vld [vmem:[#allocation6 + $0x9] sm:$0xff]  ;;  %v1968_v25 = vpack.c.bf16 %v1920_v19, %v1919_v18  ;;  %v1903_v47 = vld [vmem:[#allocation6] sm:$0xff] }
 0x8f7   :  { %v1862_v23 = vmul.f32 %v2426_v54, %v1836_v13  ;;  %v2605_v24 = vpop.f32.mrb[30].mxu1  ;;  %v2856_v26 = vpack.i.bf16 %v1912_v21, %v1911_v5  ;;  %2862 = vrot.lane.b32.xlu1 %v2861_v17, %s2940_s13  ;;  %v1904_v37 = vld [vmem:[#allocation6 + $0x8] sm:$0xff]  ;;  %v1922_v50 = vld [vmem:[#allocation6 + $0x1a] sm:$0xff]  ;;  %v1905_v55 = vld [vmem:[#allocation6 + $0x10] sm:$0xff] }
 0x8f8   :  { %v1879_v27 = vadd.f32 %v2427_v56, %v1864_v12  ;;  %v1865_v10 = vmul.f32 %v2605_v24, %v2426_v54  ;;  %v1839_v28 = vpop.f32.mrb[31].mxu1  ;;  %2440 = vmatprep.mubr.msk.bf16.mxu0 %vm1389_vm12, %v1968_v25  ;;  %v2255_v21 = vld [vmem:[%s3713_s22] sm:$0xff]  ;;  %v2943_v25 = vmov 0.0|0.0  }
 0x8f9   :  { %v1877_v29 = vadd.f32 %v2427_v56, %v1862_v23  ;;  %v1863_v30 = vmul.f32 %v2426_v54, %v1839_v28  ;;  %2857 = vrot.lane.b32.xlu0 %v2856_v26, %s2940_s13  ;;  %v1970_v54 = vpack.c.bf16 %v1922_v50, %v1921_v49  ;;  %v2256_v23 = vld [vmem:[%s3713_s22 + $0x8] sm:$0xff]  ;;  %2631 = vmatprep.subr.bf16.mxu1 %v2943_v25  ;;  %v2257_v26 = vld [vmem:[%s3713_s22 + $0x10] sm:$0xff]  ;;  %v2259_v28 = vld [vmem:[%s3713_s22 + $0x20] sm:$0xff] }
 0x8fa   :  { %v1887_v31 = vmax.f32 %v1879_v27, 0.0  ;;  %v1880_v32 = vadd.f32 %v2427_v56, %v1865_v10  ;;  %v2632_v24 = vpack.c.bf16 %v2256_v23, %v2255_v21 }
 0x8fb   :  { %v1885_v33 = vmax.f32 %v1877_v29, 0.0  ;;  %v1878_v34 = vadd.f32 %v2427_v56, %v1863_v30  ;;  %v1906_v56 = vld [vmem:[#allocation6 + $0x18] sm:$0xff] }
 0x8fc   :  { %1901 = vst.msk [vmem:[#allocation6 + $0x39] sm:$0xff] %vm1389_vm12, %v1887_v31  ;;  %v1888_v35 = vmax.f32 %v1880_v32, 0.0  ;;  %2633 = vmatpush3.bf16.msra.mxu1 %v2632_v24  ;;  %v2261_v31 = vld [vmem:[%s3713_s22 + $0x30] sm:$0xff] }
 0x8fd   :  { %1899 = vst.msk [vmem:[#allocation6 + $0x29] sm:$0xff] %vm1389_vm12, %v1885_v33  ;;  %v1886_v36 = vmax.f32 %v1878_v34, 0.0  ;;  %2634 = vmatprep.subr.bf16.mxu1 %v2943_v25 }
 0x8fe   :  { %1902 = vst.msk [vmem:[#allocation6 + $0x41] sm:$0xff] %vm1389_vm12, %v1888_v35  ;;  %v2444_v35 = vld [vmem:[%s3711_s20] ss:$0 sm:$0xff] }
 0x8ff   :  { %1900 = vst.msk [vmem:[#allocation6 + $0x31] sm:$0xff] %vm1389_vm12, %v1886_v36 }
 0x903   :  { %v1917_v38 = vld [vmem:[#allocation6 + $0x39] sm:$0xff] }
 0x904   :  { %v1915_v43 = vld [vmem:[#allocation6 + $0x29] sm:$0xff] }
 0x905   :  { %v1918_v40 = vld [vmem:[#allocation6 + $0x41] sm:$0xff] }
 0x906   :  { %v2871_v41 = vpack.i.bf16 %v1918_v40, %v1917_v38  ;;  %v1916_v45 = vld [vmem:[#allocation6 + $0x31] sm:$0xff]  ;;  %v1907_v4 = vld [vmem:[#allocation6 + $0x28] sm:$0xff]  ;;  %v1910_v13 = vld [vmem:[#allocation6 + $0x40] sm:$0xff] }
 0x907   :  { %v2866_v42 = vpack.i.bf16 %v1916_v45, %v1915_v43  ;;  %v1923_v61 = vld [vmem:[#allocation6 + $0x2a] sm:$0xff]  ;;  %v1924_v62 = vld [vmem:[#allocation6 + $0x32] sm:$0xff]  ;;  %v1926_v14 = vld [vmem:[#allocation6 + $0x42] sm:$0xff] }
 0x908   :  { %2872 = vrot.lane.b32.xlu1 %v2871_v41, %s2940_s13  ;;  %v1972_v57 = vpack.c.bf16 %v1924_v62, %v1923_v61  ;;  %v1908_v8 = vld [vmem:[#allocation6 + $0x30] sm:$0xff]  ;;  %v1909_v12 = vld [vmem:[#allocation6 + $0x38] sm:$0xff]  ;;  %v2445_v38 = vld [vmem:[%s3712_s21] ss:$0 sm:$0xff] }
 0x909   :  { %2867 = vrot.lane.b32.xlu0 %v2866_v42, %s2940_s13 }
 0x90c   :  { %2188 = vrot.lane.b32.xlu1 %v1874_v11, %s2940_s13  ;;  %v1925_v11 = vld [vmem:[#allocation6 + $0x3a] sm:$0xff] }
 0x90d   :  { %2186 = vrot.lane.b32.xlu0 %v1873_v2, %s2940_s13  ;;  %v1974_v5 = vpack.c.bf16 %v1926_v14, %v1925_v11 }
 0x910   :  { %2196 = vrot.lane.b32.xlu1 %v1878_v34, %s2940_s13 }
 0x911   :  { %2194 = vrot.lane.b32.xlu0 %v1877_v29, %s2940_s13  ;;  %v2260_v29 = vld [vmem:[%s3713_s22 + $0x28] sm:$0xff] }
 0x912   :  { %v2638_v30 = vpack.c.bf16 %v2260_v29, %v2259_v28 }
 0x914   :  { %2198 = vrot.lane.b32.xlu1 %v1879_v27, %s2940_s13  ;;  %v2258_v27 = vld [vmem:[%s3713_s22 + $0x18] sm:$0xff] }
 0x915   :  { %2190 = vrot.lane.b32.xlu0 %v1875_v0, %s2940_s13  ;;  %v2635_v10 = vpack.c.bf16 %v2258_v27, %v2257_v26 }
 0x917   :  { %2636 = vmatpush3.bf16.msra.mxu1 %v2635_v10 }
 0x918   :  { %2200 = vrot.lane.b32.xlu1 %v1880_v32, %s2940_s13  ;;  %2637 = vmatprep.subr.bf16.mxu1 %v2943_v25  ;;  %v2262_v32 = vld [vmem:[%s3713_s22 + $0x38] sm:$0xff]  ;;  %s2945_s22 = smov [#allocation7]  }
 0x919   :  { %2192 = vrot.lane.b32.xlu0 %v1876_v7, %s2940_s13  ;;  %v2641_v33 = vpack.c.bf16 %v2262_v32, %v2261_v31  ;;  %s2354_s16 = sshll.u32 %s2945_s22, 4  ;;  %s2355_s16 = int_to_ptr.vmem [resolvable:$true] %s2354_s16 }
 0x91a   :  { %s2909_s30 = scalar_lea.vmem %s2355_s16, 32  ;;  %p2914_p1 = scmp.lt.s32.totalorder %s2355_s16, %s2355_s16 }
 0x91b   :  { %2639 = vmatpush3.bf16.msra.mxu1 %v2638_v30  ;;  %p2910_p0 = scmp.ne.s32.totalorder %s2355_s16, %s2909_s30  ;;  %p2915_p2 = scmp.lt.s32.totalorder %s2909_s30, %s2909_s30 }
 0x91c   :  { %2640 = vmatprep.subr.bf16.mxu1 %v2943_v25 }
 0x91d   :  { %p2916_p3 = por %p2915_p2, %p2914_p1 }
 0x91f   :  { %2642 = vmatpush3.bf16.msra.mxu1 %v2641_v33  ;;  %p2917_p4 = pnand %p2916_p3, %p2910_p0 }
 0x969   :  { %v2863_v22 = vpop.permute.xlu1 %2862 }
 0x96a   :  { %v2865_v52 = vunpack.i.h.bf16 %v2863_v22  ;;  %v2864_v53 = vunpack.i.l.bf16 %v2863_v22 }
 0x96b   :  { %v2858_v46 = vpop.permute.xlu0 %2857 }
 0x96c   :  { %v2860_v39 = vunpack.i.h.bf16 %v2858_v46  ;;  %v2859_v48 = vunpack.i.l.bf16 %v2858_v46  ;;  %v1961_v58 = vsel %vm1389_vm12, %v1905_v55, %v2864_v53  ;;  %v1962_v59 = vsel %vm1389_vm12, %v1906_v56, %v2865_v52 }
 0x96d   :  { %v1969_v0 = vpack.c.bf16 %v1962_v59, %v1961_v58 }
 0x96e   :  { %v1960_v20 = vsel %vm1389_vm12, %v1904_v37, %v2860_v39  ;;  %v1959_v51 = vsel %vm1389_vm12, %v1903_v47, %v2859_v48 }
 0x96f   :  { %v1967_v44 = vpack.c.bf16 %v1960_v20, %v1959_v51 }
 0x971   :  { %2116 = vmatmul.mubr.bf16.vlgmr.msra.gmra.mrb[16].mxu0 %v1967_v44 }
 0x972   :  { %2441 = vmatprep.mubr.msk.bf16.mxu0 %vm1389_vm12, %v1970_v54 }
 0x979   :  { %2124 = vmatmul.mubr.bf16.gmra.mrb[20].mxu0 %v1969_v0 }
 0x97a   :  { %2442 = vmatprep.mubr.msk.bf16.mxu0 %vm1389_vm12, %v1972_v57  ;;  %v2873_v7 = vpop.permute.xlu1 %2872 }
 0x97b   :  { %v2868_v1 = vpop.permute.xlu0 %2867  ;;  %v2875_v60 = vunpack.i.h.bf16 %v2873_v7  ;;  %v2874_v63 = vunpack.i.l.bf16 %v2873_v7 }
 0x97c   :  { %v2870_v2 = vunpack.i.h.bf16 %v2868_v1  ;;  %v2869_v3 = vunpack.i.l.bf16 %v2868_v1 }
 0x97d   :  { %v1965_v17 = vsel %vm1389_vm12, %v1909_v12, %v2874_v63  ;;  %v1966_v18 = vsel %vm1389_vm12, %v1910_v13, %v2875_v60 }
 0x97e   :  { %v1963_v15 = vsel %vm1389_vm12, %v1907_v4, %v2869_v3  ;;  %v1964_v16 = vsel %vm1389_vm12, %v1908_v8, %v2870_v2  ;;  %v1973_v19 = vpack.c.bf16 %v1966_v18, %v1965_v17  ;;  %v2189_v48 = vpop.permute.xlu1 %2188 }
 0x97f   :  { %v1971_v9 = vpack.c.bf16 %v1964_v16, %v1963_v15  ;;  %v2187_v34 = vpop.permute.xlu0 %2186 }
 0x981   :  { %2132 = vmatmul.mubr.bf16.gmra.mrb[24].mxu0 %v1971_v9 }
 0x982   :  { %2443 = vmatprep.mubr.msk.bf16.mxu0 %vm1389_vm12, %v1974_v5  ;;  %v2197_v11 = vpop.permute.xlu1 %2196 }
 0x983   :  { %v2195_v43 = vpop.permute.xlu0 %2194 }
 0x987   :  { %v2191_v49 = vpop.permute.xlu0 %2190 }
 0x989   :  { %2140 = vmatmul.mubr.bf16.gmra.mrb[28].mxu0 %v1973_v19  ;;  %v2199_v19 = vpop.permute.xlu1 %2198 }
 0x98b   :  { %v2193_v0 = vpop.permute.xlu0 %2192 }
 0xa44   :  { %v2117_v36 = vpop.f32.mrb[16].mxu0 }
 0xa45   :  { %v2155_v40 = vmul.f32 %v2444_v35, %v2117_v36  ;;  %v2119_v41 = vpop.f32.mrb[17].mxu0  ;;  %v2201_v36 = vpop.permute.xlu1 %2200 }
 0xa46   :  { %v2120_v45 = vpop.f32.mrb[18].mxu0 }
 0xa47   :  { %v2170_v42 = vadd.f32 %v2445_v38, %v2155_v40  ;;  %v2156_v6 = vmul.f32 %v2444_v35, %v2120_v45  ;;  %v2122_v46 = vpop.f32.mrb[19].mxu0 }
 0xa49   :  { %v2210_v47 = vadd.f32 %v2187_v34, %v2170_v42  ;;  %v2171_v39 = vadd.f32 %v2445_v38, %v2156_v6 }
 0xa4b   :  { %v2218_v22 = vmax.f32 %v2210_v47, 0.0  ;;  %v2211_v37 = vadd.f32 %v2189_v48, %v2171_v39 }
 0xa4c   :  { %v2125_v50 = vpop.f32.mrb[20].mxu0 }
 0xa4d   :  { %v2219_v20 = vmax.f32 %v2211_v37, 0.0  ;;  %v2157_v51 = vmul.f32 %v2444_v35, %v2125_v50  ;;  %v2127_v44 = vpop.f32.mrb[21].mxu0  ;;  %v2226_v53 = vsel %vm1389_vm12, %v2218_v22, 0.0 }
 0xa4e   :  { %v2128_v52 = vpop.f32.mrb[22].mxu0 }
 0xa4f   :  { %v2227_v54 = vsel %vm1389_vm12, %v2219_v20, 0.0  ;;  %v2172_v55 = vadd.f32 %v2445_v38, %v2157_v51  ;;  %v2158_v56 = vmul.f32 %v2444_v35, %v2128_v52  ;;  %v2130_v58 = vpop.f32.mrb[23].mxu0 }
 0xa50   :  { %v2228_v59 = vadd.f32 %v2227_v54, %v2226_v53  ;;  %v2446_v54 = vld [vmem:[%s3714_s23] ss:$0 sm:$0xff] }
 0xa51   :  { %v2212_v61 = vadd.f32 %v2191_v49, %v2172_v55  ;;  %v2173_v62 = vadd.f32 %v2445_v38, %v2158_v56 }
 0xa53   :  { %v2220_v57 = vmax.f32 %v2212_v61, 0.0  ;;  %v2213_v1 = vadd.f32 %v2193_v0, %v2173_v62 }
 0xa54   :  { %v2133_v2 = vpop.f32.mrb[24].mxu0 }
 0xa55   :  { %v2229_v3 = vsel %vm1389_vm12, %v2220_v57, 0.0  ;;  %v2221_v4 = vmax.f32 %v2213_v1, 0.0  ;;  %v2159_v7 = vmul.f32 %v2444_v35, %v2133_v2  ;;  %v2135_v8 = vpop.f32.mrb[25].mxu0 }
 0xa56   :  { %v2230_v14 = vadd.f32 %v2229_v3, %v2228_v59  ;;  %v2136_v15 = vpop.f32.mrb[26].mxu0 }
 0xa57   :  { %v2231_v16 = vsel %vm1389_vm12, %v2221_v4, 0.0  ;;  %v2174_v9 = vadd.f32 %v2445_v38, %v2159_v7  ;;  %v2160_v60 = vmul.f32 %v2444_v35, %v2136_v15  ;;  %v2138_v63 = vpop.f32.mrb[27].mxu0 }
 0xa58   :  { %v2232_v5 = vadd.f32 %v2231_v16, %v2230_v14 }
 0xa59   :  { %v2214_v12 = vadd.f32 %v2195_v43, %v2174_v9  ;;  %v2175_v13 = vadd.f32 %v2445_v38, %v2160_v60 }
 0xa5a   :  { %v2233_v26 = vrot.slane %v2232_v5, 4 }
 0xa5b   :  { %v2222_v17 = vmax.f32 %v2214_v12, 0.0  ;;  %v2215_v18 = vadd.f32 %v2197_v11, %v2175_v13 }
 0xa5c   :  { %v2141_v21 = vpop.f32.mrb[28].mxu0  ;;  %v2234_v40 = vadd.f32 %v2233_v26, %v2232_v5 }
 0xa5d   :  { %v2223_v23 = vmax.f32 %v2215_v18, 0.0  ;;  %v2161_v24 = vmul.f32 %v2444_v35, %v2141_v21  ;;  %v2143_v25 = vpop.f32.mrb[29].mxu0  ;;  %v2239_v10 = vsel %vm1389_vm12, %v2222_v17, 0.0 }
 0xa5e   :  { %v2144_v27 = vpop.f32.mrb[30].mxu0  ;;  %v2235_v6 = vrot.slane %v2234_v40, 2 }
 0xa5f   :  { %v2240_v28 = vsel %vm1389_vm12, %v2223_v23, 0.0  ;;  %v2176_v29 = vadd.f32 %v2445_v38, %v2161_v24  ;;  %v2162_v30 = vmul.f32 %v2444_v35, %v2144_v27  ;;  %v2146_v31 = vpop.f32.mrb[31].mxu0 }
 0xa60   :  { %v2241_v32 = vadd.f32 %v2240_v28, %v2239_v10  ;;  %v2236_v48 = vadd.f32 %v2235_v6, %v2234_v40 }
 0xa61   :  { %v2216_v33 = vadd.f32 %v2199_v19, %v2176_v29  ;;  %v2177_v34 = vadd.f32 %v2445_v38, %v2162_v30 }
 0xa62   :  { %v2237_v35 = vrot.slane %v2236_v48, 1 }
 0xa63   :  { %v2224_v41 = vmax.f32 %v2216_v33, 0.0  ;;  %v2217_v43 = vadd.f32 %v2201_v36, %v2177_v34 }
 0xa64   :  { %v2238_v38 = vadd.f32 %v2237_v35, %v2236_v48 }
 0xa65   :  { %v2242_v45 = vsel %vm1389_vm12, %v2224_v41, 0.0  ;;  %v2225_v42 = vmax.f32 %v2217_v43, 0.0 }
 0xa66   :  { %v2243_v46 = vadd.f32 %v2242_v45, %v2241_v32  ;;  %v2253_v44 = vmul.f32 0.03125, %v2238_v38 }
 0xa67   :  { %v2244_v47 = vsel %vm1389_vm12, %v2225_v42, 0.0 }
 0xa68   :  { %v2245_v39 = vadd.f32 %v2244_v47, %v2243_v46 }
 0xa6a   :  { %v2246_v22 = vrot.slane %v2245_v39, 4 }
 0xa6c   :  { %v2247_v37 = vadd.f32 %v2246_v22, %v2245_v39 }
 0xa6e   :  { %v2248_v49 = vrot.slane %v2247_v37, 2 }
 0xa70   :  { %v2249_v50 = vadd.f32 %v2248_v49, %v2247_v37 }
 0xa72   :  { %v2250_v20 = vrot.slane %v2249_v50, 1 }
 0xa74   :  { %v2251_v51 = vadd.f32 %v2250_v20, %v2249_v50 }
 0xa76   :  { %v2254_v52 = vmul.f32 0.03125, %v2251_v51 }
 0xa78   :  { %v2273_v53 = vsel %vm2272_vm0, %v2254_v52, %v2253_v44 }
 0xa79   :  { %2623 = vmatmul.mubr.msk.f32.vlgmr.msra.gmra.mrb[32].mxu1 %vm1389_vm12, %v2273_v53 }
 0xb4c   :  { %v2342_v55 = vpop.f32.mrb[32].mxu1 }
 0xb4d   :  { %v2343_v56 = vadd.f32 %v2446_v54, %v2342_v55  ;;  %v2624_v58 = vpop.f32.mrb[33].mxu1 }
 0xb4f   :  { %2347 = vst.msk [vmem:[#allocation7] sm:$0x3] %vm2346_vm1, %v2343_v56 }
 0xb50   :  { %2920 = shalt.err (!%p2917_p4)
}
 0xb51   :  { %s2921_s17 = scalar_lea.hbm %s3715_s24, 32 }
 0xb52   :  { %p2922_p5 = scmp.ne.s32.totalorder %s3715_s24, %s2921_s17  ;;  %p2925_p6 = scmp.lt.u32.totalorder %s2921_s17, %s3715_s24 }
 0xb54   :  { %p2927_p7 = pnand %p2925_p6, %p2922_p5 }
 0xb56   :  { %2930 = shalt.err (!%p2927_p7)
}
 0xb57   :  { %2357 = dma.vmem_to_hbm [thread:$0]  %s2355_s16, 32, %s3715_s24, [#allocation8]  }
 0xb58   :  { %2931 = dma.done.wait [#allocation8], 32  }
 0xb59   :  { %2932 = vsyncadd [#allocation8], 4294967264 }
 0xb5a   :  { %2361 = vsyncpa [#allocation8], 1 }

</bundles_post_ra>
